<compile_context>
chip_gen: v7x
topology: tpu7x:2x2x1
jax: 0.10.0
libtpu: 0.0.40
codegen_flags: <defaults>
</compile_context>

<pallas_src>
import functools
import math

import jax
import jax.numpy as jnp
from jax.experimental import pallas as pl
from jax.experimental.pallas import tpu as pltpu

# ----------------------------- model hyper-params (small, synthetic) -----------------
IMG = 16          # image spatial size
CHANS = 3         # RGB
PATCH = 8         # ViT patch size -> (16/8)^2 = 4 patches, +CLS = 5 tokens
VIT_D = 32        # vit_hidden
VIT_H = 4
VIT_MLP = 64
VIT_LAYERS = 1
VIT_EPS = 1e-12   # HF ViT LayerNorm eps

LL_D = 64         # llama_hidden
LL_H = 4
HEAD_D = LL_D // LL_H
LL_MLP = 128
LL_LAYERS = 1
LL_EPS = 1e-6     # Llama RMSNorm eps
VOCAB = 64

LORA_R = 16
LORA_ALPHA = 32
LORA_SCALE = LORA_ALPHA / LORA_R   # = 2.0
# TODO(synk): LoRA dropout (p=0.1) is a no-op in eval mode; training-mode dropout not modeled.

VMEM = pltpu.MemorySpace.VMEM
NEG_INF = -1e30


# ----------------------------- in-kernel math helpers (traced inside kernels) --------
def _layernorm(x, g, b, eps):
    mean = jnp.mean(x, axis=-1, keepdims=True)
    var = jnp.mean((x - mean) ** 2, axis=-1, keepdims=True)
    return (x - mean) * jax.lax.rsqrt(var + eps) * g + b


def _rmsnorm(x, g, eps):
    ms = jnp.mean(x * x, axis=-1, keepdims=True)
    return x * jax.lax.rsqrt(ms + eps) * g


def _softmax_rows(s):
    m = jnp.max(s, axis=-1, keepdims=True)
    p = jnp.exp(s - m)
    # EUP approximate reciprocal instead of a VALU divide.
    return p * pl.reciprocal(jnp.sum(p, axis=-1, keepdims=True), approx=True)


def _mha(q3, k3, v3, wo, mask, heads, head_dim):
    """q3,k3,v3: [B,S,H*Dh] f32 (RoPE already applied if needed).
    Returns attention output already projected through wo: [B*S, D_out]."""
    B, S, _ = q3.shape
    scale = 1.0 / math.sqrt(head_dim)
    out = None
    for h in range(heads):          # small static head loop, lane slices of the fused slab
        sl = slice(h * head_dim, (h + 1) * head_dim)
        qh, kh, vh = q3[:, :, sl], k3[:, :, sl], v3[:, :, sl]
        s = jnp.einsum('bqd,bkd->bqk', qh, kh,
                       preferred_element_type=jnp.float32) * scale
        if mask is not None:
            s = s + mask[None]
        p = _softmax_rows(s)
        ctx = jnp.einsum('bqk,bkd->bqd', p, vh, preferred_element_type=jnp.float32)
        # merge-heads + out-proj fused: accumulate ctx_h @ Wo[h-block, :]  (lane-dense output)
        contrib = jnp.dot(ctx.reshape(B * S, head_dim), wo[sl, :],
                          preferred_element_type=jnp.float32)
        out = contrib if out is None else out + contrib
    return out


# ----------------------------- Pallas kernels ----------------------------------------
def vit_embed_kernel(x_ref, w_ref, b_ref, cls_ref, pos_ref, o_ref):
    # x: [B, S, C*P*P]; row 0 of every image is a zero placeholder for the CLS token.
    B, S, CPP = x_ref.shape
    D = w_ref.shape[1]
    x = x_ref[...].reshape(B * S, CPP).astype(jnp.float32)
    emb = (jnp.dot(x, w_ref[...].astype(jnp.float32),
                   preferred_element_type=jnp.float32)
           + b_ref[...].astype(jnp.float32)).reshape(B, S, D)
    row = jax.lax.broadcasted_iota(jnp.int32, (B, S, D), 1)
    cls_b = jnp.broadcast_to(cls_ref[...].astype(jnp.float32), (B, S, D))
    tok = jnp.where(row == 0, cls_b, emb) + pos_ref[...].astype(jnp.float32)
    o_ref[...] = tok.astype(o_ref.dtype)


def vit_layer_kernel(x_ref, ln1_g_ref, ln1_b_ref, wqkv_ref, bqkv_ref,
                     wo_ref, bo_ref, ln2_g_ref, ln2_b_ref,
                     w1_ref, b1_ref, w2_ref, b2_ref, o_ref, *, heads, eps):
    B, S, D = x_ref.shape
    x2 = x_ref[...].astype(jnp.float32).reshape(B * S, D)

    # LN1 -> fused QKV projection (single lane-dense [.., 3D] matmul)
    y = _layernorm(x2, ln1_g_ref[...].astype(jnp.float32),
                   ln1_b_ref[...].astype(jnp.float32), eps)
    qkv = jnp.dot(y, wqkv_ref[...].astype(jnp.float32),
                  preferred_element_type=jnp.float32) + bqkv_ref[...].astype(jnp.float32)
    q3 = qkv[:, :D].reshape(B, S, D)
    k3 = qkv[:, D:2 * D].reshape(B, S, D)
    v3 = qkv[:, 2 * D:].reshape(B, S, D)

    a = _mha(q3, k3, v3, wo_ref[...].astype(jnp.float32), None, heads, D // heads)
    h1 = x2 + a + bo_ref[...].astype(jnp.float32)

    # LN2 -> MLP (GELU)
    y2 = _layernorm(h1, ln2_g_ref[...].astype(jnp.float32),
                    ln2_b_ref[...].astype(jnp.float32), eps)
    hmid = jnp.dot(y2, w1_ref[...].astype(jnp.float32),
                   preferred_element_type=jnp.float32) + b1_ref[...].astype(jnp.float32)
    # TODO(synk): HF ViT uses exact erf-GELU; tanh approximation used here.
    hmid = jax.nn.gelu(hmid, approximate=True)
    m = jnp.dot(hmid, w2_ref[...].astype(jnp.float32),
                preferred_element_type=jnp.float32) + b2_ref[...].astype(jnp.float32)
    o_ref[...] = (h1 + m).reshape(B, S, D).astype(o_ref.dtype)


def vit_final_proj_kernel(x_ref, lnf_g_ref, lnf_b_ref, w_ref, b_ref, o_ref, *, eps):
    # fused: final ViT LayerNorm -> projection to llama hidden -> cast to llama dtype (bf16)
    B, S, Dv = x_ref.shape
    Dl = w_ref.shape[1]
    x2 = x_ref[...].astype(jnp.float32).reshape(B * S, Dv)
    y = _layernorm(x2, lnf_g_ref[...].astype(jnp.float32),
                   lnf_b_ref[...].astype(jnp.float32), eps)
    p = jnp.dot(y, w_ref[...].astype(jnp.float32),
                preferred_element_type=jnp.float32) + b_ref[...].astype(jnp.float32)
    o_ref[...] = p.reshape(B, S, Dl).astype(o_ref.dtype)


def llama_layer_kernel(x_ref, attn_norm_ref, wqkv_ref, a_qv_ref, b_qv_ref,
                       wo_ref, mlp_norm_ref, wgu_ref, wd_ref,
                       rot_ref, cos_ref, sin_ref, mask_ref, o_ref,
                       *, heads, head_dim, mlp_dim, lora_scale, eps):
    B, S, D = x_ref.shape
    x2 = x_ref[...].astype(jnp.float32).reshape(B * S, D)

    # RMSNorm -> fused QKV + fused LoRA(q|v) projections (all lane-dense matmuls)
    y = _rmsnorm(x2, attn_norm_ref[...].astype(jnp.float32), eps)
    qkv = jnp.dot(y, wqkv_ref[...].astype(jnp.float32),
                  preferred_element_type=jnp.float32)                       # [N, 3D]
    ya = jnp.dot(y, a_qv_ref[...].astype(jnp.float32),
                 preferred_element_type=jnp.float32)                        # [N, 2r]
    lora = jnp.dot(ya, b_qv_ref[...].astype(jnp.float32),
                   preferred_element_type=jnp.float32)                      # [N, 2D] (block-diag B)
    q2 = qkv[:, :D] + lora_scale * lora[:, :D]
    k2 = qkv[:, D:2 * D]
    v2 = qkv[:, 2 * D:] + lora_scale * lora[:, D:]

    # RoPE for all heads at once: rotate-half == matmul with a block-diagonal permutation
    # matrix (MXU), then elementwise with tiled cos/sin tables (constants).
    rot_mat = rot_ref[...]
    cos = cos_ref[...][None]          # [1, S, D]
    sin = sin_ref[...][None]
    q_rot = jnp.dot(q2, rot_mat, preferred_element_type=jnp.float32)
    k_rot = jnp.dot(k2, rot_mat, preferred_element_type=jnp.float32)
    q3 = q2.reshape(B, S, D) * cos + q_rot.reshape(B, S, D) * sin
    k3 = k2.reshape(B, S, D) * cos + k_rot.reshape(B, S, D) * sin
    v3 = v2.reshape(B, S, D)

    a = _mha(q3, k3, v3, wo_ref[...].astype(jnp.float32), mask_ref[...],
             heads, head_dim)
    h1 = x2 + a

    # RMSNorm -> SwiGLU MLP (fused gate|up weight, f32 throughout)
    y2 = _rmsnorm(h1, mlp_norm_ref[...].astype(jnp.float32), eps)
    gu = jnp.dot(y2, wgu_ref[...].astype(jnp.float32),
                 preferred_element_type=jnp.float32)                        # [N, 2*MLP]
    hmid = jax.nn.silu(gu[:, :mlp_dim]) * gu[:, mlp_dim:]
    m = jnp.dot(hmid, wd_ref[...].astype(jnp.float32),
                preferred_element_type=jnp.float32)
    o_ref[...] = (h1 + m).reshape(B, S, D).astype(o_ref.dtype)


def lm_head_loss_kernel(x_ref, norm_ref, lm_w_ref, labels_ref, loss_ref, logits_ref, *, eps):
    # fused: final RMSNorm -> lm_head matmul -> shifted causal-LM cross-entropy.
    B, S, D = x_ref.shape
    V = lm_w_ref.shape[1]
    x2 = x_ref[...].astype(jnp.float32).reshape(B * S, D)
    y = _rmsnorm(x2, norm_ref[...].astype(jnp.float32), eps)
    logits = jnp.dot(y, lm_w_ref[...].astype(jnp.float32),
                     preferred_element_type=jnp.float32).reshape(B, S, V)
    logits_ref[...] = logits                                           # written to HBM once

    lg = logits[:, :-1, :]                                             # shift logits left
    lab = labels_ref[...]                                              # [B, S-1, 1] (already shifted)
    m = jnp.max(lg, axis=-1, keepdims=True)
    lse = jnp.log(jnp.sum(jnp.exp(lg - m), axis=-1, keepdims=True)) + m
    logp = lg - lse
    vid = jax.lax.broadcasted_iota(jnp.int32, lg.shape, 2)
    picked = jnp.sum(jnp.where(vid == lab, logp, 0.0), axis=-1, keepdims=True)   # [B, S-1, 1]
    valid = (lab >= 0).astype(jnp.float32)
    num = jnp.sum((picked * valid).reshape(B * (S - 1), 1), axis=0, keepdims=True)   # [1,1]
    den = jnp.sum(valid.reshape(B * (S - 1), 1), axis=0, keepdims=True)
    # TODO(synk): PyTorch returns NaN when every label is ignore_index; clamped to 0 here.
    loss_ref[...] = -num / jnp.maximum(den, 1.0)


# ----------------------------- pallas_call wrapper ------------------------------------
def _call(kernel, out_shape, *args):
    return pl.pallas_call(
        kernel,
        out_shape=out_shape,
        in_specs=[pl.BlockSpec(memory_space=VMEM) for _ in args],
        out_specs=pl.BlockSpec(memory_space=VMEM),
    )(*args)


# ----------------------------- glue: constants (RoPE / mask) --------------------------
def rope_tables(S, Dh, base=10000.0):
    inv_freq = 1.0 / (base ** (jnp.arange(0, Dh, 2, dtype=jnp.float32) / Dh))
    ang = jnp.arange(S, dtype=jnp.float32)[:, None] * inv_freq[None, :]   # [S, Dh/2]
    cos = jnp.concatenate([jnp.cos(ang), jnp.cos(ang)], axis=-1)          # [S, Dh]
    sin = jnp.concatenate([jnp.sin(ang), jnp.sin(ang)], axis=-1)
    return cos, sin


def rotate_half_matrix(head_dim, heads):
    # R such that (x @ R) == rotate_half(x) = [-x2, x1]   (per head block)
    h2 = head_dim // 2
    eye = jnp.eye(h2, dtype=jnp.float32)
    zero = jnp.zeros((h2, h2), jnp.float32)
    r = jnp.concatenate([jnp.concatenate([zero, eye], axis=1),
                         jnp.concatenate([-eye, zero], axis=1)], axis=0)   # [Dh, Dh]
    return jnp.kron(jnp.eye(heads, dtype=jnp.float32), r)                  # block-diag [D, D]


# ----------------------------- forward pass --------------------------------------------
def vit_forward(p, images):
    B, C, H, W = images.shape
    nH, nW = H // PATCH, W // PATCH
    S = nH * nW + 1
    # im2col glue: NCHW -> [B, n_patches, C*P*P] (matches Conv2d(kernel=stride=PATCH))
    x = images.reshape(B, C, nH, PATCH, nW, PATCH)
    patches = x.transpose(0, 2, 4, 1, 3, 5).reshape(B, nH * nW, C * PATCH * PATCH)
    # zero placeholder row for CLS so the whole token grid goes through one fused kernel
    x_tok = jnp.concatenate([jnp.zeros((B, 1, patches.shape[-1]), patches.dtype), patches],
                            axis=1)                                        # [B, S, C*P*P]

    h = _call(vit_embed_kernel,
              jax.ShapeDtypeStruct((B, S, VIT_D), jnp.float32),
              x_tok, p['patch_w'], p['patch_b'], p['cls'], p['pos'])

    layer_k = functools.partial(vit_layer_kernel, heads=VIT_H, eps=VIT_EPS)
    for lp in p['layers']:
        h = _call(layer_k, jax.ShapeDtypeStruct((B, S, VIT_D), jnp.float32),
                  h, lp['ln1_g'], lp['ln1_b'], lp['wqkv'], lp['bqkv'],
                  lp['wo'], lp['bo'], lp['ln2_g'], lp['ln2_b'],
                  lp['w1'], lp['b1'], lp['w2'], lp['b2'])
    return h      # pre-final-LN hidden (final LN fused into the projection kernel)


def llama_forward(p, embeds, labels):
    B, S, D = embeds.shape
    # compile-time constants: RoPE tables (tiled per head), rotate-half matrix, causal mask
    cos, sin = rope_tables(S, HEAD_D)
    cos_full = jnp.tile(cos, (1, LL_H))                    # [S, D]
    sin_full = jnp.tile(sin, (1, LL_H))
    rot_mat = rotate_half_matrix(HEAD_D, LL_H)             # [D, D]
    qi = jax.lax.broadcasted_iota(jnp.int32, (S, S), 0)
    ki = jax.lax.broadcasted_iota(jnp.int32, (S, S), 1)
    mask = jnp.where(ki <= qi, 0.0, NEG_INF).astype(jnp.float32)

    layer_k = functools.partial(llama_layer_kernel, heads=LL_H, head_dim=HEAD_D,
                                mlp_dim=LL_MLP, lora_scale=LORA_SCALE, eps=LL_EPS)
    h = embeds
    for lp in p['layers']:
        h = _call(layer_k, jax.ShapeDtypeStruct((B, S, D), jnp.bfloat16),
                  h, lp['attn_norm'], lp['wqkv'], lp['a_qv'], lp['b_qv'],
                  lp['wo'], lp['mlp_norm'], lp['wgu'], lp['wd'],
                  rot_mat, cos_full, sin_full, mask)

    # fused final RMSNorm + lm_head + shifted cross-entropy (HF CausalLM semantics)
    shift_labels = labels[:, 1:].astype(jnp.int32)[:, :, None]           # [B, S-1, 1]
    loss, logits = pl.pallas_call(
        functools.partial(lm_head_loss_kernel, eps=LL_EPS),
        out_shape=(jax.ShapeDtypeStruct((1, 1), jnp.float32),
                   jax.ShapeDtypeStruct((B, S, VOCAB), jnp.float32)),
        in_specs=[pl.BlockSpec(memory_space=VMEM)] * 4,
        out_specs=(pl.BlockSpec(memory_space=VMEM), pl.BlockSpec(memory_space=VMEM)),
    )(h, p['final_norm'], p['lm_head'], shift_labels)
    return loss[0, 0], logits


def vision_to_llama_forward(params, images, labels):
    # vision encoder is frozen (torch.no_grad) -> plain forward
    h_vit = vit_forward(params['vit'], images)                           # [B, S, VIT_D]
    B, S, _ = h_vit.shape
    # fused: ViT final LayerNorm -> projection -> cast to llama dtype (bf16)
    embeds = _call(functools.partial(vit_final_proj_kernel, eps=VIT_EPS),
                   jax.ShapeDtypeStruct((B, S, LL_D), jnp.bfloat16),
                   h_vit, params['vit']['lnf_g'], params['vit']['lnf_b'],
                   params['proj_w'], params['proj_b'])
    return llama_forward(params['llama'], embeds, labels)


# ----------------------------- deterministic parameter init ---------------------------
def init_params(key):
    keys = iter(jax.random.split(key, 128))

    def nrm(shape, scale=0.02, dtype=jnp.float32):
        return (jax.random.normal(next(keys), shape, jnp.float32) * scale).astype(dtype)

    vit_layers = []
    for _ in range(VIT_LAYERS):
        wq, wk, wv = nrm((VIT_D, VIT_D)), nrm((VIT_D, VIT_D)), nrm((VIT_D, VIT_D))
        vit_layers.append(dict(
            ln1_g=jnp.ones((1, VIT_D), jnp.float32), ln1_b=jnp.zeros((1, VIT_D), jnp.float32),
            wqkv=jnp.concatenate([wq, wk, wv], axis=1),        # fused [D, 3D] (lane-dense)
            bqkv=jnp.zeros((1, 3 * VIT_D), jnp.float32),
            wo=nrm((VIT_D, VIT_D)), bo=jnp.zeros((1, VIT_D), jnp.float32),
            ln2_g=jnp.ones((1, VIT_D), jnp.float32), ln2_b=jnp.zeros((1, VIT_D), jnp.float32),
            w1=nrm((VIT_D, VIT_MLP)), b1=jnp.zeros((1, VIT_MLP), jnp.float32),
            w2=nrm((VIT_MLP, VIT_D)), b2=jnp.zeros((1, VIT_D), jnp.float32),
        ))
    vit = dict(
        patch_w=nrm((CHANS * PATCH * PATCH, VIT_D)), patch_b=jnp.zeros((1, VIT_D), jnp.float32),
        cls=nrm((1, 1, VIT_D)), pos=nrm((1, (IMG // PATCH) ** 2 + 1, VIT_D)),
        layers=vit_layers,
        lnf_g=jnp.ones((1, VIT_D), jnp.float32), lnf_b=jnp.zeros((1, VIT_D), jnp.float32),
    )

    ll_layers = []
    for _ in range(LL_LAYERS):
        wq = nrm((LL_D, LL_D), dtype=jnp.bfloat16)
        wk = nrm((LL_D, LL_D), dtype=jnp.bfloat16)
        wv = nrm((LL_D, LL_D), dtype=jnp.bfloat16)
        aq = nrm((LL_D, LORA_R), dtype=jnp.bfloat16)
        av = nrm((LL_D, LORA_R), dtype=jnp.bfloat16)
        wg = nrm((LL_D, LL_MLP), dtype=jnp.bfloat16)
        wu = nrm((LL_D, LL_MLP), dtype=jnp.bfloat16)
        ll_layers.append(dict(
            attn_norm=jnp.ones((1, LL_D), jnp.bfloat16),
            mlp_norm=jnp.ones((1, LL_D), jnp.bfloat16),
            wqkv=jnp.concatenate([wq, wk, wv], axis=1),        # fused [D, 3D]
            a_qv=jnp.concatenate([aq, av], axis=1),            # fused LoRA A (q|v): [D, 2r]
            # block-diagonal [[Bq, 0], [0, Bv]]; PEFT initializes B = 0
            b_qv=jnp.zeros((2 * LORA_R, 2 * LL_D), jnp.bfloat16),
            wo=nrm((LL_D, LL_D), dtype=jnp.bfloat16),
            wgu=jnp.concatenate([wg, wu], axis=1),             # fused gate|up: [D, 2*MLP]
            wd=nrm((LL_MLP, LL_D), dtype=jnp.bfloat16),
        ))
    llama = dict(
        layers=ll_layers,
        final_norm=jnp.ones((1, LL_D), jnp.bfloat16),
        lm_head=nrm((LL_D, VOCAB), dtype=jnp.bfloat16),
    )

    proj_w = nrm((VIT_D, LL_D))
    proj_b = jnp.zeros((1, LL_D), jnp.float32)
    return dict(vit=vit, llama=llama, proj_w=proj_w, proj_b=proj_b)


# ----------------------------- main ----------------------------------------------------
if __name__ == "__main__":
    key = jax.random.PRNGKey(0)
    k_param, k_img, k_lab = jax.random.split(key, 3)

    params = init_params(k_param)
    images = jax.random.normal(k_img, (2, CHANS, IMG, IMG), jnp.float32)     # NCHW
    seq_len = (IMG // PATCH) ** 2 + 1                                        # 5 tokens (CLS + patches)
    labels = jax.random.randint(k_lab, (2, seq_len), 0, VOCAB, jnp.int32)

    fwd = jax.jit(vision_to_llama_forward)
    loss, logits = fwd(params, images, labels)
    jax.block_until_ready((loss, logits))

    assert logits.shape == (2, seq_len, VOCAB)
    assert loss.shape == () and jnp.isfinite(loss)
    print("KERNEL_OK")
</pallas_src>

<mosaic_0001>
module attributes {stable_mosaic.version = 11 : i64} {
  func.func @vit_embed_kernel(%arg0: memref<2x5x192xf32, #tpu.memory_space<vmem>>, %arg1: memref<192x32xf32, #tpu.memory_space<vmem>>, %arg2: memref<1x32xf32, #tpu.memory_space<vmem>>, %arg3: memref<1x1x32xf32, #tpu.memory_space<vmem>>, %arg4: memref<1x5x32xf32, #tpu.memory_space<vmem>>, %arg5: memref<2x5x32xf32, #tpu.memory_space<vmem>>) attributes {dimension_semantics = [], scalar_prefetch = 0 : i64, scratch_operands = 0 : i64, tpu.core_type = #tpu.core_type<tc>} {
    %c0 = arith.constant 0 : index
    %c0_0 = arith.constant 0 : index
    %c0_1 = arith.constant 0 : index
    %0 = vector.load %arg0[%c0, %c0_0, %c0_1] : memref<2x5x192xf32, #tpu.memory_space<vmem>>, vector<2x5x192xf32>
    %1 = vector.shape_cast %0 : vector<2x5x192xf32> to vector<10x192xf32>
    %c0_2 = arith.constant 0 : index
    %c0_3 = arith.constant 0 : index
    %2 = vector.load %arg1[%c0_2, %c0_3] : memref<192x32xf32, #tpu.memory_space<vmem>>, vector<192x32xf32>
    %cst = arith.constant dense<0.000000e+00> : vector<10x32xf32>
    %3 = tpu.matmul %1, %2, %cst {dimension_numbers = #tpu.dot_dimension_numbers<[1], [0], [0], [1], [0, 0, 1, 1], [], []>} : vector<10x192xf32>, vector<192x32xf32>, vector<10x32xf32> -> vector<10x32xf32>
    %c0_4 = arith.constant 0 : index
    %c0_5 = arith.constant 0 : index
    %4 = vector.load %arg2[%c0_4, %c0_5] : memref<1x32xf32, #tpu.memory_space<vmem>>, vector<1x32xf32>
    %5 = vector.broadcast %4 : vector<1x32xf32> to vector<10x32xf32>
    %6 = arith.addf %3, %5 : vector<10x32xf32>
    %7 = vector.shape_cast %6 : vector<10x32xf32> to vector<2x5x32xf32>
    %8 = tpu.iota {dimensions = array<i32: 1>} : vector<2x5x32xi32>
    %c0_6 = arith.constant 0 : index
    %c0_7 = arith.constant 0 : index
    %c0_8 = arith.constant 0 : index
    %9 = vector.load %arg3[%c0_6, %c0_7, %c0_8] : memref<1x1x32xf32, #tpu.memory_space<vmem>>, vector<1x1x32xf32>
    %10 = vector.shape_cast %9 : vector<1x1x32xf32> to vector<1x1x32xf32>
    %11 = vector.broadcast %10 : vector<1x1x32xf32> to vector<2x5x32xf32>
    %c0_i32 = arith.constant 0 : i32
    %12 = vector.broadcast %c0_i32 : i32 to vector<2x5x32xi32>
    %13 = arith.cmpi eq, %8, %12 : vector<2x5x32xi32>
    %14 = arith.select %13, %11, %7 : vector<2x5x32xi1>, vector<2x5x32xf32>
    %c0_9 = arith.constant 0 : index
    %c0_10 = arith.constant 0 : index
    %c0_11 = arith.constant 0 : index
    %15 = vector.load %arg4[%c0_9, %c0_10, %c0_11] : memref<1x5x32xf32, #tpu.memory_space<vmem>>, vector<1x5x32xf32>
    %16 = vector.broadcast %15 : vector<1x5x32xf32> to vector<2x5x32xf32>
    %17 = arith.addf %14, %16 : vector<2x5x32xf32>
    %c0_12 = arith.constant 0 : index
    %c0_13 = arith.constant 0 : index
    %c0_14 = arith.constant 0 : index
    %18 = vector.load %arg5[%c0_12, %c0_13, %c0_14] : memref<2x5x32xf32, #tpu.memory_space<vmem>>, vector<2x5x32xf32>
    tpu.vector_store %arg5[%c0_12, %c0_13, %c0_14], %17 {strides = array<i32>} : memref<2x5x32xf32, #tpu.memory_space<vmem>>, vector<2x5x32xf32>,
    return
  }
}

module attributes {stable_mosaic.version = 11 : i64} {
  func.func @vit_layer_kernel(%arg0: memref<2x5x32xf32, #tpu.memory_space<vmem>>, %arg1: memref<1x32xf32, #tpu.memory_space<vmem>>, %arg2: memref<1x32xf32, #tpu.memory_space<vmem>>, %arg3: memref<32x96xf32, #tpu.memory_space<vmem>>, %arg4: memref<1x96xf32, #tpu.memory_space<vmem>>, %arg5: memref<32x32xf32, #tpu.memory_space<vmem>>, %arg6: memref<1x32xf32, #tpu.memory_space<vmem>>, %arg7: memref<1x32xf32, #tpu.memory_space<vmem>>, %arg8: memref<1x32xf32, #tpu.memory_space<vmem>>, %arg9: memref<32x64xf32, #tpu.memory_space<vmem>>, %arg10: memref<1x64xf32, #tpu.memory_space<vmem>>, %arg11: memref<64x32xf32, #tpu.memory_space<vmem>>, %arg12: memref<1x32xf32, #tpu.memory_space<vmem>>, %arg13: memref<2x5x32xf32, #tpu.memory_space<vmem>>) attributes {dimension_semantics = [], scalar_prefetch = 0 : i64, scratch_operands = 0 : i64, tpu.core_type = #tpu.core_type<tc>} {
    %c0 = arith.constant 0 : index
    %c0_0 = arith.constant 0 : index
    %c0_1 = arith.constant 0 : index
    %0 = vector.load %arg0[%c0, %c0_0, %c0_1] : memref<2x5x32xf32, #tpu.memory_space<vmem>>, vector<2x5x32xf32>
    %1 = vector.shape_cast %0 : vector<2x5x32xf32> to vector<10x32xf32>
    %c0_2 = arith.constant 0 : index
    %c0_3 = arith.constant 0 : index
    %2 = vector.load %arg1[%c0_2, %c0_3] : memref<1x32xf32, #tpu.memory_space<vmem>>, vector<1x32xf32>
    %c0_4 = arith.constant 0 : index
    %c0_5 = arith.constant 0 : index
    %3 = vector.load %arg2[%c0_4, %c0_5] : memref<1x32xf32, #tpu.memory_space<vmem>>, vector<1x32xf32>
    %cst = arith.constant dense<0.000000e+00> : vector<10xf32>
    %4 = vector.multi_reduction <add>, %1, %cst [1] : vector<10x32xf32> to vector<10xf32>
    %5 = vector.shape_cast %4 : vector<10xf32> to vector<10x1xf32>
    %cst_6 = arith.constant 3.200000e+01 : f32
    %6 = vector.broadcast %cst_6 : f32 to vector<10x1xf32>
    %7 = arith.divf %5, %6 : vector<10x1xf32>
    %8 = vector.broadcast %7 : vector<10x1xf32> to vector<10x32xf32>
    %9 = arith.subf %1, %8 : vector<10x32xf32>
    %10 = arith.mulf %9, %9 : vector<10x32xf32>
    %cst_7 = arith.constant dense<0.000000e+00> : vector<10xf32>
    %11 = vector.multi_reduction <add>, %10, %cst_7 [1] : vector<10x32xf32> to vector<10xf32>
    %12 = vector.shape_cast %11 : vector<10xf32> to vector<10x1xf32>
    %cst_8 = arith.constant 3.200000e+01 : f32
    %13 = vector.broadcast %cst_8 : f32 to vector<10x1xf32>
    %14 = arith.divf %12, %13 : vector<10x1xf32>
    %15 = vector.broadcast %7 : vector<10x1xf32> to vector<10x32xf32>
    %16 = arith.subf %1, %15 : vector<10x32xf32>
    %cst_9 = arith.constant 9.99999996E-13 : f32
    %17 = vector.broadcast %cst_9 : f32 to vector<10x1xf32>
    %18 = arith.addf %14, %17 : vector<10x1xf32>
    %19 = math.rsqrt %18 : vector<10x1xf32>
    %20 = vector.broadcast %19 : vector<10x1xf32> to vector<10x32xf32>
    %21 = arith.mulf %16, %20 : vector<10x32xf32>
    %22 = vector.broadcast %2 : vector<1x32xf32> to vector<10x32xf32>
    %23 = arith.mulf %21, %22 : vector<10x32xf32>
    %24 = vector.broadcast %3 : vector<1x32xf32> to vector<10x32xf32>
    %25 = arith.addf %23, %24 : vector<10x32xf32>
    %c0_10 = arith.constant 0 : index
    %c0_11 = arith.constant 0 : index
    %26 = vector.load %arg3[%c0_10, %c0_11] : memref<32x96xf32, #tpu.memory_space<vmem>>, vector<32x96xf32>
    %cst_12 = arith.constant dense<0.000000e+00> : vector<10x96xf32>
    %27 = tpu.matmul %25, %26, %cst_12 {dimension_numbers = #tpu.dot_dimension_numbers<[1], [0], [0], [1], [0, 0, 1, 1], [], []>} : vector<10x32xf32>, vector<32x96xf32>, vector<10x96xf32> -> vector<10x96xf32>
    %c0_13 = arith.constant 0 : index
    %c0_14 = arith.constant 0 : index
    %28 = vector.load %arg4[%c0_13, %c0_14] : memref<1x96xf32, #tpu.memory_space<vmem>>, vector<1x96xf32>
    %29 = vector.broadcast %28 : vector<1x96xf32> to vector<10x96xf32>
    %30 = arith.addf %27, %29 : vector<10x96xf32>
    %31 = vector.extract_strided_slice %30 {offsets = [0, 0], sizes = [10, 32], strides = [1, 1]} : vector<10x96xf32> to vector<10x32xf32>
    %32 = vector.shape_cast %31 : vector<10x32xf32> to vector<2x5x32xf32>
    %33 = vector.extract_strided_slice %30 {offsets = [0, 32], sizes = [10, 32], strides = [1, 1]} : vector<10x96xf32> to vector<10x32xf32>
    %34 = vector.shape_cast %33 : vector<10x32xf32> to vector<2x5x32xf32>
    %35 = vector.extract_strided_slice %30 {offsets = [0, 64], sizes = [10, 32], strides = [1, 1]} : vector<10x96xf32> to vector<10x32xf32>
    %36 = vector.shape_cast %35 : vector<10x32xf32> to vector<2x5x32xf32>
    %c0_15 = arith.constant 0 : index
    %c0_16 = arith.constant 0 : index
    %37 = vector.load %arg5[%c0_15, %c0_16] : memref<32x32xf32, #tpu.memory_space<vmem>>, vector<32x32xf32>
    %38 = vector.extract_strided_slice %32 {offsets = [0, 0, 0], sizes = [2, 5, 8], strides = [1, 1, 1]} : vector<2x5x32xf32> to vector<2x5x8xf32>
    %39 = vector.extract_strided_slice %34 {offsets = [0, 0, 0], sizes = [2, 5, 8], strides = [1, 1, 1]} : vector<2x5x32xf32> to vector<2x5x8xf32>
    %40 = vector.extract_strided_slice %36 {offsets = [0, 0, 0], sizes = [2, 5, 8], strides = [1, 1, 1]} : vector<2x5x32xf32> to vector<2x5x8xf32>
    "tpu.trace_start"() <{level = 10 : i32, message = "bqd,bkd->bqk"}> : () -> ()
    %cst_17 = arith.constant dense<0.000000e+00> : vector<2x5x5xf32>
    %41 = tpu.matmul %38, %39, %cst_17 {dimension_numbers = #tpu.dot_dimension_numbers<[2], [2], [1], [1], [0, 0, 0, 1, 1, 1], [0], [0]>} : vector<2x5x8xf32>, vector<2x5x8xf32>, vector<2x5x5xf32> -> vector<2x5x5xf32>
    "tpu.trace_stop"() : () -> ()
    %cst_18 = arith.constant 0.353553385 : f32
    %42 = vector.broadcast %cst_18 : f32 to vector<2x5x5xf32>
    %43 = arith.mulf %41, %42 : vector<2x5x5xf32>
    %cst_19 = arith.constant dense<0xFF800000> : vector<2x5xf32>
    %44 = vector.multi_reduction <maximumf>, %43, %cst_19 [2] : vector<2x5x5xf32> to vector<2x5xf32>
    %45 = vector.shape_cast %44 : vector<2x5xf32> to vector<2x5x1xf32>
    %46 = vector.broadcast %45 : vector<2x5x1xf32> to vector<2x5x5xf32>
    %47 = arith.subf %43, %46 : vector<2x5x5xf32>
    %48 = math.exp %47 : vector<2x5x5xf32>
    %cst_20 = arith.constant dense<0.000000e+00> : vector<2x5xf32>
    %49 = vector.multi_reduction <add>, %48, %cst_20 [2] : vector<2x5x5xf32> to vector<2x5xf32>
    %50 = vector.shape_cast %49 : vector<2x5xf32> to vector<2x5x1xf32>
    %51 = tpu.reciprocal %50 {approx = true} : vector<2x5x1xf32> -> vector<2x5x1xf32>
    %52 = vector.broadcast %51 : vector<2x5x1xf32> to vector<2x5x5xf32>
    %53 = arith.mulf %48, %52 : vector<2x5x5xf32>
    "tpu.trace_start"() <{level = 10 : i32, message = "bqk,bkd->bqd"}> : () -> ()
    %cst_21 = arith.constant dense<0.000000e+00> : vector<2x5x8xf32>
    %54 = tpu.matmul %53, %40, %cst_21 {dimension_numbers = #tpu.dot_dimension_numbers<[2], [1], [1], [2], [0, 0, 0, 1, 1, 2], [0], [0]>} : vector<2x5x5xf32>, vector<2x5x8xf32>, vector<2x5x8xf32> -> vector<2x5x8xf32>
    "tpu.trace_stop"() : () -> ()
    %55 = vector.shape_cast %54 : vector<2x5x8xf32> to vector<10x8xf32>
    %56 = vector.extract_strided_slice %37 {offsets = [0, 0], sizes = [8, 32], strides = [1, 1]} : vector<32x32xf32> to vector<8x32xf32>
    %cst_22 = arith.constant dense<0.000000e+00> : vector<10x32xf32>
    %57 = tpu.matmul %55, %56, %cst_22 {dimension_numbers = #tpu.dot_dimension_numbers<[1], [0], [0], [1], [0, 0, 1, 1], [], []>} : vector<10x8xf32>, vector<8x32xf32>, vector<10x32xf32> -> vector<10x32xf32>
    %58 = vector.extract_strided_slice %32 {offsets = [0, 0, 8], sizes = [2, 5, 8], strides = [1, 1, 1]} : vector<2x5x32xf32> to vector<2x5x8xf32>
    %59 = vector.extract_strided_slice %34 {offsets = [0, 0, 8], sizes = [2, 5, 8], strides = [1, 1, 1]} : vector<2x5x32xf32> to vector<2x5x8xf32>
    %60 = vector.extract_strided_slice %36 {offsets = [0, 0, 8], sizes = [2, 5, 8], strides = [1, 1, 1]} : vector<2x5x32xf32> to vector<2x5x8xf32>
    "tpu.trace_start"() <{level = 10 : i32, message = "bqd,bkd->bqk"}> : () -> ()
    %cst_23 = arith.constant dense<0.000000e+00> : vector<2x5x5xf32>
    %61 = tpu.matmul %58, %59, %cst_23 {dimension_numbers = #tpu.dot_dimension_numbers<[2], [2], [1], [1], [0, 0, 0, 1, 1, 1], [0], [0]>} : vector<2x5x8xf32>, vector<2x5x8xf32>, vector<2x5x5xf32> -> vector<2x5x5xf32>
    "tpu.trace_stop"() : () -> ()
    %cst_24 = arith.constant 0.353553385 : f32
    %62 = vector.broadcast %cst_24 : f32 to vector<2x5x5xf32>
    %63 = arith.mulf %61, %62 : vector<2x5x5xf32>
    %cst_25 = arith.constant dense<0xFF800000> : vector<2x5xf32>
    %64 = vector.multi_reduction <maximumf>, %63, %cst_25 [2] : vector<2x5x5xf32> to vector<2x5xf32>
    %65 = vector.shape_cast %64 : vector<2x5xf32> to vector<2x5x1xf32>
    %66 = vector.broadcast %65 : vector<2x5x1xf32> to vector<2x5x5xf32>
    %67 = arith.subf %63, %66 : vector<2x5x5xf32>
    %68 = math.exp %67 : vector<2x5x5xf32>
    %cst_26 = arith.constant dense<0.000000e+00> : vector<2x5xf32>
    %69 = vector.multi_reduction <add>, %68, %cst_26 [2] : vector<2x5x5xf32> to vector<2x5xf32>
    %70 = vector.shape_cast %69 : vector<2x5xf32> to vector<2x5x1xf32>
    %71 = tpu.reciprocal %70 {approx = true} : vector<2x5x1xf32> -> vector<2x5x1xf32>
    %72 = vector.broadcast %71 : vector<2x5x1xf32> to vector<2x5x5xf32>
    %73 = arith.mulf %68, %72 : vector<2x5x5xf32>
    "tpu.trace_start"() <{level = 10 : i32, message = "bqk,bkd->bqd"}> : () -> ()
    %cst_27 = arith.constant dense<0.000000e+00> : vector<2x5x8xf32>
    %74 = tpu.matmul %73, %60, %cst_27 {dimension_numbers = #tpu.dot_dimension_numbers<[2], [1], [1], [2], [0, 0, 0, 1, 1, 2], [0], [0]>} : vector<2x5x5xf32>, vector<2x5x8xf32>, vector<2x5x8xf32> -> vector<2x5x8xf32>
    "tpu.trace_stop"() : () -> ()
    %75 = vector.shape_cast %74 : vector<2x5x8xf32> to vector<10x8xf32>
    %76 = vector.extract_strided_slice %37 {offsets = [8, 0], sizes = [8, 32], strides = [1, 1]} : vector<32x32xf32> to vector<8x32xf32>
    %cst_28 = arith.constant dense<0.000000e+00> : vector<10x32xf32>
    %77 = tpu.matmul %75, %76, %cst_28 {dimension_numbers = #tpu.dot_dimension_numbers<[1], [0], [0], [1], [0, 0, 1, 1], [], []>} : vector<10x8xf32>, vector<8x32xf32>, vector<10x32xf32> -> vector<10x32xf32>
    %78 = arith.addf %57, %77 : vector<10x32xf32>
    %79 = vector.extract_strided_slice %32 {offsets = [0, 0, 16], sizes = [2, 5, 8], strides = [1, 1, 1]} : vector<2x5x32xf32> to vector<2x5x8xf32>
    %80 = vector.extract_strided_slice %34 {offsets = [0, 0, 16], sizes = [2, 5, 8], strides = [1, 1, 1]} : vector<2x5x32xf32> to vector<2x5x8xf32>
    %81 = vector.extract_strided_slice %36 {offsets = [0, 0, 16], sizes = [2, 5, 8], strides = [1, 1, 1]} : vector<2x5x32xf32> to vector<2x5x8xf32>
    "tpu.trace_start"() <{level = 10 : i32, message = "bqd,bkd->bqk"}> : () -> ()
    %cst_29 = arith.constant dense<0.000000e+00> : vector<2x5x5xf32>
    %82 = tpu.matmul %79, %80, %cst_29 {dimension_numbers = #tpu.dot_dimension_numbers<[2], [2], [1], [1], [0, 0, 0, 1, 1, 1], [0], [0]>} : vector<2x5x8xf32>, vector<2x5x8xf32>, vector<2x5x5xf32> -> vector<2x5x5xf32>
    "tpu.trace_stop"() : () -> ()
    %cst_30 = arith.constant 0.353553385 : f32
    %83 = vector.broadcast %cst_30 : f32 to vector<2x5x5xf32>
    %84 = arith.mulf %82, %83 : vector<2x5x5xf32>
    %cst_31 = arith.constant dense<0xFF800000> : vector<2x5xf32>
    %85 = vector.multi_reduction <maximumf>, %84, %cst_31 [2] : vector<2x5x5xf32> to vector<2x5xf32>
    %86 = vector.shape_cast %85 : vector<2x5xf32> to vector<2x5x1xf32>
    %87 = vector.broadcast %86 : vector<2x5x1xf32> to vector<2x5x5xf32>
    %88 = arith.subf %84, %87 : vector<2x5x5xf32>
    %89 = math.exp %88 : vector<2x5x5xf32>
    %cst_32 = arith.constant dense<0.000000e+00> : vector<2x5xf32>
    %90 = vector.multi_reduction <add>, %89, %cst_32 [2] : vector<2x5x5xf32> to vector<2x5xf32>
    %91 = vector.shape_cast %90 : vector<2x5xf32> to vector<2x5x1xf32>
    %92 = tpu.reciprocal %91 {approx = true} : vector<2x5x1xf32> -> vector<2x5x1xf32>
    %93 = vector.broadcast %92 : vector<2x5x1xf32> to vector<2x5x5xf32>
    %94 = arith.mulf %89, %93 : vector<2x5x5xf32>
    "tpu.trace_start"() <{level = 10 : i32, message = "bqk,bkd->bqd"}> : () -> ()
    %cst_33 = arith.constant dense<0.000000e+00> : vector<2x5x8xf32>
    %95 = tpu.matmul %94, %81, %cst_33 {dimension_numbers = #tpu.dot_dimension_numbers<[2], [1], [1], [2], [0, 0, 0, 1, 1, 2], [0], [0]>} : vector<2x5x5xf32>, vector<2x5x8xf32>, vector<2x5x8xf32> -> vector<2x5x8xf32>
    "tpu.trace_stop"() : () -> ()
    %96 = vector.shape_cast %95 : vector<2x5x8xf32> to vector<10x8xf32>
    %97 = vector.extract_strided_slice %37 {offsets = [16, 0], sizes = [8, 32], strides = [1, 1]} : vector<32x32xf32> to vector<8x32xf32>
    %cst_34 = arith.constant dense<0.000000e+00> : vector<10x32xf32>
    %98 = tpu.matmul %96, %97, %cst_34 {dimension_numbers = #tpu.dot_dimension_numbers<[1], [0], [0], [1], [0, 0, 1, 1], [], []>} : vector<10x8xf32>, vector<8x32xf32>, vector<10x32xf32> -> vector<10x32xf32>
    %99 = arith.addf %78, %98 : vector<10x32xf32>
    %100 = vector.extract_strided_slice %32 {offsets = [0, 0, 24], sizes = [2, 5, 8], strides = [1, 1, 1]} : vector<2x5x32xf32> to vector<2x5x8xf32>
    %101 = vector.extract_strided_slice %34 {offsets = [0, 0, 24], sizes = [2, 5, 8], strides = [1, 1, 1]} : vector<2x5x32xf32> to vector<2x5x8xf32>
    %102 = vector.extract_strided_slice %36 {offsets = [0, 0, 24], sizes = [2, 5, 8], strides = [1, 1, 1]} : vector<2x5x32xf32> to vector<2x5x8xf32>
    "tpu.trace_start"() <{level = 10 : i32, message = "bqd,bkd->bqk"}> : () -> ()
    %cst_35 = arith.constant dense<0.000000e+00> : vector<2x5x5xf32>
    %103 = tpu.matmul %100, %101, %cst_35 {dimension_numbers = #tpu.dot_dimension_numbers<[2], [2], [1], [1], [0, 0, 0, 1, 1, 1], [0], [0]>} : vector<2x5x8xf32>, vector<2x5x8xf32>, vector<2x5x5xf32> -> vector<2x5x5xf32>
    "tpu.trace_stop"() : () -> ()
    %cst_36 = arith.constant 0.353553385 : f32
    %104 = vector.broadcast %cst_36 : f32 to vector<2x5x5xf32>
    %105 = arith.mulf %103, %104 : vector<2x5x5xf32>
    %cst_37 = arith.constant dense<0xFF800000> : vector<2x5xf32>
    %106 = vector.multi_reduction <maximumf>, %105, %cst_37 [2] : vector<2x5x5xf32> to vector<2x5xf32>
    %107 = vector.shape_cast %106 : vector<2x5xf32> to vector<2x5x1xf32>
    %108 = vector.broadcast %107 : vector<2x5x1xf32> to vector<2x5x5xf32>
    %109 = arith.subf %105, %108 : vector<2x5x5xf32>
    %110 = math.exp %109 : vector<2x5x5xf32>
    %cst_38 = arith.constant dense<0.000000e+00> : vector<2x5xf32>
    %111 = vector.multi_reduction <add>, %110, %cst_38 [2] : vector<2x5x5xf32> to vector<2x5xf32>
    %112 = vector.shape_cast %111 : vector<2x5xf32> to vector<2x5x1xf32>
    %113 = tpu.reciprocal %112 {approx = true} : vector<2x5x1xf32> -> vector<2x5x1xf32>
    %114 = vector.broadcast %113 : vector<2x5x1xf32> to vector<2x5x5xf32>
    %115 = arith.mulf %110, %114 : vector<2x5x5xf32>
    "tpu.trace_start"() <{level = 10 : i32, message = "bqk,bkd->bqd"}> : () -> ()
    %cst_39 = arith.constant dense<0.000000e+00> : vector<2x5x8xf32>
    %116 = tpu.matmul %115, %102, %cst_39 {dimension_numbers = #tpu.dot_dimension_numbers<[2], [1], [1], [2], [0, 0, 0, 1, 1, 2], [0], [0]>} : vector<2x5x5xf32>, vector<2x5x8xf32>, vector<2x5x8xf32> -> vector<2x5x8xf32>
    "tpu.trace_stop"() : () -> ()
    %117 = vector.shape_cast %116 : vector<2x5x8xf32> to vector<10x8xf32>
    %118 = vector.extract_strided_slice %37 {offsets = [24, 0], sizes = [8, 32], strides = [1, 1]} : vector<32x32xf32> to vector<8x32xf32>
    %cst_40 = arith.constant dense<0.000000e+00> : vector<10x32xf32>
    %119 = tpu.matmul %117, %118, %cst_40 {dimension_numbers = #tpu.dot_dimension_numbers<[1], [0], [0], [1], [0, 0, 1, 1], [], []>} : vector<10x8xf32>, vector<8x32xf32>, vector<10x32xf32> -> vector<10x32xf32>
    %120 = arith.addf %99, %119 : vector<10x32xf32>
    %121 = arith.addf %1, %120 : vector<10x32xf32>
    %c0_41 = arith.constant 0 : index
    %c0_42 = arith.constant 0 : index
    %122 = vector.load %arg6[%c0_41, %c0_42] : memref<1x32xf32, #tpu.memory_space<vmem>>, vector<1x32xf32>
    %123 = vector.broadcast %122 : vector<1x32xf32> to vector<10x32xf32>
    %124 = arith.addf %121, %123 : vector<10x32xf32>
    %c0_43 = arith.constant 0 : index
    %c0_44 = arith.constant 0 : index
    %125 = vector.load %arg7[%c0_43, %c0_44] : memref<1x32xf32, #tpu.memory_space<vmem>>, vector<1x32xf32>
    %c0_45 = arith.constant 0 : index
    %c0_46 = arith.constant 0 : index
    %126 = vector.load %arg8[%c0_45, %c0_46] : memref<1x32xf32, #tpu.memory_space<vmem>>, vector<1x32xf32>
    %cst_47 = arith.constant dense<0.000000e+00> : vector<10xf32>
    %127 = vector.multi_reduction <add>, %124, %cst_47 [1] : vector<10x32xf32> to vector<10xf32>
    %128 = vector.shape_cast %127 : vector<10xf32> to vector<10x1xf32>
    %cst_48 = arith.constant 3.200000e+01 : f32
    %129 = vector.broadcast %cst_48 : f32 to vector<10x1xf32>
    %130 = arith.divf %128, %129 : vector<10x1xf32>
    %131 = vector.broadcast %130 : vector<10x1xf32> to vector<10x32xf32>
    %132 = arith.subf %124, %131 : vector<10x32xf32>
    %133 = arith.mulf %132, %132 : vector<10x32xf32>
    %cst_49 = arith.constant dense<0.000000e+00> : vector<10xf32>
    %134 = vector.multi_reduction <add>, %133, %cst_49 [1] : vector<10x32xf32> to vector<10xf32>
    %135 = vector.shape_cast %134 : vector<10xf32> to vector<10x1xf32>
    %cst_50 = arith.constant 3.200000e+01 : f32
    %136 = vector.broadcast %cst_50 : f32 to vector<10x1xf32>
    %137 = arith.divf %135, %136 : vector<10x1xf32>
    %138 = vector.broadcast %130 : vector<10x1xf32> to vector<10x32xf32>
    %139 = arith.subf %124, %138 : vector<10x32xf32>
    %cst_51 = arith.constant 9.99999996E-13 : f32
    %140 = vector.broadcast %cst_51 : f32 to vector<10x1xf32>
    %141 = arith.addf %137, %140 : vector<10x1xf32>
    %142 = math.rsqrt %141 : vector<10x1xf32>
    %143 = vector.broadcast %142 : vector<10x1xf32> to vector<10x32xf32>
    %144 = arith.mulf %139, %143 : vector<10x32xf32>
    %145 = vector.broadcast %125 : vector<1x32xf32> to vector<10x32xf32>
    %146 = arith.mulf %144, %145 : vector<10x32xf32>
    %147 = vector.broadcast %126 : vector<1x32xf32> to vector<10x32xf32>
    %148 = arith.addf %146, %147 : vector<10x32xf32>
    %c0_52 = arith.constant 0 : index
    %c0_53 = arith.constant 0 : index
    %149 = vector.load %arg9[%c0_52, %c0_53] : memref<32x64xf32, #tpu.memory_space<vmem>>, vector<32x64xf32>
    %cst_54 = arith.constant dense<0.000000e+00> : vector<10x64xf32>
    %150 = tpu.matmul %148, %149, %cst_54 {dimension_numbers = #tpu.dot_dimension_numbers<[1], [0], [0], [1], [0, 0, 1, 1], [], []>} : vector<10x32xf32>, vector<32x64xf32>, vector<10x64xf32> -> vector<10x64xf32>
    %c0_55 = arith.constant 0 : index
    %c0_56 = arith.constant 0 : index
    %151 = vector.load %arg10[%c0_55, %c0_56] : memref<1x64xf32, #tpu.memory_space<vmem>>, vector<1x64xf32>
    %152 = vector.broadcast %151 : vector<1x64xf32> to vector<10x64xf32>
    %153 = arith.addf %150, %152 : vector<10x64xf32>
    %154 = arith.mulf %153, %153 : vector<10x64xf32>
    %155 = arith.mulf %153, %154 : vector<10x64xf32>
    %cst_57 = arith.constant 4.471500e-02 : f32
    %156 = vector.broadcast %cst_57 : f32 to vector<10x64xf32>
    %157 = arith.mulf %156, %155 : vector<10x64xf32>
    %158 = arith.addf %153, %157 : vector<10x64xf32>
    %cst_58 = arith.constant 0.797884583 : f32
    %159 = vector.broadcast %cst_58 : f32 to vector<10x64xf32>
    %160 = arith.mulf %159, %158 : vector<10x64xf32>
    %161 = math.tanh %160 : vector<10x64xf32>
    %cst_59 = arith.constant 1.000000e+00 : f32
    %162 = vector.broadcast %cst_59 : f32 to vector<10x64xf32>
    %163 = arith.addf %162, %161 : vector<10x64xf32>
    %cst_60 = arith.constant 5.000000e-01 : f32
    %164 = vector.broadcast %cst_60 : f32 to vector<10x64xf32>
    %165 = arith.mulf %164, %163 : vector<10x64xf32>
    %166 = arith.mulf %153, %165 : vector<10x64xf32>
    %c0_61 = arith.constant 0 : index
    %c0_62 = arith.constant 0 : index
    %167 = vector.load %arg11[%c0_61, %c0_62] : memref<64x32xf32, #tpu.memory_space<vmem>>, vector<64x32xf32>
    %cst_63 = arith.constant dense<0.000000e+00> : vector<10x32xf32>
    %168 = tpu.matmul %166, %167, %cst_63 {dimension_numbers = #tpu.dot_dimension_numbers<[1], [0], [0], [1], [0, 0, 1, 1], [], []>} : vector<10x64xf32>, vector<64x32xf32>, vector<10x32xf32> -> vector<10x32xf32>
    %c0_64 = arith.constant 0 : index
    %c0_65 = arith.constant 0 : index
    %169 = vector.load %arg12[%c0_64, %c0_65] : memref<1x32xf32, #tpu.memory_space<vmem>>, vector<1x32xf32>
    %170 = vector.broadcast %169 : vector<1x32xf32> to vector<10x32xf32>
    %171 = arith.addf %168, %170 : vector<10x32xf32>
    %172 = arith.addf %124, %171 : vector<10x32xf32>
    %173 = vector.shape_cast %172 : vector<10x32xf32> to vector<2x5x32xf32>
    %c0_66 = arith.constant 0 : index
    %c0_67 = arith.constant 0 : index
    %c0_68 = arith.constant 0 : index
    %174 = vector.load %arg13[%c0_66, %c0_67, %c0_68] : memref<2x5x32xf32, #tpu.memory_space<vmem>>, vector<2x5x32xf32>
    tpu.vector_store %arg13[%c0_66, %c0_67, %c0_68], %173 {strides = array<i32>} : memref<2x5x32xf32, #tpu.memory_space<vmem>>, vector<2x5x32xf32>,
    return
  }
}

module attributes {stable_mosaic.version = 11 : i64} {
  func.func @vit_final_proj_kernel(%arg0: memref<2x5x32xf32, #tpu.memory_space<vmem>>, %arg1: memref<1x32xf32, #tpu.memory_space<vmem>>, %arg2: memref<1x32xf32, #tpu.memory_space<vmem>>, %arg3: memref<32x64xf32, #tpu.memory_space<vmem>>, %arg4: memref<1x64xf32, #tpu.memory_space<vmem>>, %arg5: memref<2x5x64xbf16, #tpu.memory_space<vmem>>) attributes {dimension_semantics = [], scalar_prefetch = 0 : i64, scratch_operands = 0 : i64, tpu.core_type = #tpu.core_type<tc>} {
    %c0 = arith.constant 0 : index
    %c0_0 = arith.constant 0 : index
    %c0_1 = arith.constant 0 : index
    %0 = vector.load %arg0[%c0, %c0_0, %c0_1] : memref<2x5x32xf32, #tpu.memory_space<vmem>>, vector<2x5x32xf32>
    %1 = vector.shape_cast %0 : vector<2x5x32xf32> to vector<10x32xf32>
    %c0_2 = arith.constant 0 : index
    %c0_3 = arith.constant 0 : index
    %2 = vector.load %arg1[%c0_2, %c0_3] : memref<1x32xf32, #tpu.memory_space<vmem>>, vector<1x32xf32>
    %c0_4 = arith.constant 0 : index
    %c0_5 = arith.constant 0 : index
    %3 = vector.load %arg2[%c0_4, %c0_5] : memref<1x32xf32, #tpu.memory_space<vmem>>, vector<1x32xf32>
    %cst = arith.constant dense<0.000000e+00> : vector<10xf32>
    %4 = vector.multi_reduction <add>, %1, %cst [1] : vector<10x32xf32> to vector<10xf32>
    %5 = vector.shape_cast %4 : vector<10xf32> to vector<10x1xf32>
    %cst_6 = arith.constant 3.200000e+01 : f32
    %6 = vector.broadcast %cst_6 : f32 to vector<10x1xf32>
    %7 = arith.divf %5, %6 : vector<10x1xf32>
    %8 = vector.broadcast %7 : vector<10x1xf32> to vector<10x32xf32>
    %9 = arith.subf %1, %8 : vector<10x32xf32>
    %10 = arith.mulf %9, %9 : vector<10x32xf32>
    %cst_7 = arith.constant dense<0.000000e+00> : vector<10xf32>
    %11 = vector.multi_reduction <add>, %10, %cst_7 [1] : vector<10x32xf32> to vector<10xf32>
    %12 = vector.shape_cast %11 : vector<10xf32> to vector<10x1xf32>
    %cst_8 = arith.constant 3.200000e+01 : f32
    %13 = vector.broadcast %cst_8 : f32 to vector<10x1xf32>
    %14 = arith.divf %12, %13 : vector<10x1xf32>
    %15 = vector.broadcast %7 : vector<10x1xf32> to vector<10x32xf32>
    %16 = arith.subf %1, %15 : vector<10x32xf32>
    %cst_9 = arith.constant 9.99999996E-13 : f32
    %17 = vector.broadcast %cst_9 : f32 to vector<10x1xf32>
    %18 = arith.addf %14, %17 : vector<10x1xf32>
    %19 = math.rsqrt %18 : vector<10x1xf32>
    %20 = vector.broadcast %19 : vector<10x1xf32> to vector<10x32xf32>
    %21 = arith.mulf %16, %20 : vector<10x32xf32>
    %22 = vector.broadcast %2 : vector<1x32xf32> to vector<10x32xf32>
    %23 = arith.mulf %21, %22 : vector<10x32xf32>
    %24 = vector.broadcast %3 : vector<1x32xf32> to vector<10x32xf32>
    %25 = arith.addf %23, %24 : vector<10x32xf32>
    %c0_10 = arith.constant 0 : index
    %c0_11 = arith.constant 0 : index
    %26 = vector.load %arg3[%c0_10, %c0_11] : memref<32x64xf32, #tpu.memory_space<vmem>>, vector<32x64xf32>
    %cst_12 = arith.constant dense<0.000000e+00> : vector<10x64xf32>
    %27 = tpu.matmul %25, %26, %cst_12 {dimension_numbers = #tpu.dot_dimension_numbers<[1], [0], [0], [1], [0, 0, 1, 1], [], []>} : vector<10x32xf32>, vector<32x64xf32>, vector<10x64xf32> -> vector<10x64xf32>
    %c0_13 = arith.constant 0 : index
    %c0_14 = arith.constant 0 : index
    %28 = vector.load %arg4[%c0_13, %c0_14] : memref<1x64xf32, #tpu.memory_space<vmem>>, vector<1x64xf32>
    %29 = vector.broadcast %28 : vector<1x64xf32> to vector<10x64xf32>
    %30 = arith.addf %27, %29 : vector<10x64xf32>
    %31 = vector.shape_cast %30 : vector<10x64xf32> to vector<2x5x64xf32>
    %32 = arith.truncf %31 : vector<2x5x64xf32> to vector<2x5x64xbf16>
    %c0_15 = arith.constant 0 : index
    %c0_16 = arith.constant 0 : index
    %c0_17 = arith.constant 0 : index
    %33 = vector.load %arg5[%c0_15, %c0_16, %c0_17] : memref<2x5x64xbf16, #tpu.memory_space<vmem>>, vector<2x5x64xbf16>
    tpu.vector_store %arg5[%c0_15, %c0_16, %c0_17], %32 {strides = array<i32>} : memref<2x5x64xbf16, #tpu.memory_space<vmem>>, vector<2x5x64xbf16>,
    return
  }
}

module attributes {stable_mosaic.version = 11 : i64} {
  func.func @llama_layer_kernel(%arg0: memref<2x5x64xbf16, #tpu.memory_space<vmem>>, %arg1: memref<1x64xbf16, #tpu.memory_space<vmem>>, %arg2: memref<64x192xbf16, #tpu.memory_space<vmem>>, %arg3: memref<64x32xbf16, #tpu.memory_space<vmem>>, %arg4: memref<32x128xbf16, #tpu.memory_space<vmem>>, %arg5: memref<64x64xbf16, #tpu.memory_space<vmem>>, %arg6: memref<1x64xbf16, #tpu.memory_space<vmem>>, %arg7: memref<64x256xbf16, #tpu.memory_space<vmem>>, %arg8: memref<128x64xbf16, #tpu.memory_space<vmem>>, %arg9: memref<64x64xf32, #tpu.memory_space<vmem>>, %arg10: memref<5x64xf32, #tpu.memory_space<vmem>>, %arg11: memref<5x64xf32, #tpu.memory_space<vmem>>, %arg12: memref<5x5xf32, #tpu.memory_space<vmem>>, %arg13: memref<2x5x64xbf16, #tpu.memory_space<vmem>>) attributes {dimension_semantics = [], scalar_prefetch = 0 : i64, scratch_operands = 0 : i64, tpu.core_type = #tpu.core_type<tc>} {
    %c0 = arith.constant 0 : index
    %c0_0 = arith.constant 0 : index
    %c0_1 = arith.constant 0 : index
    %0 = vector.load %arg0[%c0, %c0_0, %c0_1] : memref<2x5x64xbf16, #tpu.memory_space<vmem>>, vector<2x5x64xbf16>
    %1 = arith.extf %0 : vector<2x5x64xbf16> to vector<2x5x64xf32>
    %2 = vector.shape_cast %1 : vector<2x5x64xf32> to vector<10x64xf32>
    %c0_2 = arith.constant 0 : index
    %c0_3 = arith.constant 0 : index
    %3 = vector.load %arg1[%c0_2, %c0_3] : memref<1x64xbf16, #tpu.memory_space<vmem>>, vector<1x64xbf16>
    %4 = arith.extf %3 : vector<1x64xbf16> to vector<1x64xf32>
    %5 = arith.mulf %2, %2 : vector<10x64xf32>
    %cst = arith.constant dense<0.000000e+00> : vector<10xf32>
    %6 = vector.multi_reduction <add>, %5, %cst [1] : vector<10x64xf32> to vector<10xf32>
    %7 = vector.shape_cast %6 : vector<10xf32> to vector<10x1xf32>
    %cst_4 = arith.constant 6.400000e+01 : f32
    %8 = vector.broadcast %cst_4 : f32 to vector<10x1xf32>
    %9 = arith.divf %7, %8 : vector<10x1xf32>
    %cst_5 = arith.constant 9.99999997E-7 : f32
    %10 = vector.broadcast %cst_5 : f32 to vector<10x1xf32>
    %11 = arith.addf %9, %10 : vector<10x1xf32>
    %12 = math.rsqrt %11 : vector<10x1xf32>
    %13 = vector.broadcast %12 : vector<10x1xf32> to vector<10x64xf32>
    %14 = arith.mulf %2, %13 : vector<10x64xf32>
    %15 = vector.broadcast %4 : vector<1x64xf32> to vector<10x64xf32>
    %16 = arith.mulf %14, %15 : vector<10x64xf32>
    %c0_6 = arith.constant 0 : index
    %c0_7 = arith.constant 0 : index
    %17 = vector.load %arg2[%c0_6, %c0_7] : memref<64x192xbf16, #tpu.memory_space<vmem>>, vector<64x192xbf16>
    %18 = arith.extf %17 : vector<64x192xbf16> to vector<64x192xf32>
    %cst_8 = arith.constant dense<0.000000e+00> : vector<10x192xf32>
    %19 = tpu.matmul %16, %18, %cst_8 {dimension_numbers = #tpu.dot_dimension_numbers<[1], [0], [0], [1], [0, 0, 1, 1], [], []>} : vector<10x64xf32>, vector<64x192xf32>, vector<10x192xf32> -> vector<10x192xf32>
    %c0_9 = arith.constant 0 : index
    %c0_10 = arith.constant 0 : index
    %20 = vector.load %arg3[%c0_9, %c0_10] : memref<64x32xbf16, #tpu.memory_space<vmem>>, vector<64x32xbf16>
    %21 = arith.extf %20 : vector<64x32xbf16> to vector<64x32xf32>
    %cst_11 = arith.constant dense<0.000000e+00> : vector<10x32xf32>
    %22 = tpu.matmul %16, %21, %cst_11 {dimension_numbers = #tpu.dot_dimension_numbers<[1], [0], [0], [1], [0, 0, 1, 1], [], []>} : vector<10x64xf32>, vector<64x32xf32>, vector<10x32xf32> -> vector<10x32xf32>
    %c0_12 = arith.constant 0 : index
    %c0_13 = arith.constant 0 : index
    %23 = vector.load %arg4[%c0_12, %c0_13] : memref<32x128xbf16, #tpu.memory_space<vmem>>, vector<32x128xbf16>
    %24 = arith.extf %23 : vector<32x128xbf16> to vector<32x128xf32>
    %cst_14 = arith.constant dense<0.000000e+00> : vector<10x128xf32>
    %25 = tpu.matmul %22, %24, %cst_14 {dimension_numbers = #tpu.dot_dimension_numbers<[1], [0], [0], [1], [0, 0, 1, 1], [], []>} : vector<10x32xf32>, vector<32x128xf32>, vector<10x128xf32> -> vector<10x128xf32>
    %26 = vector.extract_strided_slice %19 {offsets = [0, 0], sizes = [10, 64], strides = [1, 1]} : vector<10x192xf32> to vector<10x64xf32>
    %27 = vector.extract_strided_slice %25 {offsets = [0, 0], sizes = [10, 64], strides = [1, 1]} : vector<10x128xf32> to vector<10x64xf32>
    %cst_15 = arith.constant 2.000000e+00 : f32
    %28 = vector.broadcast %cst_15 : f32 to vector<10x64xf32>
    %29 = arith.mulf %28, %27 : vector<10x64xf32>
    %30 = arith.addf %26, %29 : vector<10x64xf32>
    %31 = vector.extract_strided_slice %19 {offsets = [0, 64], sizes = [10, 64], strides = [1, 1]} : vector<10x192xf32> to vector<10x64xf32>
    %32 = vector.extract_strided_slice %19 {offsets = [0, 128], sizes = [10, 64], strides = [1, 1]} : vector<10x192xf32> to vector<10x64xf32>
    %33 = vector.extract_strided_slice %25 {offsets = [0, 64], sizes = [10, 64], strides = [1, 1]} : vector<10x128xf32> to vector<10x64xf32>
    %cst_16 = arith.constant 2.000000e+00 : f32
    %34 = vector.broadcast %cst_16 : f32 to vector<10x64xf32>
    %35 = arith.mulf %34, %33 : vector<10x64xf32>
    %36 = arith.addf %32, %35 : vector<10x64xf32>
    %c0_17 = arith.constant 0 : index
    %c0_18 = arith.constant 0 : index
    %37 = vector.load %arg9[%c0_17, %c0_18] : memref<64x64xf32, #tpu.memory_space<vmem>>, vector<64x64xf32>
    %c0_19 = arith.constant 0 : index
    %c0_20 = arith.constant 0 : index
    %38 = vector.load %arg10[%c0_19, %c0_20] : memref<5x64xf32, #tpu.memory_space<vmem>>, vector<5x64xf32>
    %39 = vector.shape_cast %38 : vector<5x64xf32> to vector<1x5x64xf32>
    %c0_21 = arith.constant 0 : index
    %c0_22 = arith.constant 0 : index
    %40 = vector.load %arg11[%c0_21, %c0_22] : memref<5x64xf32, #tpu.memory_space<vmem>>, vector<5x64xf32>
    %41 = vector.shape_cast %40 : vector<5x64xf32> to vector<1x5x64xf32>
    %cst_23 = arith.constant dense<0.000000e+00> : vector<10x64xf32>
    %42 = tpu.matmul %30, %37, %cst_23 {dimension_numbers = #tpu.dot_dimension_numbers<[1], [0], [0], [1], [0, 0, 1, 1], [], []>} : vector<10x64xf32>, vector<64x64xf32>, vector<10x64xf32> -> vector<10x64xf32>
    %cst_24 = arith.constant dense<0.000000e+00> : vector<10x64xf32>
    %43 = tpu.matmul %31, %37, %cst_24 {dimension_numbers = #tpu.dot_dimension_numbers<[1], [0], [0], [1], [0, 0, 1, 1], [], []>} : vector<10x64xf32>, vector<64x64xf32>, vector<10x64xf32> -> vector<10x64xf32>
    %44 = vector.shape_cast %30 : vector<10x64xf32> to vector<2x5x64xf32>
    %45 = vector.broadcast %39 : vector<1x5x64xf32> to vector<2x5x64xf32>
    %46 = arith.mulf %44, %45 : vector<2x5x64xf32>
    %47 = vector.shape_cast %42 : vector<10x64xf32> to vector<2x5x64xf32>
    %48 = vector.broadcast %41 : vector<1x5x64xf32> to vector<2x5x64xf32>
    %49 = arith.mulf %47, %48 : vector<2x5x64xf32>
    %50 = arith.addf %46, %49 : vector<2x5x64xf32>
    %51 = vector.shape_cast %31 : vector<10x64xf32> to vector<2x5x64xf32>
    %52 = vector.broadcast %39 : vector<1x5x64xf32> to vector<2x5x64xf32>
    %53 = arith.mulf %51, %52 : vector<2x5x64xf32>
    %54 = vector.shape_cast %43 : vector<10x64xf32> to vector<2x5x64xf32>
    %55 = vector.broadcast %41 : vector<1x5x64xf32> to vector<2x5x64xf32>
    %56 = arith.mulf %54, %55 : vector<2x5x64xf32>
    %57 = arith.addf %53, %56 : vector<2x5x64xf32>
    %58 = vector.shape_cast %36 : vector<10x64xf32> to vector<2x5x64xf32>
    %c0_25 = arith.constant 0 : index
    %c0_26 = arith.constant 0 : index
    %59 = vector.load %arg5[%c0_25, %c0_26] : memref<64x64xbf16, #tpu.memory_space<vmem>>, vector<64x64xbf16>
    %60 = arith.extf %59 : vector<64x64xbf16> to vector<64x64xf32>
    %c0_27 = arith.constant 0 : index
    %c0_28 = arith.constant 0 : index
    %61 = vector.load %arg12[%c0_27, %c0_28] : memref<5x5xf32, #tpu.memory_space<vmem>>, vector<5x5xf32>
    %62 = vector.extract_strided_slice %50 {offsets = [0, 0, 0], sizes = [2, 5, 16], strides = [1, 1, 1]} : vector<2x5x64xf32> to vector<2x5x16xf32>
    %63 = vector.extract_strided_slice %57 {offsets = [0, 0, 0], sizes = [2, 5, 16], strides = [1, 1, 1]} : vector<2x5x64xf32> to vector<2x5x16xf32>
    %64 = vector.extract_strided_slice %58 {offsets = [0, 0, 0], sizes = [2, 5, 16], strides = [1, 1, 1]} : vector<2x5x64xf32> to vector<2x5x16xf32>
    "tpu.trace_start"() <{level = 10 : i32, message = "bqd,bkd->bqk"}> : () -> ()
    %cst_29 = arith.constant dense<0.000000e+00> : vector<2x5x5xf32>
    %65 = tpu.matmul %62, %63, %cst_29 {dimension_numbers = #tpu.dot_dimension_numbers<[2], [2], [1], [1], [0, 0, 0, 1, 1, 1], [0], [0]>} : vector<2x5x16xf32>, vector<2x5x16xf32>, vector<2x5x5xf32> -> vector<2x5x5xf32>
    "tpu.trace_stop"() : () -> ()
    %cst_30 = arith.constant 2.500000e-01 : f32
    %66 = vector.broadcast %cst_30 : f32 to vector<2x5x5xf32>
    %67 = arith.mulf %65, %66 : vector<2x5x5xf32>
    %68 = vector.shape_cast %61 : vector<5x5xf32> to vector<1x5x5xf32>
    %69 = vector.broadcast %68 : vector<1x5x5xf32> to vector<2x5x5xf32>
    %70 = arith.addf %67, %69 : vector<2x5x5xf32>
    %cst_31 = arith.constant dense<0xFF800000> : vector<2x5xf32>
    %71 = vector.multi_reduction <maximumf>, %70, %cst_31 [2] : vector<2x5x5xf32> to vector<2x5xf32>
    %72 = vector.shape_cast %71 : vector<2x5xf32> to vector<2x5x1xf32>
    %73 = vector.broadcast %72 : vector<2x5x1xf32> to vector<2x5x5xf32>
    %74 = arith.subf %70, %73 : vector<2x5x5xf32>
    %75 = math.exp %74 : vector<2x5x5xf32>
    %cst_32 = arith.constant dense<0.000000e+00> : vector<2x5xf32>
    %76 = vector.multi_reduction <add>, %75, %cst_32 [2] : vector<2x5x5xf32> to vector<2x5xf32>
    %77 = vector.shape_cast %76 : vector<2x5xf32> to vector<2x5x1xf32>
    %78 = tpu.reciprocal %77 {approx = true} : vector<2x5x1xf32> -> vector<2x5x1xf32>
    %79 = vector.broadcast %78 : vector<2x5x1xf32> to vector<2x5x5xf32>
    %80 = arith.mulf %75, %79 : vector<2x5x5xf32>
    "tpu.trace_start"() <{level = 10 : i32, message = "bqk,bkd->bqd"}> : () -> ()
    %cst_33 = arith.constant dense<0.000000e+00> : vector<2x5x16xf32>
    %81 = tpu.matmul %80, %64, %cst_33 {dimension_numbers = #tpu.dot_dimension_numbers<[2], [1], [1], [2], [0, 0, 0, 1, 1, 2], [0], [0]>} : vector<2x5x5xf32>, vector<2x5x16xf32>, vector<2x5x16xf32> -> vector<2x5x16xf32>
    "tpu.trace_stop"() : () -> ()
    %82 = vector.shape_cast %81 : vector<2x5x16xf32> to vector<10x16xf32>
    %83 = vector.extract_strided_slice %60 {offsets = [0, 0], sizes = [16, 64], strides = [1, 1]} : vector<64x64xf32> to vector<16x64xf32>
    %cst_34 = arith.constant dense<0.000000e+00> : vector<10x64xf32>
    %84 = tpu.matmul %82, %83, %cst_34 {dimension_numbers = #tpu.dot_dimension_numbers<[1], [0], [0], [1], [0, 0, 1, 1], [], []>} : vector<10x16xf32>, vector<16x64xf32>, vector<10x64xf32> -> vector<10x64xf32>
    %85 = vector.extract_strided_slice %50 {offsets = [0, 0, 16], sizes = [2, 5, 16], strides = [1, 1, 1]} : vector<2x5x64xf32> to vector<2x5x16xf32>
    %86 = vector.extract_strided_slice %57 {offsets = [0, 0, 16], sizes = [2, 5, 16], strides = [1, 1, 1]} : vector<2x5x64xf32> to vector<2x5x16xf32>
    %87 = vector.extract_strided_slice %58 {offsets = [0, 0, 16], sizes = [2, 5, 16], strides = [1, 1, 1]} : vector<2x5x64xf32> to vector<2x5x16xf32>
    "tpu.trace_start"() <{level = 10 : i32, message = "bqd,bkd->bqk"}> : () -> ()
    %cst_35 = arith.constant dense<0.000000e+00> : vector<2x5x5xf32>
    %88 = tpu.matmul %85, %86, %cst_35 {dimension_numbers = #tpu.dot_dimension_numbers<[2], [2], [1], [1], [0, 0, 0, 1, 1, 1], [0], [0]>} : vector<2x5x16xf32>, vector<2x5x16xf32>, vector<2x5x5xf32> -> vector<2x5x5xf32>
    "tpu.trace_stop"() : () -> ()
    %cst_36 = arith.constant 2.500000e-01 : f32
    %89 = vector.broadcast %cst_36 : f32 to vector<2x5x5xf32>
    %90 = arith.mulf %88, %89 : vector<2x5x5xf32>
    %91 = vector.shape_cast %61 : vector<5x5xf32> to vector<1x5x5xf32>
    %92 = vector.broadcast %91 : vector<1x5x5xf32> to vector<2x5x5xf32>
    %93 = arith.addf %90, %92 : vector<2x5x5xf32>
    %cst_37 = arith.constant dense<0xFF800000> : vector<2x5xf32>
    %94 = vector.multi_reduction <maximumf>, %93, %cst_37 [2] : vector<2x5x5xf32> to vector<2x5xf32>
    %95 = vector.shape_cast %94 : vector<2x5xf32> to vector<2x5x1xf32>
    %96 = vector.broadcast %95 : vector<2x5x1xf32> to vector<2x5x5xf32>
    %97 = arith.subf %93, %96 : vector<2x5x5xf32>
    %98 = math.exp %97 : vector<2x5x5xf32>
    %cst_38 = arith.constant dense<0.000000e+00> : vector<2x5xf32>
    %99 = vector.multi_reduction <add>, %98, %cst_38 [2] : vector<2x5x5xf32> to vector<2x5xf32>
    %100 = vector.shape_cast %99 : vector<2x5xf32> to vector<2x5x1xf32>
    %101 = tpu.reciprocal %100 {approx = true} : vector<2x5x1xf32> -> vector<2x5x1xf32>
    %102 = vector.broadcast %101 : vector<2x5x1xf32> to vector<2x5x5xf32>
    %103 = arith.mulf %98, %102 : vector<2x5x5xf32>
    "tpu.trace_start"() <{level = 10 : i32, message = "bqk,bkd->bqd"}> : () -> ()
    %cst_39 = arith.constant dense<0.000000e+00> : vector<2x5x16xf32>
    %104 = tpu.matmul %103, %87, %cst_39 {dimension_numbers = #tpu.dot_dimension_numbers<[2], [1], [1], [2], [0, 0, 0, 1, 1, 2], [0], [0]>} : vector<2x5x5xf32>, vector<2x5x16xf32>, vector<2x5x16xf32> -> vector<2x5x16xf32>
    "tpu.trace_stop"() : () -> ()
    %105 = vector.shape_cast %104 : vector<2x5x16xf32> to vector<10x16xf32>
    %106 = vector.extract_strided_slice %60 {offsets = [16, 0], sizes = [16, 64], strides = [1, 1]} : vector<64x64xf32> to vector<16x64xf32>
    %cst_40 = arith.constant dense<0.000000e+00> : vector<10x64xf32>
    %107 = tpu.matmul %105, %106, %cst_40 {dimension_numbers = #tpu.dot_dimension_numbers<[1], [0], [0], [1], [0, 0, 1, 1], [], []>} : vector<10x16xf32>, vector<16x64xf32>, vector<10x64xf32> -> vector<10x64xf32>
    %108 = arith.addf %84, %107 : vector<10x64xf32>
    %109 = vector.extract_strided_slice %50 {offsets = [0, 0, 32], sizes = [2, 5, 16], strides = [1, 1, 1]} : vector<2x5x64xf32> to vector<2x5x16xf32>
    %110 = vector.extract_strided_slice %57 {offsets = [0, 0, 32], sizes = [2, 5, 16], strides = [1, 1, 1]} : vector<2x5x64xf32> to vector<2x5x16xf32>
    %111 = vector.extract_strided_slice %58 {offsets = [0, 0, 32], sizes = [2, 5, 16], strides = [1, 1, 1]} : vector<2x5x64xf32> to vector<2x5x16xf32>
    "tpu.trace_start"() <{level = 10 : i32, message = "bqd,bkd->bqk"}> : () -> ()
    %cst_41 = arith.constant dense<0.000000e+00> : vector<2x5x5xf32>
    %112 = tpu.matmul %109, %110, %cst_41 {dimension_numbers = #tpu.dot_dimension_numbers<[2], [2], [1], [1], [0, 0, 0, 1, 1, 1], [0], [0]>} : vector<2x5x16xf32>, vector<2x5x16xf32>, vector<2x5x5xf32> -> vector<2x5x5xf32>
    "tpu.trace_stop"() : () -> ()
    %cst_42 = arith.constant 2.500000e-01 : f32
    %113 = vector.broadcast %cst_42 : f32 to vector<2x5x5xf32>
    %114 = arith.mulf %112, %113 : vector<2x5x5xf32>
    %115 = vector.shape_cast %61 : vector<5x5xf32> to vector<1x5x5xf32>
    %116 = vector.broadcast %115 : vector<1x5x5xf32> to vector<2x5x5xf32>
    %117 = arith.addf %114, %116 : vector<2x5x5xf32>
    %cst_43 = arith.constant dense<0xFF800000> : vector<2x5xf32>
    %118 = vector.multi_reduction <maximumf>, %117, %cst_43 [2] : vector<2x5x5xf32> to vector<2x5xf32>
    %119 = vector.shape_cast %118 : vector<2x5xf32> to vector<2x5x1xf32>
    %120 = vector.broadcast %119 : vector<2x5x1xf32> to vector<2x5x5xf32>
    %121 = arith.subf %117, %120 : vector<2x5x5xf32>
    %122 = math.exp %121 : vector<2x5x5xf32>
    %cst_44 = arith.constant dense<0.000000e+00> : vector<2x5xf32>
    %123 = vector.multi_reduction <add>, %122, %cst_44 [2] : vector<2x5x5xf32> to vector<2x5xf32>
    %124 = vector.shape_cast %123 : vector<2x5xf32> to vector<2x5x1xf32>
    %125 = tpu.reciprocal %124 {approx = true} : vector<2x5x1xf32> -> vector<2x5x1xf32>
    %126 = vector.broadcast %125 : vector<2x5x1xf32> to vector<2x5x5xf32>
    %127 = arith.mulf %122, %126 : vector<2x5x5xf32>
    "tpu.trace_start"() <{level = 10 : i32, message = "bqk,bkd->bqd"}> : () -> ()
    %cst_45 = arith.constant dense<0.000000e+00> : vector<2x5x16xf32>
    %128 = tpu.matmul %127, %111, %cst_45 {dimension_numbers = #tpu.dot_dimension_numbers<[2], [1], [1], [2], [0, 0, 0, 1, 1, 2], [0], [0]>} : vector<2x5x5xf32>, vector<2x5x16xf32>, vector<2x5x16xf32> -> vector<2x5x16xf32>
    "tpu.trace_stop"() : () -> ()
    %129 = vector.shape_cast %128 : vector<2x5x16xf32> to vector<10x16xf32>
    %130 = vector.extract_strided_slice %60 {offsets = [32, 0], sizes = [16, 64], strides = [1, 1]} : vector<64x64xf32> to vector<16x64xf32>
    %cst_46 = arith.constant dense<0.000000e+00> : vector<10x64xf32>
    %131 = tpu.matmul %129, %130, %cst_46 {dimension_numbers = #tpu.dot_dimension_numbers<[1], [0], [0], [1], [0, 0, 1, 1], [], []>} : vector<10x16xf32>, vector<16x64xf32>, vector<10x64xf32> -> vector<10x64xf32>
    %132 = arith.addf %108, %131 : vector<10x64xf32>
    %133 = vector.extract_strided_slice %50 {offsets = [0, 0, 48], sizes = [2, 5, 16], strides = [1, 1, 1]} : vector<2x5x64xf32> to vector<2x5x16xf32>
    %134 = vector.extract_strided_slice %57 {offsets = [0, 0, 48], sizes = [2, 5, 16], strides = [1, 1, 1]} : vector<2x5x64xf32> to vector<2x5x16xf32>
    %135 = vector.extract_strided_slice %58 {offsets = [0, 0, 48], sizes = [2, 5, 16], strides = [1, 1, 1]} : vector<2x5x64xf32> to vector<2x5x16xf32>
    "tpu.trace_start"() <{level = 10 : i32, message = "bqd,bkd->bqk"}> : () -> ()
    %cst_47 = arith.constant dense<0.000000e+00> : vector<2x5x5xf32>
    %136 = tpu.matmul %133, %134, %cst_47 {dimension_numbers = #tpu.dot_dimension_numbers<[2], [2], [1], [1], [0, 0, 0, 1, 1, 1], [0], [0]>} : vector<2x5x16xf32>, vector<2x5x16xf32>, vector<2x5x5xf32> -> vector<2x5x5xf32>
    "tpu.trace_stop"() : () -> ()
    %cst_48 = arith.constant 2.500000e-01 : f32
    %137 = vector.broadcast %cst_48 : f32 to vector<2x5x5xf32>
    %138 = arith.mulf %136, %137 : vector<2x5x5xf32>
    %139 = vector.shape_cast %61 : vector<5x5xf32> to vector<1x5x5xf32>
    %140 = vector.broadcast %139 : vector<1x5x5xf32> to vector<2x5x5xf32>
    %141 = arith.addf %138, %140 : vector<2x5x5xf32>
    %cst_49 = arith.constant dense<0xFF800000> : vector<2x5xf32>
    %142 = vector.multi_reduction <maximumf>, %141, %cst_49 [2] : vector<2x5x5xf32> to vector<2x5xf32>
    %143 = vector.shape_cast %142 : vector<2x5xf32> to vector<2x5x1xf32>
    %144 = vector.broadcast %143 : vector<2x5x1xf32> to vector<2x5x5xf32>
    %145 = arith.subf %141, %144 : vector<2x5x5xf32>
    %146 = math.exp %145 : vector<2x5x5xf32>
    %cst_50 = arith.constant dense<0.000000e+00> : vector<2x5xf32>
    %147 = vector.multi_reduction <add>, %146, %cst_50 [2] : vector<2x5x5xf32> to vector<2x5xf32>
    %148 = vector.shape_cast %147 : vector<2x5xf32> to vector<2x5x1xf32>
    %149 = tpu.reciprocal %148 {approx = true} : vector<2x5x1xf32> -> vector<2x5x1xf32>
    %150 = vector.broadcast %149 : vector<2x5x1xf32> to vector<2x5x5xf32>
    %151 = arith.mulf %146, %150 : vector<2x5x5xf32>
    "tpu.trace_start"() <{level = 10 : i32, message = "bqk,bkd->bqd"}> : () -> ()
    %cst_51 = arith.constant dense<0.000000e+00> : vector<2x5x16xf32>
    %152 = tpu.matmul %151, %135, %cst_51 {dimension_numbers = #tpu.dot_dimension_numbers<[2], [1], [1], [2], [0, 0, 0, 1, 1, 2], [0], [0]>} : vector<2x5x5xf32>, vector<2x5x16xf32>, vector<2x5x16xf32> -> vector<2x5x16xf32>
    "tpu.trace_stop"() : () -> ()
    %153 = vector.shape_cast %152 : vector<2x5x16xf32> to vector<10x16xf32>
    %154 = vector.extract_strided_slice %60 {offsets = [48, 0], sizes = [16, 64], strides = [1, 1]} : vector<64x64xf32> to vector<16x64xf32>
    %cst_52 = arith.constant dense<0.000000e+00> : vector<10x64xf32>
    %155 = tpu.matmul %153, %154, %cst_52 {dimension_numbers = #tpu.dot_dimension_numbers<[1], [0], [0], [1], [0, 0, 1, 1], [], []>} : vector<10x16xf32>, vector<16x64xf32>, vector<10x64xf32> -> vector<10x64xf32>
    %156 = arith.addf %132, %155 : vector<10x64xf32>
    %157 = arith.addf %2, %156 : vector<10x64xf32>
    %c0_53 = arith.constant 0 : index
    %c0_54 = arith.constant 0 : index
    %158 = vector.load %arg6[%c0_53, %c0_54] : memref<1x64xbf16, #tpu.memory_space<vmem>>, vector<1x64xbf16>
    %159 = arith.extf %158 : vector<1x64xbf16> to vector<1x64xf32>
    %160 = arith.mulf %157, %157 : vector<10x64xf32>
    %cst_55 = arith.constant dense<0.000000e+00> : vector<10xf32>
    %161 = vector.multi_reduction <add>, %160, %cst_55 [1] : vector<10x64xf32> to vector<10xf32>
    %162 = vector.shape_cast %161 : vector<10xf32> to vector<10x1xf32>
    %cst_56 = arith.constant 6.400000e+01 : f32
    %163 = vector.broadcast %cst_56 : f32 to vector<10x1xf32>
    %164 = arith.divf %162, %163 : vector<10x1xf32>
    %cst_57 = arith.constant 9.99999997E-7 : f32
    %165 = vector.broadcast %cst_57 : f32 to vector<10x1xf32>
    %166 = arith.addf %164, %165 : vector<10x1xf32>
    %167 = math.rsqrt %166 : vector<10x1xf32>
    %168 = vector.broadcast %167 : vector<10x1xf32> to vector<10x64xf32>
    %169 = arith.mulf %157, %168 : vector<10x64xf32>
    %170 = vector.broadcast %159 : vector<1x64xf32> to vector<10x64xf32>
    %171 = arith.mulf %169, %170 : vector<10x64xf32>
    %c0_58 = arith.constant 0 : index
    %c0_59 = arith.constant 0 : index
    %172 = vector.load %arg7[%c0_58, %c0_59] : memref<64x256xbf16, #tpu.memory_space<vmem>>, vector<64x256xbf16>
    %173 = arith.extf %172 : vector<64x256xbf16> to vector<64x256xf32>
    %cst_60 = arith.constant dense<0.000000e+00> : vector<10x256xf32>
    %174 = tpu.matmul %171, %173, %cst_60 {dimension_numbers = #tpu.dot_dimension_numbers<[1], [0], [0], [1], [0, 0, 1, 1], [], []>} : vector<10x64xf32>, vector<64x256xf32>, vector<10x256xf32> -> vector<10x256xf32>
    %175 = vector.extract_strided_slice %174 {offsets = [0, 0], sizes = [10, 128], strides = [1, 1]} : vector<10x256xf32> to vector<10x128xf32>
    %176 = arith.negf %175 : vector<10x128xf32>
    %177 = math.exp %176 : vector<10x128xf32>
    %cst_61 = arith.constant 1.000000e+00 : f32
    %178 = vector.broadcast %cst_61 : f32 to vector<10x128xf32>
    %179 = arith.addf %178, %177 : vector<10x128xf32>
    %180 = arith.divf %178, %179 : vector<10x128xf32>
    %181 = arith.mulf %175, %180 : vector<10x128xf32>
    %182 = vector.extract_strided_slice %174 {offsets = [0, 128], sizes = [10, 128], strides = [1, 1]} : vector<10x256xf32> to vector<10x128xf32>
    %183 = arith.mulf %181, %182 : vector<10x128xf32>
    %c0_62 = arith.constant 0 : index
    %c0_63 = arith.constant 0 : index
    %184 = vector.load %arg8[%c0_62, %c0_63] : memref<128x64xbf16, #tpu.memory_space<vmem>>, vector<128x64xbf16>
    %185 = arith.extf %184 : vector<128x64xbf16> to vector<128x64xf32>
    %cst_64 = arith.constant dense<0.000000e+00> : vector<10x64xf32>
    %186 = tpu.matmul %183, %185, %cst_64 {dimension_numbers = #tpu.dot_dimension_numbers<[1], [0], [0], [1], [0, 0, 1, 1], [], []>} : vector<10x128xf32>, vector<128x64xf32>, vector<10x64xf32> -> vector<10x64xf32>
    %187 = arith.addf %157, %186 : vector<10x64xf32>
    %188 = vector.shape_cast %187 : vector<10x64xf32> to vector<2x5x64xf32>
    %189 = arith.truncf %188 : vector<2x5x64xf32> to vector<2x5x64xbf16>
    %c0_65 = arith.constant 0 : index
    %c0_66 = arith.constant 0 : index
    %c0_67 = arith.constant 0 : index
    %190 = vector.load %arg13[%c0_65, %c0_66, %c0_67] : memref<2x5x64xbf16, #tpu.memory_space<vmem>>, vector<2x5x64xbf16>
    tpu.vector_store %arg13[%c0_65, %c0_66, %c0_67], %189 {strides = array<i32>} : memref<2x5x64xbf16, #tpu.memory_space<vmem>>, vector<2x5x64xbf16>,
    return
  }
}

module attributes {stable_mosaic.version = 11 : i64} {
  func.func @lm_head_loss_kernel(%arg0: memref<2x5x64xbf16, #tpu.memory_space<vmem>>, %arg1: memref<1x64xbf16, #tpu.memory_space<vmem>>, %arg2: memref<64x64xbf16, #tpu.memory_space<vmem>>, %arg3: memref<2x4x1xi32, #tpu.memory_space<vmem>>, %arg4: memref<1x1xf32, #tpu.memory_space<vmem>>, %arg5: memref<2x5x64xf32, #tpu.memory_space<vmem>>) attributes {dimension_semantics = [], scalar_prefetch = 0 : i64, scratch_operands = 0 : i64, tpu.core_type = #tpu.core_type<tc>} {
    %c0 = arith.constant 0 : index
    %c0_0 = arith.constant 0 : index
    %c0_1 = arith.constant 0 : index
    %0 = vector.load %arg0[%c0, %c0_0, %c0_1] : memref<2x5x64xbf16, #tpu.memory_space<vmem>>, vector<2x5x64xbf16>
    %1 = arith.extf %0 : vector<2x5x64xbf16> to vector<2x5x64xf32>
    %2 = vector.shape_cast %1 : vector<2x5x64xf32> to vector<10x64xf32>
    %c0_2 = arith.constant 0 : index
    %c0_3 = arith.constant 0 : index
    %3 = vector.load %arg1[%c0_2, %c0_3] : memref<1x64xbf16, #tpu.memory_space<vmem>>, vector<1x64xbf16>
    %4 = arith.extf %3 : vector<1x64xbf16> to vector<1x64xf32>
    %5 = arith.mulf %2, %2 : vector<10x64xf32>
    %cst = arith.constant dense<0.000000e+00> : vector<10xf32>
    %6 = vector.multi_reduction <add>, %5, %cst [1] : vector<10x64xf32> to vector<10xf32>
    %7 = vector.shape_cast %6 : vector<10xf32> to vector<10x1xf32>
    %cst_4 = arith.constant 6.400000e+01 : f32
    %8 = vector.broadcast %cst_4 : f32 to vector<10x1xf32>
    %9 = arith.divf %7, %8 : vector<10x1xf32>
    %cst_5 = arith.constant 9.99999997E-7 : f32
    %10 = vector.broadcast %cst_5 : f32 to vector<10x1xf32>
    %11 = arith.addf %9, %10 : vector<10x1xf32>
    %12 = math.rsqrt %11 : vector<10x1xf32>
    %13 = vector.broadcast %12 : vector<10x1xf32> to vector<10x64xf32>
    %14 = arith.mulf %2, %13 : vector<10x64xf32>
    %15 = vector.broadcast %4 : vector<1x64xf32> to vector<10x64xf32>
    %16 = arith.mulf %14, %15 : vector<10x64xf32>
    %c0_6 = arith.constant 0 : index
    %c0_7 = arith.constant 0 : index
    %17 = vector.load %arg2[%c0_6, %c0_7] : memref<64x64xbf16, #tpu.memory_space<vmem>>, vector<64x64xbf16>
    %18 = arith.extf %17 : vector<64x64xbf16> to vector<64x64xf32>
    %cst_8 = arith.constant dense<0.000000e+00> : vector<10x64xf32>
    %19 = tpu.matmul %16, %18, %cst_8 {dimension_numbers = #tpu.dot_dimension_numbers<[1], [0], [0], [1], [0, 0, 1, 1], [], []>} : vector<10x64xf32>, vector<64x64xf32>, vector<10x64xf32> -> vector<10x64xf32>
    %20 = vector.shape_cast %19 : vector<10x64xf32> to vector<2x5x64xf32>
    %c0_9 = arith.constant 0 : index
    %c0_10 = arith.constant 0 : index
    %c0_11 = arith.constant 0 : index
    %21 = vector.load %arg5[%c0_9, %c0_10, %c0_11] : memref<2x5x64xf32, #tpu.memory_space<vmem>>, vector<2x5x64xf32>
    tpu.vector_store %arg5[%c0_9, %c0_10, %c0_11], %20 {strides = array<i32>} : memref<2x5x64xf32, #tpu.memory_space<vmem>>, vector<2x5x64xf32>,
    %22 = vector.extract_strided_slice %20 {offsets = [0, 0, 0], sizes = [2, 4, 64], strides = [1, 1, 1]} : vector<2x5x64xf32> to vector<2x4x64xf32>
    %c0_12 = arith.constant 0 : index
    %c0_13 = arith.constant 0 : index
    %c0_14 = arith.constant 0 : index
    %23 = vector.load %arg3[%c0_12, %c0_13, %c0_14] : memref<2x4x1xi32, #tpu.memory_space<vmem>>, vector<2x4x1xi32>
    %cst_15 = arith.constant dense<0xFF800000> : vector<2x4xf32>
    %24 = vector.multi_reduction <maximumf>, %22, %cst_15 [2] : vector<2x4x64xf32> to vector<2x4xf32>
    %25 = vector.shape_cast %24 : vector<2x4xf32> to vector<2x4x1xf32>
    %26 = vector.broadcast %25 : vector<2x4x1xf32> to vector<2x4x64xf32>
    %27 = arith.subf %22, %26 : vector<2x4x64xf32>
    %28 = math.exp %27 : vector<2x4x64xf32>
    %cst_16 = arith.constant dense<0.000000e+00> : vector<2x4xf32>
    %29 = vector.multi_reduction <add>, %28, %cst_16 [2] : vector<2x4x64xf32> to vector<2x4xf32>
    %30 = vector.shape_cast %29 : vector<2x4xf32> to vector<2x4x1xf32>
    %31 = math.log %30 : vector<2x4x1xf32>
    %32 = arith.addf %31, %25 : vector<2x4x1xf32>
    %33 = vector.broadcast %32 : vector<2x4x1xf32> to vector<2x4x64xf32>
    %34 = arith.subf %22, %33 : vector<2x4x64xf32>
    %35 = tpu.iota {dimensions = array<i32: 2>} : vector<2x4x64xi32>
    %36 = vector.broadcast %23 : vector<2x4x1xi32> to vector<2x4x64xi32>
    %37 = arith.cmpi eq, %35, %36 : vector<2x4x64xi32>
    %cst_17 = arith.constant 0.000000e+00 : f32
    %38 = vector.broadcast %cst_17 : f32 to vector<2x4x64xf32>
    %39 = arith.select %37, %34, %38 : vector<2x4x64xi1>, vector<2x4x64xf32>
    %cst_18 = arith.constant dense<0.000000e+00> : vector<2x4xf32>
    %40 = vector.multi_reduction <add>, %39, %cst_18 [2] : vector<2x4x64xf32> to vector<2x4xf32>
    %41 = vector.shape_cast %40 : vector<2x4xf32> to vector<2x4x1xf32>
    %c0_i32 = arith.constant 0 : i32
    %42 = vector.broadcast %c0_i32 : i32 to vector<2x4x1xi32>
    %43 = arith.cmpi sge, %23, %42 : vector<2x4x1xi32>
    %44 = arith.extui %43 : vector<2x4x1xi1> to vector<2x4x1xi32>
    %45 = arith.sitofp %44 : vector<2x4x1xi32> to vector<2x4x1xf32>
    %46 = arith.mulf %41, %45 : vector<2x4x1xf32>
    %47 = vector.shape_cast %46 : vector<2x4x1xf32> to vector<8x1xf32>
    %cst_19 = arith.constant dense<0.000000e+00> : vector<1xf32>
    %48 = vector.multi_reduction <add>, %47, %cst_19 [0] : vector<8x1xf32> to vector<1xf32>
    %49 = vector.shape_cast %48 : vector<1xf32> to vector<1x1xf32>
    %50 = vector.shape_cast %45 : vector<2x4x1xf32> to vector<8x1xf32>
    %cst_20 = arith.constant dense<0.000000e+00> : vector<1xf32>
    %51 = vector.multi_reduction <add>, %50, %cst_20 [0] : vector<8x1xf32> to vector<1xf32>
    %52 = vector.shape_cast %51 : vector<1xf32> to vector<1x1xf32>
    %cst_21 = arith.constant 0.000000e+00 : f32
    %53 = vector.broadcast %cst_21 : f32 to vector<1x1xf32>
    %54 = arith.subf %53, %49 : vector<1x1xf32>
    %cst_22 = arith.constant 1.000000e+00 : f32
    %55 = vector.broadcast %cst_22 : f32 to vector<1x1xf32>
    %56 = arith.maximumf %52, %55 : vector<1x1xf32>
    %57 = arith.divf %54, %56 : vector<1x1xf32>
    %c0_23 = arith.constant 0 : index
    %c0_24 = arith.constant 0 : index
    %58 = vector.load %arg4[%c0_23, %c0_24] : memref<1x1xf32, #tpu.memory_space<vmem>>, vector<1x1xf32>
    tpu.vector_store %arg4[%c0_23, %c0_24], %57 {strides = array<i32>} : memref<1x1xf32, #tpu.memory_space<vmem>>, vector<1x1xf32>,
    return
  }
}

</mosaic_0001>

<bundles_post_ra>
// kernel: tile.14
= control target key start
LH: loop header
LB: loop body
LE: loop exit
PB: predicated region body
PF: predicated region fallthrough
CT: control target
= control target key end

     0   :  { %vm28_vm0 = vcmask 1044484   ;;  %vm30_vm1 = vcmask 130048   ;;  %s73_s16 = smov 16   ;;  %s74_s19 = smov 32   ;;  %vm40_vm2 = vcmask 523648   ;;  %vm50_vm3 = vcmask 392448   ;;  %s117_s0 = inlined_call_operand.vmem [shape: f32[5,4,16], index: 0, kind: input, shape index: {}]   ;;  %s118_s1 = inlined_call_operand.vmem [shape: f32[5,64], index: 1, kind: output, shape index: {}]  }
   0x1   :  { %v65_v0 = vld [vmem:[%s117_s0 + $0x10] sm:$0xf]  ;;  %v66_v1 = vld [vmem:[%s117_s0 + $0xc] sm:$0xf]  ;;  %v67_v2 = vld [vmem:[%s117_s0 + $0x8] sm:$0xf] }
   0x2   :  { %8 = vst [vmem:[#allocation0 + $0x20] sm:$0xf] %v65_v0  ;;  %13 = vst [vmem:[#allocation0 + $0x18] sm:$0xf] %v66_v1  ;;  %v68_v3 = vld [vmem:[%s117_s0 + $0x4] sm:$0xf] }
   0x3   :  { %18 = vst [vmem:[#allocation0 + $0x10] sm:$0xf] %v67_v2  ;;  %v23_v4 = vld [vmem:[%s117_s0] sm:$0xf]  ;;  %22 = vst [vmem:[#allocation0 + $0x8] sm:$0xf] %v68_v3 }
   0x4   :  { %24 = vst [vmem:[#allocation0] sm:$0xf] %v23_v4  ;;  %s72_s0 = smov 48   ;;  %vm60_vm4 = vcmask 261248  }
   0x9   :  { %v35_v5 = vld [vmem:[#allocation0 + $0x1f] sm:$0x10]   ;;  %v45_v6 = vld [vmem:[#allocation0 + $0x1e] sm:$0x10]   ;;  %v55_v7 = vld [vmem:[#allocation0 + $0x1d] sm:$0x10]  }
   0xa   :  { %v27_v14 = vld [vmem:[#allocation0 + $0x1c] sm:$0x10]  }
   0xb   :  { %v33_v8 = vld [vmem:[#allocation0 + $0x3] ss:$8 sm:$0xf]   ;;  %v43_v9 = vld [vmem:[#allocation0 + $0x2] ss:$8 sm:$0xf]  }
   0xc   :  { %v37_v10 = vsel %vm28_vm0, %v35_v5, %v33_v8  ;;  %v53_v11 = vld [vmem:[#allocation0 + $0x1] ss:$8 sm:$0xf]   ;;  %v25_v12 = vld [vmem:[#allocation0] ss:$8 sm:$0xf]   ;;  %v47_v15 = vsel %vm28_vm0, %v45_v6, %v43_v9 }
   0xd   :  { %38 = vrot.lane.b32.xlu0 %v37_v10, %s72_s0  ;;  %v57_v13 = vsel %vm28_vm0, %v55_v7, %v53_v11  ;;  %v29_v16 = vsel %vm28_vm0, %v27_v14, %v25_v12 }
   0xe   :  { %58 = vrot.lane.b32.xlu1 %v57_v13, %s73_s16  ;;  %31 = vst.msk [vmem:[%s118_s1] sm:$0x1f] %vm30_vm1, %v29_v16  }
  0x11   :  { %48 = vrot.lane.b32.xlu0 %v47_v15, %s74_s19 }
  0x7f   :  { %v39_v17 = vpop.permute.xlu0 %38  }
  0x80   :  { %41 = vst.msk [vmem:[%s118_s1] sm:$0x1f] %vm40_vm2, %v39_v17   ;;  %v59_v18 = vpop.permute.xlu1 %58  }
  0x83   :  { %v49_v19 = vpop.permute.xlu0 %48  }
  0x84   :  { %51 = vst.msk [vmem:[%s118_s1] sm:$0x1f] %vm50_vm3, %v49_v19  }
  0x85   :  { %61 = vst.msk [vmem:[%s118_s1] sm:$0x1f] %vm60_vm4, %v59_v18  }

// kernel: vision_to_llama_forward.5
= control target key start
LH: loop header
LB: loop body
LE: loop exit
PB: predicated region body
PF: predicated region fallthrough
CT: control target
= control target key end

     0   :  { %v33_v0 = vlaneseq  ;;  %v559_v1 = vmov 0.0|0.0   ;;  %v560_v5 = vmov 1966171168   ;;  %vm230_vm0 = vcmask 523264   ;;  %s760_s1 = inlined_call_operand.vmem [shape: f32[192,32], index: 1, kind: input, shape index: {}]   ;;  %s761_s0 = inlined_call_operand.vmem [shape: f32[2,5,192], index: 0, kind: input, shape index: {}]   ;;  %s762_s2 = inlined_call_operand.vmem [shape: f32[1,32], index: 2, kind: input, shape index: {}]   ;;  %s763_s3 = inlined_call_operand.vmem [shape: f32[1,1,32], index: 3, kind: input, shape index: {}]   ;;  %s764_s4 = inlined_call_operand.vmem [shape: f32[1,5,32], index: 4, kind: input, shape index: {}]   ;;  %s765_s5 = inlined_call_operand.vmem [shape: f32[2,5,32], index: 5, kind: output, shape index: {}]  }
   0x1   :  { %491 = vmatprep.subr.bf16.mxu0 %v559_v1  ;;  %v108_v2 = vld [vmem:[%s760_s1] sm:$0xff]  ;;  %v109_v3 = vld [vmem:[%s760_s1 + $0x8] sm:$0xff]  ;;  %527 = vmatprep.subr.bf16.mxu1 %v559_v1  ;;  %v110_v4 = vld [vmem:[%s760_s1 + $0x10] sm:$0xff]  ;;  %v31_v6 = vunpack.c.l.s4 %v560_v5  ;;  %vm478_vm2 = vcmask 258048  }
   0x2   :  { %v492_v7 = vpack.c.bf16 %v109_v3, %v108_v2  ;;  %v111_v8 = vld [vmem:[%s760_s1 + $0x18] sm:$0xff]  ;;  %v605_v11 = vshrl.u32 %v33_v0, 7  ;;  %v112_v12 = vld [vmem:[%s760_s1 + $0x20] sm:$0xff]  ;;  %v113_v13 = vld [vmem:[%s760_s1 + $0x28] sm:$0xff] }
   0x3   :  { %v495_v9 = vpack.c.bf16 %v111_v8, %v110_v4  ;;  %v32_v10 = vunpack.c.0.s8 %v31_v6  ;;  %v498_v14 = vpack.c.bf16 %v113_v13, %v112_v12  ;;  %v114_v15 = vld [vmem:[%s760_s1 + $0x30] sm:$0xff]  ;;  %v115_v16 = vld [vmem:[%s760_s1 + $0x38] sm:$0xff]  ;;  %v553_v18 = vld [vmem:[%s761_s0] ss:$8 sps:$4 sm:$0xff]  }
   0x4   :  { %493 = vmatpush1.bf16.msra.mxu0 %v492_v7  ;;  %539 = vmatpush1.bf16.msra.mxu1 %v492_v7  ;;  %v556_v19 = vld [vmem:[%s761_s0 + $0x10] ss:$8 sps:$4 sm:$0xff]   ;;  %v555_v20 = vld [vmem:[%s761_s0 + $0x4] ss:$8 sps:$4 sm:$0x11]   ;;  %v501_v22 = vpack.c.bf16 %v115_v16, %v114_v15  ;;  %vm392_vm1 = vcmp.eq.s32.totalorder %v605_v11, 0 }
   0x5   :  { %494 = vmatprep.subr.bf16.mxu0 %v559_v1  ;;  %528 = vmatprep.subr.bf16.mxu1 %v559_v1  ;;  %v622_v17 = vsub.s32 %v32_v10, %v605_v11  ;;  %v558_v21 = vld [vmem:[%s761_s0 + $0x14] ss:$8 sps:$4 sm:$0x11]   ;;  %v116_v23 = vld [vmem:[%s760_s1 + $0x40] sm:$0xff]  ;;  %v117_v24 = vld [vmem:[%s760_s1 + $0x48] sm:$0xff] }
   0x6   :  { %v504_v33 = vpack.c.bf16 %v117_v24, %v116_v23  ;;  %v118_v35 = vld [vmem:[%s760_s1 + $0x50] sm:$0xff]  ;;  %v119_v36 = vld [vmem:[%s760_s1 + $0x58] sm:$0xff]  ;;  %v120_v51 = vld [vmem:[%s760_s1 + $0x60] sm:$0xff] }
   0x7   :  { %v36_v25 = vrot.slane %v553_v18, %v622_v17  ;;  %v76_v26 = vrot.slane %v556_v19, %v622_v17  ;;  %v43_v27 = vrot.slane %v555_v20, %v622_v17  ;;  %v83_v28 = vrot.slane %v558_v21, %v622_v17  ;;  %v121_v52 = vld [vmem:[%s760_s1 + $0x68] sm:$0xff]  ;;  %v122_v60 = vld [vmem:[%s760_s1 + $0x70] sm:$0xff]  ;;  %v123_v61 = vld [vmem:[%s760_s1 + $0x78] sm:$0xff] }
   0x8   :  { %496 = vmatpush1.bf16.msra.mxu0 %v495_v9  ;;  %540 = vmatpush1.bf16.msra.mxu1 %v495_v9  ;;  %v507_v46 = vpack.c.bf16 %v119_v36, %v118_v35  ;;  %v510_v57 = vpack.c.bf16 %v121_v52, %v120_v51  ;;  %v513_v2 = vpack.c.bf16 %v123_v61, %v122_v60  ;;  %v124_v3 = vld [vmem:[%s760_s1 + $0x80] sm:$0xff]  ;;  %v125_v4 = vld [vmem:[%s760_s1 + $0x88] sm:$0xff]  ;;  %v126_v6 = vld [vmem:[%s760_s1 + $0x90] sm:$0xff] }
   0x9   :  { %497 = vmatprep.subr.bf16.mxu0 %v559_v1  ;;  %529 = vmatprep.subr.bf16.mxu1 %v559_v1  ;;  %v44_v29 = vcombine.high %v36_v25, %v36_v25  ;;  %v51_v30 = vrot.slane %v36_v25, %v622_v17  ;;  %v84_v31 = vcombine.high %v76_v26, %v76_v26  ;;  %v127_v7 = vld [vmem:[%s760_s1 + $0x98] sm:$0xff]  ;;  %v128_v9 = vld [vmem:[%s760_s1 + $0xa0] sm:$0xff]  ;;  %v129_v10 = vld [vmem:[%s760_s1 + $0xa8] sm:$0xff] }
   0xa   :  { %v91_v32 = vrot.slane %v76_v26, %v622_v17  ;;  %v58_v34 = vrot.slane %v43_v27, %v622_v17  ;;  %v98_v41 = vrot.slane %v83_v28, %v622_v17  ;;  %v516_v5 = vpack.c.bf16 %v125_v4, %v124_v3  ;;  %v130_v15 = vld [vmem:[%s760_s1 + $0xb0] sm:$0xff]  ;;  %v131_v16 = vld [vmem:[%s760_s1 + $0xb8] sm:$0xff]  ;;  %v485_v23 = vld [vmem:[%s762_s2] ss:$0 sm:$0xff] }
   0xb   :  { %v65_v37 = vrot.slane %v44_v29, %v622_v17  ;;  %v105_v38 = vrot.slane %v84_v31, %v622_v17  ;;  %v519_v8 = vpack.c.bf16 %v127_v7, %v126_v6  ;;  %v525_v20 = vpack.c.bf16 %v131_v16, %v130_v15 }
   0xc   :  { %499 = vmatpush1.bf16.msra.mxu0 %v498_v14  ;;  %541 = vmatpush1.bf16.msra.mxu1 %v498_v14  ;;  %v106_v39 = vcombine.high %v91_v32, %v91_v32  ;;  %v141_v40 = vcombine.low %v58_v34, %v91_v32  ;;  %v522_v14 = vpack.c.bf16 %v129_v10, %v128_v9 }
   0xd   :  { %500 = vmatprep.subr.bf16.mxu0 %v559_v1  ;;  %530 = vmatprep.subr.bf16.mxu1 %v559_v1  ;;  %v139_v42 = vcombine.low %v51_v30, %v65_v37  ;;  %v486_v43 = vcombine.high %v51_v30, %v65_v37  ;;  %v107_v45 = vcombine.high %v105_v38, %v105_v38 }
   0xe   :  { %v142_v44 = vcombine.low %v105_v38, %v106_v39  ;;  %v163_v47 = vrot.slane %v141_v40, %v622_v17 }
   0xf   :  { %v149_v48 = vrot.slane %v139_v42, %v622_v17  ;;  %v156_v49 = vrot.slane %v486_v43, %v622_v17  ;;  %v205_v53 = vcombine.low %v107_v45, %v98_v41 }
  0x10   :  { %502 = vmatpush1.bf16.msra.mxu0 %v501_v22  ;;  %542 = vmatpush1.bf16.msra.mxu1 %v501_v22  ;;  %v170_v50 = vrot.slane %v142_v44, %v622_v17 }
  0x11   :  { %503 = vmatprep.subr.bf16.mxu0 %v559_v1  ;;  %531 = vmatprep.subr.bf16.mxu1 %v559_v1  ;;  %v172_v54 = vcombine.high %v149_v48, %v156_v49  ;;  %v212_v56 = vrot.slane %v205_v53, %v622_v17  ;;  %v171_v12 = vcombine.low %v149_v48, %v156_v49 }
  0x12   :  { %v174_v55 = vcombine.high %v163_v47, %v170_v50  ;;  %v173_v13 = vcombine.low %v163_v47, %v170_v50 }
  0x13   :  { %v188_v58 = vrot.slane %v172_v54, %v622_v17  ;;  %v213_v62 = vcombine.high %v212_v56, %v212_v56  ;;  %v181_v18 = vrot.slane %v171_v12, %v622_v17  ;;  %v220_v22 = vrot.slane %v212_v56, %v622_v17 }
  0x14   :  { %505 = vmatpush1.bf16.msra.mxu0 %v504_v33  ;;  %543 = vmatpush1.bf16.msra.mxu1 %v504_v33  ;;  %v202_v59 = vrot.slane %v174_v55, %v622_v17  ;;  %v195_v19 = vrot.slane %v173_v13, %v622_v17 }
  0x15   :  { %506 = vmatprep.subr.bf16.mxu0 %v559_v1  ;;  %532 = vmatprep.subr.bf16.mxu1 %v559_v1  ;;  %v227_v0 = vrot.slane %v213_v62, %v622_v17 }
  0x16   :  { %v204_v63 = vcombine.low %v188_v58, %v202_v59  ;;  %v203_v21 = vcombine.low %v181_v18, %v195_v19  ;;  %v475_v59 = vld [vmem:[%s764_s4] sm:$0x1f] }
  0x17   :  { %488 = vmatprep.mubr.msk.f32.mxu1 %vm230_vm0, %v227_v0 }
  0x18   :  { %508 = vmatpush1.bf16.msra.mxu0 %v507_v46  ;;  %544 = vmatpush1.bf16.msra.mxu1 %v507_v46 }
  0x19   :  { %509 = vmatprep.subr.bf16.mxu0 %v559_v1  ;;  %533 = vmatprep.subr.bf16.mxu1 %v559_v1 }
  0x1a   :  { %487 = vmatprep.mubr.msk.f32.mxu0 %vm230_vm0, %v204_v63 }
  0x1c   :  { %511 = vmatpush1.bf16.msra.mxu0 %v510_v57  ;;  %545 = vmatpush1.bf16.msra.mxu1 %v510_v57  ;;  %v489_v57 = vld [vmem:[%s763_s3] ss:$0 sm:$0xff] }
  0x1d   :  { %512 = vmatprep.subr.bf16.mxu0 %v559_v1  ;;  %534 = vmatprep.subr.bf16.mxu1 %v559_v1 }
  0x20   :  { %514 = vmatpush1.bf16.msra.mxu0 %v513_v2  ;;  %546 = vmatpush1.bf16.msra.mxu1 %v513_v2 }
  0x21   :  { %515 = vmatprep.subr.bf16.mxu0 %v559_v1  ;;  %535 = vmatprep.subr.bf16.mxu1 %v559_v1 }
  0x24   :  { %517 = vmatpush1.bf16.msra.mxu0 %v516_v5  ;;  %547 = vmatpush1.bf16.msra.mxu1 %v516_v5 }
  0x25   :  { %518 = vmatprep.subr.bf16.mxu0 %v559_v1  ;;  %536 = vmatprep.subr.bf16.mxu1 %v559_v1 }
  0x28   :  { %520 = vmatpush1.bf16.msra.mxu0 %v519_v8  ;;  %548 = vmatpush1.bf16.msra.mxu1 %v519_v8 }
  0x29   :  { %521 = vmatprep.subr.bf16.mxu0 %v559_v1  ;;  %537 = vmatprep.subr.bf16.mxu1 %v559_v1 }
  0x2c   :  { %523 = vmatpush1.bf16.msra.mxu0 %v522_v14  ;;  %549 = vmatpush1.bf16.msra.mxu1 %v522_v14 }
  0x2d   :  { %524 = vmatprep.subr.bf16.mxu0 %v559_v1  ;;  %538 = vmatprep.subr.bf16.mxu1 %v559_v1 }
  0x30   :  { %526 = vmatpush1.bf16.msra.mxu0 %v525_v20  ;;  %550 = vmatpush1.bf16.msra.mxu1 %v525_v20 }
  0x33   :  { %300 = vmatmul.mubr.f32.vlgmr.msra.gmra.mrb[0].mxu0 %v203_v21  ;;  %305 = vmatmul.mubr.f32.vlgmr.msra.gmra.mrb[0].mxu1 %v220_v22 }
 0x106   :  { %v301_v24 = vpop.f32.mrb[0].mxu0  ;;  %v306_v25 = vpop.f32.mrb[0].mxu1 }
 0x107   :  { %v302_v26 = vadd.f32 %v485_v23, %v301_v24  ;;  %v303_v27 = vpop.f32.mrb[1].mxu0  ;;  %v307_v28 = vadd.f32 %v485_v23, %v306_v25  ;;  %v308_v29 = vpop.f32.mrb[1].mxu1 }
 0x109   :  { %v312_v30 = vcombine.high %v302_v26, %v302_v26  ;;  %v319_v1 = vrot.slane %v302_v26, %v622_v17  ;;  %v367_v31 = vrot.slane %v307_v28, %v622_v17 }
 0x10b   :  { %v326_v32 = vrot.slane %v312_v30, %v622_v17  ;;  %v327_v33 = vcombine.high %v319_v1, %v319_v1  ;;  %v368_v34 = vcombine.high %v367_v31, %v367_v31  ;;  %v335_v36 = vrot.slane %v319_v1, %v622_v17 }
 0x10c   :  { %v375_v39 = vrot.slane %v367_v31, %v622_v17 }
 0x10d   :  { %v328_v35 = vcombine.high %v326_v32, %v326_v32  ;;  %v342_v37 = vrot.slane %v326_v32, %v622_v17  ;;  %v349_v38 = vrot.slane %v327_v33, %v622_v17  ;;  %v382_v45 = vrot.slane %v368_v34, %v622_v17 }
 0x10f   :  { %v356_v40 = vrot.slane %v328_v35, %v622_v17  ;;  %v358_v41 = vcombine.high %v342_v37, %v342_v37  ;;  %v393_v42 = vcombine.low %v335_v36, %v349_v38  ;;  %v490_v43 = vcombine.high %v335_v36, %v349_v38 }
 0x110   :  { %v415_v44 = vrot.slane %v342_v37, %v622_v17  ;;  %v454_v52 = vrot.slane %v382_v45, %v622_v17 }
 0x111   :  { %v401_v46 = vrot.slane %v393_v42, %v622_v17  ;;  %v408_v47 = vrot.slane %v490_v43, %v622_v17  ;;  %v432_v48 = vcombine.low %v356_v40, %v358_v41  ;;  %v360_v49 = vcombine.high %v356_v40, %v356_v40 }
 0x112   :  { %v430_v54 = vrot.slane %v415_v44, %v622_v17  ;;  %v469_v63 = vrot.slane %v454_v52, %v622_v17 }
 0x113   :  { %v416_v50 = vcombine.low %v401_v46, %v408_v47  ;;  %v433_v51 = vcombine.low %v360_v49, %v375_v39  ;;  %v440_v55 = vrot.slane %v432_v48, %v622_v17 }
 0x115   :  { %v423_v53 = vrot.slane %v416_v50, %v622_v17  ;;  %v447_v56 = vrot.slane %v433_v51, %v622_v17 }
 0x117   :  { %v431_v58 = vcombine.low %v423_v53, %v430_v54  ;;  %v455_v60 = vcombine.low %v440_v55, %v447_v56 }
 0x119   :  { %v473_v61 = vsel %vm392_vm1, %v489_v57, %v431_v58  ;;  %v462_v62 = vrot.slane %v455_v60, %v622_v17 }
 0x11a   :  { %v476_v0 = vadd.f32 %v475_v59, %v473_v61 }
 0x11b   :  { %v470_v2 = vcombine.low %v462_v62, %v469_v63 }
 0x11c   :  { %479 = vst.msk [vmem:[%s765_s5] sm:$0x1f] %vm478_vm2, %v476_v0 }
 0x11d   :  { %v474_v3 = vsel %vm392_vm1, %v489_v57, %v470_v2 }
 0x11e   :  { %v477_v11 = vadd.f32 %v475_v59, %v474_v3 }
 0x120   :  { %480 = vst.msk [vmem:[%s765_s5 + $0x8] sm:$0x1f] %vm478_vm2, %v477_v11 }

// kernel: vision_to_llama_forward.7
= control target key start
LH: loop header
LB: loop body
LE: loop exit
PB: predicated region body
PF: predicated region fallthrough
CT: control target
= control target key end

     0   :  { %v28_v0 = vlaneseq  ;;  %v928_v2 = vmov 1966171168   ;;  %vm180_vm0 = vcmask 261120   ;;  %vm184_vm1 = vcmask 254976   ;;  %s1172_s0 = inlined_call_operand.vmem [shape: f32[2,5,32], index: 0, kind: input, shape index: {}]   ;;  %s1173_s3 = inlined_call_operand.vmem [shape: f32[32,64], index: 3, kind: input, shape index: {}]   ;;  %s1174_s1 = inlined_call_operand.vmem [shape: f32[1,32], index: 1, kind: input, shape index: {}]   ;;  %s1175_s2 = inlined_call_operand.vmem [shape: f32[1,32], index: 2, kind: input, shape index: {}]   ;;  %s1176_s4 = inlined_call_operand.vmem [shape: f32[1,64], index: 4, kind: input, shape index: {}]   ;;  %s1177_s5 = inlined_call_operand.vmem [shape: bf16[2,5,64], index: 5, kind: output, shape index: {}]  }
   0x1   :  { %v20_v1 = vld [vmem:[%s1172_s0] sm:$0x1f]  ;;  %v26_v3 = vunpack.c.l.s4 %v928_v2  ;;  %v21_v4 = vld [vmem:[%s1172_s0 + $0x8] sm:$0x1f]  ;;  %vm876_vm2 = vcmask 518144  }
   0x2   :  { %v965_v5 = vshrl.u32 %v28_v0, 7  ;;  %v24_v6 = vcombine.high %v20_v1, %v20_v1  ;;  %v63_v8 = vcombine.high %v21_v4, %v21_v4  ;;  %vm877_vm3 = vsmask.f32 2304 }
   0x3   :  { %v27_v7 = vunpack.c.0.s8 %v26_v3  ;;  %vm878_vm4 = vmand %vm876_vm2, %vm877_vm3 }
   0x4   :  { %v994_v42 = vsub.s32 0, %v965_v5  ;;  %v997_v43 = vsub.s32 1, %v965_v5  ;;  %v203_v44 = vsub.s32 2, %v965_v5  ;;  %v207_v45 = vsub.s32 3, %v965_v5 }
   0x5   :  { %v968_v9 = vsub.s32 %v27_v7, %v965_v5  ;;  %v211_v47 = vsub.s32 4, %v965_v5  ;;  %v215_v48 = vsub.s32 5, %v965_v5  ;;  %v219_v49 = vsub.s32 6, %v965_v5 }
   0x6   :  { %v223_v50 = vsub.s32 7, %v965_v5 }
   0x7   :  { %v31_v10 = vrot.slane %v20_v1, %v968_v9  ;;  %v38_v11 = vrot.slane %v24_v6, %v968_v9  ;;  %v70_v12 = vrot.slane %v21_v4, %v968_v9  ;;  %v77_v13 = vrot.slane %v63_v8, %v968_v9 }
   0x9   :  { %v39_v14 = vcombine.high %v31_v10, %v31_v10  ;;  %v46_v15 = vrot.slane %v31_v10, %v968_v9  ;;  %v53_v16 = vrot.slane %v38_v11, %v968_v9  ;;  %v78_v17 = vcombine.high %v70_v12, %v70_v12 }
   0xa   :  { %v85_v18 = vrot.slane %v70_v12, %v968_v9  ;;  %v980_v21 = vrot.slane %v77_v13, %v968_v9 }
   0xb   :  { %v60_v19 = vrot.slane %v39_v14, %v968_v9  ;;  %v99_v20 = vrot.slane %v78_v17, %v968_v9  ;;  %v61_v52 = vcombine.high %v46_v15, %v46_v15 }
   0xc   :  { %v100_v22 = vcombine.high %v85_v18, %v85_v18  ;;  %v116_v23 = vcombine.low %v53_v16, %v85_v18 }
   0xd   :  { %v114_v24 = vcombine.low %v46_v15, %v60_v19  ;;  %v889_v25 = vcombine.high %v46_v15, %v60_v19  ;;  %v101_v26 = vcombine.high %v99_v20, %v99_v20  ;;  %v62_v53 = vcombine.high %v60_v19, %v60_v19 }
   0xe   :  { %v117_v27 = vcombine.low %v99_v20, %v100_v22  ;;  %v138_v28 = vrot.slane %v116_v23, %v968_v9 }
   0xf   :  { %v124_v29 = vrot.slane %v114_v24, %v968_v9  ;;  %v131_v30 = vrot.slane %v889_v25, %v968_v9  ;;  %v163_v31 = vcombine.low %v101_v26, %v980_v21 }
  0x10   :  { %v145_v32 = vrot.slane %v117_v27, %v968_v9 }
  0x11   :  { %v146_v33 = vcombine.low %v124_v29, %v131_v30  ;;  %v170_v35 = vrot.slane %v163_v31, %v968_v9 }
  0x12   :  { %v147_v34 = vcombine.low %v138_v28, %v145_v32 }
  0x13   :  { %v154_v36 = vrot.slane %v146_v33, %v968_v9  ;;  %v177_v39 = vrot.slane %v170_v35, %v968_v9 }
  0x14   :  { %v161_v37 = vrot.slane %v147_v34, %v968_v9 }
  0x15   :  { %v185_v41 = vsel %vm184_vm1, %v177_v39, 0.0 }
  0x16   :  { %v162_v38 = vcombine.low %v154_v36, %v161_v37 }
  0x18   :  { %v181_v40 = vsel %vm180_vm0, %v162_v38, 0.0 }
  0x19   :  { %182 = vadd.xlane.f32.xlu0 %v181_v40 }
  0x1d   :  { %186 = vadd.xlane.f32.xlu0 %v185_v41 }
  0xa6   :  { %v183_v46 = vpop.xlane.xlu0 %182 }
  0xa7   :  { %v189_v51 = vmul.f32 0.03125, %v183_v46  ;;  %v557_v46 = vld [vmem:[%s1173_s3] sm:$0xff] }
  0xa9   :  { %v196_v54 = vrot.slane %v189_v51, %v994_v42  ;;  %v200_v55 = vrot.slane %v189_v51, %v997_v43  ;;  %v204_v56 = vrot.slane %v189_v51, %v203_v44  ;;  %v208_v57 = vrot.slane %v189_v51, %v207_v45 }
  0xaa   :  { %v187_v58 = vpop.xlane.xlu0 %186  ;;  %v212_v59 = vrot.slane %v189_v51, %v211_v47  ;;  %v216_v60 = vrot.slane %v189_v51, %v215_v48  ;;  %v220_v61 = vrot.slane %v189_v51, %v219_v49  ;;  %v224_v62 = vrot.slane %v189_v51, %v223_v50  ;;  %v558_v51 = vld [vmem:[%s1173_s3 + $0x8] sm:$0xff] }
  0xab   :  { %v190_v63 = vmul.f32 0.03125, %v187_v58  ;;  %v1019_v0 = vsub.f32 %v46_v15, %v196_v54  ;;  %v1021_v1 = vsub.f32 %v60_v19, %v200_v55  ;;  %v1023_v2 = vsub.f32 %v61_v52, %v204_v56  ;;  %v559_v52 = vld [vmem:[%s1173_s3 + $0x10] sm:$0xff]  ;;  %v560_v54 = vld [vmem:[%s1173_s3 + $0x18] sm:$0xff]  ;;  %v890_v56 = vld [vmem:[%s1174_s1] ss:$0 sm:$0xff] }
  0xac   :  { %v1025_v3 = vsub.f32 %v62_v53, %v208_v57  ;;  %v1027_v4 = vsub.f32 %v53_v16, %v212_v59  ;;  %v1029_v6 = vsub.f32 %v85_v18, %v216_v60  ;;  %v1031_v7 = vsub.f32 %v99_v20, %v220_v61  ;;  %v891_v57 = vld [vmem:[%s1175_s2] ss:$0 sm:$0xff] }
  0xad   :  { %v228_v8 = vrot.slane %v190_v63, %v994_v42  ;;  %v232_v10 = vrot.slane %v190_v63, %v997_v43  ;;  %v1035_v11 = vsub.f32 %v100_v22, %v224_v62  ;;  %v253_v12 = vmul.f32 %v1019_v0, %v1019_v0 }
  0xae   :  { %v254_v13 = vmul.f32 %v1021_v1, %v1021_v1  ;;  %v255_v14 = vmul.f32 %v1023_v2, %v1023_v2  ;;  %v256_v15 = vmul.f32 %v1025_v3, %v1025_v3  ;;  %v257_v16 = vmul.f32 %v1027_v4, %v1027_v4 }
  0xaf   :  { %v1047_v17 = vsub.f32 %v101_v26, %v228_v8  ;;  %v1050_v18 = vsub.f32 %v980_v21, %v232_v10  ;;  %v258_v19 = vmul.f32 %v1029_v6, %v1029_v6  ;;  %v259_v20 = vmul.f32 %v1031_v7, %v1031_v7 }
  0xb0   :  { %v260_v22 = vmul.f32 %v1035_v11, %v1035_v11  ;;  %v273_v23 = vcombine.low %v253_v12, %v254_v13  ;;  %v274_v24 = vcombine.low %v255_v14, %v256_v15  ;;  %v913_v53 = vpack.c.bf16 %v558_v51, %v557_v46 }
  0xb1   :  { %v261_v25 = vmul.f32 %v1047_v17, %v1047_v17  ;;  %v262_v26 = vmul.f32 %v1050_v18, %v1050_v18  ;;  %v275_v27 = vcombine.low %v257_v16, %v258_v19  ;;  %v917_v55 = vpack.c.bf16 %v560_v54, %v559_v52 }
  0xb2   :  { %v276_v21 = vcombine.low %v259_v20, %v260_v22  ;;  %v283_v28 = vrot.slane %v273_v23, %v968_v9  ;;  %v290_v29 = vrot.slane %v274_v24, %v968_v9  ;;  %914 = vmatprep.subr.bf16.mxu0 %v913_v53  ;;  %v418_v58 = vcombine.high %v890_v56, %v890_v56 }
  0xb3   :  { %v297_v30 = vrot.slane %v275_v27, %v968_v9  ;;  %v322_v31 = vcombine.low %v261_v25, %v262_v26  ;;  %916 = vmatpush3.bf16.msra.mxu0 %v913_v53  ;;  %v490_v59 = vcombine.high %v891_v57, %v891_v57  ;;  %v425_v62 = vrot.slane %v890_v56, %v968_v9 }
  0xb4   :  { %v304_v32 = vrot.slane %v276_v21, %v968_v9  ;;  %v305_v33 = vcombine.low %v283_v28, %v290_v29  ;;  %918 = vmatprep.subr.bf16.mxu0 %v917_v55  ;;  %v432_v63 = vrot.slane %v418_v58, %v968_v9  ;;  %v497_v10 = vrot.slane %v891_v57, %v968_v9 }
  0xb5   :  { %v329_v36 = vrot.slane %v322_v31, %v968_v9  ;;  %v504_v12 = vrot.slane %v490_v59, %v968_v9  ;;  %v433_v15 = vcombine.high %v425_v62, %v425_v62  ;;  %v441_v23 = vrot.slane %v425_v62, %v968_v9 }
  0xb6   :  { %v306_v34 = vcombine.low %v297_v30, %v304_v32  ;;  %v313_v35 = vrot.slane %v305_v33, %v968_v9  ;;  %v434_v16 = vcombine.high %v432_v63, %v432_v63  ;;  %v505_v20 = vcombine.high %v497_v10, %v497_v10 }
  0xb7   :  { %v336_v39 = vrot.slane %v329_v36, %v968_v9  ;;  %920 = vmatpush3.bf16.msra.mxu0 %v917_v55  ;;  %v506_v22 = vcombine.high %v504_v12, %v504_v12  ;;  %v448_v24 = vrot.slane %v432_v63, %v968_v9  ;;  %v455_v25 = vrot.slane %v433_v15, %v968_v9 }
  0xb8   :  { %v320_v37 = vrot.slane %v306_v34, %v968_v9  ;;  %v462_v26 = vrot.slane %v434_v16, %v968_v9  ;;  %v513_v27 = vrot.slane %v497_v10, %v968_v9  ;;  %v520_v21 = vrot.slane %v504_v12, %v968_v9 }
  0xb9   :  { %v342_v41 = vsel %vm184_vm1, %v336_v39, 0.0  ;;  %v527_v28 = vrot.slane %v505_v20, %v968_v9  ;;  %v534_v29 = vrot.slane %v506_v22, %v968_v9  ;;  %v463_v30 = vcombine.high %v441_v23, %v441_v23 }
  0xba   :  { %v321_v38 = vcombine.low %v313_v35, %v320_v37  ;;  %v464_v31 = vcombine.high %v448_v24, %v448_v24  ;;  %v465_v32 = vcombine.high %v455_v25, %v455_v25  ;;  %v466_v33 = vcombine.high %v462_v26, %v462_v26 }
  0xbb   :  { %v535_v35 = vcombine.high %v513_v27, %v513_v27  ;;  %v536_v36 = vcombine.high %v520_v21, %v520_v21  ;;  %v537_v37 = vcombine.high %v527_v28, %v527_v28 }
  0xbc   :  { %v339_v40 = vsel %vm180_vm0, %v321_v38, 0.0  ;;  %v538_v38 = vcombine.high %v534_v29, %v534_v29 }
  0xbd   :  { %340 = vadd.xlane.f32.xlu1 %v339_v40 }
  0xc1   :  { %343 = vadd.xlane.f32.xlu1 %v342_v41 }
 0x14a   :  { %v341_v60 = vpop.xlane.xlu1 %340 }
 0x14b   :  { %v345_v61 = vmul.f32 0.03125, %v341_v60 }
 0x14d   :  { %v347_v8 = vadd.f32 1e-12, %v345_v61 }
 0x14e   :  { %v344_v13 = vpop.xlane.xlu1 %343 }
 0x14f   :  { %924 = vrsqrt.f32 %v347_v8  ;;  %v346_v14 = vmul.f32 0.03125, %v344_v13 }
 0x151   :  { %v348_v19 = vadd.f32 1e-12, %v346_v14 }
 0x153   :  { %926 = vrsqrt.f32 %v348_v19 }
 0x159   :  { %v925_v34 = vpop.eup %924 }
 0x15a   :  { %v356_v39 = vrot.slane %v925_v34, %v994_v42  ;;  %v360_v40 = vrot.slane %v925_v34, %v997_v43  ;;  %v364_v41 = vrot.slane %v925_v34, %v203_v44  ;;  %v368_v46 = vrot.slane %v925_v34, %v207_v45 }
 0x15b   :  { %v372_v51 = vrot.slane %v925_v34, %v211_v47  ;;  %v376_v52 = vrot.slane %v925_v34, %v215_v48  ;;  %v380_v53 = vrot.slane %v925_v34, %v219_v49  ;;  %v384_v54 = vrot.slane %v925_v34, %v223_v50 }
 0x15c   :  { %v403_v55 = vmul.f32 %v356_v39, %v1019_v0  ;;  %v404_v56 = vmul.f32 %v360_v40, %v1021_v1  ;;  %v405_v44 = vmul.f32 %v364_v41, %v1023_v2  ;;  %v406_v45 = vmul.f32 %v368_v46, %v1025_v3 }
 0x15d   :  { %v927_v57 = vpop.eup %926  ;;  %v407_v47 = vmul.f32 %v372_v51, %v1027_v4  ;;  %v408_v58 = vmul.f32 %v376_v52, %v1029_v6  ;;  %v409_v48 = vmul.f32 %v380_v53, %v1031_v7  ;;  %v410_v49 = vmul.f32 %v384_v54, %v1035_v11 }
 0x15e   :  { %v388_v5 = vrot.slane %v927_v57, %v994_v42  ;;  %v392_v50 = vrot.slane %v927_v57, %v997_v43  ;;  %v475_v0 = vmul.f32 %v441_v23, %v403_v55  ;;  %v476_v59 = vmul.f32 %v455_v25, %v404_v56 }
 0x15f   :  { %v477_v1 = vmul.f32 %v463_v30, %v405_v44  ;;  %v478_v60 = vmul.f32 %v465_v32, %v406_v45  ;;  %v479_v2 = vmul.f32 %v448_v24, %v407_v47  ;;  %v480_v61 = vmul.f32 %v462_v26, %v408_v58 }
 0x160   :  { %v411_v3 = vmul.f32 %v388_v5, %v1047_v17  ;;  %v412_v4 = vmul.f32 %v392_v50, %v1050_v18  ;;  %v481_v62 = vmul.f32 %v464_v31, %v409_v48  ;;  %v482_v6 = vmul.f32 %v466_v33, %v410_v49 }
 0x161   :  { %v547_v63 = vadd.f32 %v513_v27, %v475_v0  ;;  %v548_v7 = vadd.f32 %v527_v28, %v476_v59  ;;  %v549_v8 = vadd.f32 %v535_v35, %v477_v1  ;;  %v550_v11 = vadd.f32 %v537_v37, %v478_v60 }
 0x162   :  { %v551_v10 = vadd.f32 %v520_v21, %v479_v2  ;;  %v552_v42 = vadd.f32 %v534_v29, %v480_v61  ;;  %v553_v12 = vadd.f32 %v536_v36, %v481_v62  ;;  %v554_v43 = vadd.f32 %v538_v38, %v482_v6 }
 0x163   :  { %v578_v13 = vcombine.low %v547_v63, %v548_v7  ;;  %v579_v14 = vcombine.low %v549_v8, %v550_v11  ;;  %v483_v15 = vmul.f32 %v441_v23, %v411_v3  ;;  %v484_v16 = vmul.f32 %v455_v25, %v412_v4  ;;  %v879_v63 = vld [vmem:[%s1177_s5] sm:$0x7] }
 0x164   :  { %v580_v19 = vcombine.low %v551_v10, %v552_v42  ;;  %v581_v20 = vcombine.low %v553_v12, %v554_v43  ;;  %v882_v12 = vld [vmem:[%s1177_s5 + $0x4] sm:$0x7] }
 0x165   :  { %v588_v17 = vrot.slane %v578_v13, %v968_v9  ;;  %v595_v18 = vrot.slane %v579_v14, %v968_v9  ;;  %v555_v22 = vadd.f32 %v513_v27, %v483_v15  ;;  %v556_v24 = vadd.f32 %v527_v28, %v484_v16  ;;  %v892_v27 = vld [vmem:[%s1176_s4] ss:$0 sm:$0xff] }
 0x166   :  { %v602_v26 = vrot.slane %v580_v19, %v968_v9  ;;  %v609_v30 = vrot.slane %v581_v20, %v968_v9 }
 0x167   :  { %v610_v21 = vcombine.low %v588_v17, %v595_v18  ;;  %v627_v29 = vcombine.low %v555_v22, %v556_v24 }
 0x168   :  { %v611_v31 = vcombine.low %v602_v26, %v609_v30 }
 0x169   :  { %v618_v32 = vrot.slane %v610_v21, %v968_v9  ;;  %v634_v23 = vrot.slane %v627_v29, %v968_v9 }
 0x16a   :  { %v625_v25 = vrot.slane %v611_v31, %v968_v9 }
 0x16b   :  { %v641_v33 = vrot.slane %v634_v23, %v968_v9 }
 0x16c   :  { %v626_v34 = vcombine.low %v618_v32, %v625_v25 }
 0x16e   :  { %910 = vmatprep.mubr.msk.f32.mxu0 %vm180_vm0, %v626_v34 }
 0x16f   :  { %911 = vmatmul.mubr.msk.f32.vlgmr.msra.gmra.mrb[0].mxu0 %vm180_vm0, %v641_v33 }
 0x242   :  { %v912_v28 = vpop.f32.mrb[0].mxu0 }
 0x243   :  { %v718_v35 = vadd.f32 %v912_v28, %v892_v27  ;;  %v712_v36 = vpop.f32.mrb[1].mxu0 }
 0x244   :  { %v713_v37 = vadd.f32 %v892_v27, %v712_v36 }
 0x245   :  { %v778_v38 = vrot.slane %v718_v35, %v968_v9 }
 0x246   :  { %v723_v39 = vcombine.high %v713_v37, %v713_v37  ;;  %v730_v40 = vrot.slane %v713_v37, %v968_v9 }
 0x247   :  { %v779_v51 = vcombine.high %v778_v38, %v778_v38  ;;  %v786_v47 = vrot.slane %v778_v38, %v968_v9 }
 0x248   :  { %v737_v41 = vrot.slane %v723_v39, %v968_v9  ;;  %v738_v46 = vcombine.high %v730_v40, %v730_v40  ;;  %v746_v53 = vrot.slane %v730_v40, %v968_v9 }
 0x249   :  { %v793_v58 = vrot.slane %v779_v51, %v968_v9 }
 0x24a   :  { %v739_v52 = vcombine.high %v737_v41, %v737_v41  ;;  %v753_v54 = vrot.slane %v737_v41, %v968_v9  ;;  %v760_v55 = vrot.slane %v738_v46, %v968_v9 }
 0x24b   :  { %v855_v60 = vrot.slane %v793_v58, %v968_v9 }
 0x24c   :  { %v767_v56 = vrot.slane %v739_v52, %v968_v9  ;;  %v769_v44 = vcombine.high %v753_v54, %v753_v54  ;;  %v794_v45 = vcombine.low %v746_v53, %v760_v55  ;;  %v895_v57 = vcombine.high %v746_v53, %v760_v55 }
 0x24d   :  { %v816_v48 = vrot.slane %v753_v54, %v968_v9  ;;  %v870_v7 = vrot.slane %v855_v60, %v968_v9 }
 0x24e   :  { %v771_v49 = vcombine.high %v767_v56, %v767_v56  ;;  %v802_v5 = vrot.slane %v794_v45, %v968_v9  ;;  %v809_v50 = vrot.slane %v895_v57, %v968_v9  ;;  %v833_v0 = vcombine.low %v767_v56, %v769_v44 }
 0x24f   :  { %v831_v61 = vrot.slane %v816_v48, %v968_v9 }
 0x250   :  { %v817_v59 = vcombine.low %v802_v5, %v809_v50  ;;  %v834_v1 = vcombine.low %v771_v49, %v786_v47  ;;  %v841_v3 = vrot.slane %v833_v0, %v968_v9 }
 0x252   :  { %v824_v2 = vrot.slane %v817_v59, %v968_v9  ;;  %v848_v4 = vrot.slane %v834_v1, %v968_v9 }
 0x254   :  { %v832_v62 = vcombine.low %v824_v2, %v831_v61  ;;  %v856_v6 = vcombine.low %v841_v3, %v848_v4 }
 0x256   :  { %v863_v8 = vrot.slane %v856_v6, %v968_v9  ;;  %v874_v11 = vpack.c.bf16 %v832_v62, %v832_v62 }
 0x258   :  { %v871_v10 = vcombine.low %v863_v8, %v870_v7  ;;  %v880_v42 = vsel %vm878_vm4, %v874_v11, %v879_v63 }
 0x259   :  { %881 = vst [vmem:[%s1177_s5] sm:$0x7] %v880_v42 }
 0x25a   :  { %v875_v43 = vpack.c.bf16 %v871_v10, %v871_v10 }
 0x25c   :  { %v883_v13 = vsel %vm878_vm4, %v875_v43, %v882_v12 }
 0x25d   :  { %884 = vst [vmem:[%s1177_s5 + $0x4] sm:$0x7] %v883_v13 }

// kernel: vision_to_llama_forward.9
= control target key start
LH: loop header
LB: loop body
LE: loop exit
PB: predicated region body
PF: predicated region fallthrough
CT: control target
= control target key end

     0   :  { %v30_v2 = vlaneseq  ;;  %v1137_v5 = vmov 1966171168   ;;  %s1452_s0 = inlined_call_operand.vmem [shape: bf16[2,5,64], index: 0, kind: input, shape index: {}]   ;;  %s1453_s1 = inlined_call_operand.vmem [shape: bf16[1,64], index: 1, kind: input, shape index: {}]   ;;  %s1454_s2 = inlined_call_operand.vmem [shape: bf16[64,64], index: 2, kind: input, shape index: {}]   ;;  %s1455_s3 = inlined_call_operand.vmem [shape: s32[2,4,1], index: 3, kind: input, shape index: {}]   ;;  %s1456_s4 = inlined_call_operand.hbm [shape: f32[1,1], index: 4, kind: output, shape index: {0}]   ;;  %s1457_s5 = inlined_call_operand.vmem [shape: f32[2,5,64], index: 5, kind: output, shape index: {1}]  }
   0x1   :  { %v20_v0 = vld [vmem:[%s1452_s0] sm:$0x7]  ;;  %v21_v1 = vld [vmem:[%s1452_s0 + $0x4] sm:$0x7]  ;;  %v28_v6 = vunpack.c.l.s4 %v1137_v5 }
   0x2   :  { %v22_v3 = vunpack.c.l.bf16 %v20_v0  ;;  %v23_v4 = vunpack.c.l.bf16 %v21_v1 }
   0x3   :  { %11 = vsyncpa [#allocation3], 0  ;;  %v1178_v7 = vshrl.u32 %v30_v2, 7  ;;  %v29_v9 = vunpack.c.0.s8 %v28_v6  ;;  %vm202_vm0 = vcmask 523264   ;;  %vm206_vm1 = vcmask 517120   ;;  %v1018_v56 = vld [vmem:[%s1454_s2] sm:$0xff]  }
   0x4   :  { %v26_v8 = vcombine.high %v22_v3, %v22_v3  ;;  %v65_v10 = vcombine.high %v23_v4, %v23_v4  ;;  %1066 = vmatprep.subr.bf16.mxu0 %v1018_v56  ;;  %v1033_v57 = vld [vmem:[%s1454_s2 + $0x8] sm:$0xff]   ;;  %v1034_v58 = vld [vmem:[%s1454_s2 + $0x10] sm:$0xff]   ;;  %v1035_v59 = vld [vmem:[%s1454_s2 + $0x18] sm:$0xff]   ;;  %vm688_vm2 = vcmask 519168   ;;  %vm681_vm3 = vcmask 520192  }
   0x5   :  { %v1181_v11 = vsub.s32 %v29_v9, %v1178_v7  ;;  %1068 = vmatpush3.bf16.msra.mxu0 %v1018_v56  ;;  %v114_v60 = vld [vmem:[%s1453_s1] sm:$0x1]  ;;  %v1266_v61 = vsub.s32 0, %v1178_v7  ;;  %vm969_vm8 = vcmask 7168   ;;  %vm992_vm9 = vcmask 0  }
   0x6   :  { %1070 = vmatprep.subr.bf16.mxu0 %v1033_v57  ;;  %v115_v62 = vunpack.c.l.bf16 %v114_v60 }
   0x7   :  { %v33_v12 = vrot.slane %v22_v3, %v1181_v11  ;;  %v40_v13 = vrot.slane %v26_v8, %v1181_v11  ;;  %v72_v14 = vrot.slane %v23_v4, %v1181_v11  ;;  %v79_v15 = vrot.slane %v65_v10, %v1181_v11 }
   0x8   :  { %v282_v63 = vrot.slane %v115_v62, %v1266_v61 }
   0x9   :  { %v41_v16 = vcombine.high %v33_v12, %v33_v12  ;;  %v1188_v17 = vrot.slane %v33_v12, %v1181_v11  ;;  %v1191_v18 = vrot.slane %v40_v13, %v1181_v11  ;;  %v80_v19 = vcombine.high %v72_v14, %v72_v14  ;;  %1072 = vmatpush3.bf16.msra.mxu0 %v1033_v57 }
   0xa   :  { %v1194_v20 = vrot.slane %v72_v14, %v1181_v11  ;;  %v1197_v21 = vrot.slane %v79_v15, %v1181_v11  ;;  %1074 = vmatprep.subr.bf16.mxu0 %v1034_v58  ;;  %v284_v0 = vcombine.high %v282_v63, %v282_v63  ;;  %v291_v5 = vrot.slane %v282_v63, %v1181_v11 }
   0xb   :  { %v1200_v22 = vrot.slane %v41_v16, %v1181_v11  ;;  %v1204_v23 = vcombine.high %v1188_v17, %v1188_v17  ;;  %v1207_v24 = vrot.slane %v80_v19, %v1181_v11  ;;  %v116_v25 = vmul.f32 %v1188_v17, %v1188_v17 }
   0xc   :  { %v1213_v26 = vcombine.high %v1194_v20, %v1194_v20  ;;  %v120_v27 = vmul.f32 %v1191_v18, %v1191_v18  ;;  %v121_v28 = vmul.f32 %v1194_v20, %v1194_v20  ;;  %v125_v36 = vmul.f32 %v1197_v21, %v1197_v21 }
   0xd   :  { %v1221_v29 = vcombine.high %v1200_v22, %v1200_v22  ;;  %v117_v30 = vmul.f32 %v1200_v22, %v1200_v22  ;;  %v118_v31 = vmul.f32 %v1204_v23, %v1204_v23  ;;  %v122_v32 = vmul.f32 %v1207_v24, %v1207_v24  ;;  %1076 = vmatpush3.bf16.msra.mxu0 %v1034_v58 }
   0xe   :  { %v123_v33 = vmul.f32 %v1213_v26, %v1213_v26  ;;  %v138_v34 = vcombine.low %v120_v27, %v121_v28  ;;  %v1233_v35 = vcombine.high %v1207_v24, %v1207_v24  ;;  %1078 = vmatprep.subr.bf16.mxu0 %v1035_v59  ;;  %v298_v6 = vrot.slane %v284_v0, %v1181_v11 }
   0xf   :  { %v119_v37 = vmul.f32 %v1221_v29, %v1221_v29  ;;  %v136_v38 = vcombine.low %v116_v25, %v117_v30  ;;  %v299_v12 = vcombine.high %v291_v5, %v291_v5  ;;  %v307_v14 = vrot.slane %v291_v5, %v1181_v11 }
  0x10   :  { %v139_v39 = vcombine.low %v122_v32, %v123_v33  ;;  %v160_v40 = vrot.slane %v138_v34, %v1181_v11  ;;  %v124_v41 = vmul.f32 %v1233_v35, %v1233_v35  ;;  %v300_v13 = vcombine.high %v298_v6, %v298_v6 }
  0x11   :  { %v137_v42 = vcombine.low %v118_v31, %v119_v37  ;;  %v146_v43 = vrot.slane %v136_v38, %v1181_v11  ;;  %1080 = vmatpush3.bf16.msra.mxu0 %v1035_v59  ;;  %v314_v15 = vrot.slane %v298_v6, %v1181_v11  ;;  %v321_v16 = vrot.slane %v299_v12, %v1181_v11 }
  0x12   :  { %v167_v44 = vrot.slane %v139_v39, %v1181_v11  ;;  %v185_v45 = vcombine.low %v124_v41, %v125_v36  ;;  %v328_v19 = vrot.slane %v300_v13, %v1181_v11  ;;  %v1276_v25 = vsub.s32 1, %v1178_v7 }
  0x13   :  { %v153_v46 = vrot.slane %v137_v42, %v1181_v11  ;;  %v1279_v27 = vsub.s32 2, %v1178_v7  ;;  %v1282_v28 = vsub.s32 3, %v1178_v7  ;;  %v237_v30 = vsub.s32 4, %v1178_v7 }
  0x14   :  { %v169_v47 = vcombine.low %v160_v40, %v167_v44  ;;  %v192_v49 = vrot.slane %v185_v45, %v1181_v11  ;;  %v241_v31 = vsub.s32 5, %v1178_v7  ;;  %v245_v32 = vsub.s32 6, %v1178_v7 }
  0x15   :  { %v168_v48 = vcombine.low %v146_v43, %v153_v46  ;;  %v249_v33 = vsub.s32 7, %v1178_v7  ;;  %v329_v36 = vcombine.high %v307_v14, %v307_v14  ;;  %v330_v37 = vcombine.high %v314_v15, %v314_v15 }
  0x16   :  { %v183_v50 = vrot.slane %v169_v47, %v1181_v11  ;;  %v199_v53 = vrot.slane %v192_v49, %v1181_v11  ;;  %v331_v38 = vcombine.high %v321_v16, %v321_v16  ;;  %v332_v39 = vcombine.high %v328_v19, %v328_v19 }
  0x17   :  { %v176_v51 = vrot.slane %v168_v48, %v1181_v11 }
  0x18   :  { %v207_v55 = vsel %vm206_vm1, %v199_v53, 0.0 }
  0x19   :  { %v184_v52 = vcombine.low %v176_v51, %v183_v50 }
  0x1b   :  { %v203_v54 = vsel %vm202_vm0, %v184_v52, 0.0 }
  0x1c   :  { %204 = vadd.xlane.f32.xlu0 %v203_v54 }
  0x20   :  { %208 = vadd.xlane.f32.xlu0 %v207_v55 }
  0xa9   :  { %v205_v1 = vpop.xlane.xlu0 %204 }
  0xaa   :  { %v211_v3 = vmul.f32 0.015625, %v205_v1 }
  0xac   :  { %v213_v4 = vadd.f32 1e-06, %v211_v3 }
  0xad   :  { %v209_v8 = vpop.xlane.xlu0 %208 }
  0xae   :  { %1087 = vrsqrt.f32 %v213_v4  ;;  %v212_v9 = vmul.f32 0.015625, %v209_v8 }
  0xb0   :  { %v214_v10 = vadd.f32 1e-06, %v212_v9 }
  0xb2   :  { %1089 = vrsqrt.f32 %v214_v10 }
  0xb8   :  { %v1088_v34 = vpop.eup %1087 }
  0xb9   :  { %v222_v40 = vrot.slane %v1088_v34, %v1266_v61  ;;  %v226_v41 = vrot.slane %v1088_v34, %v1276_v25  ;;  %v230_v42 = vrot.slane %v1088_v34, %v1279_v27  ;;  %v234_v43 = vrot.slane %v1088_v34, %v1282_v28 }
  0xba   :  { %v238_v44 = vrot.slane %v1088_v34, %v237_v30  ;;  %v242_v45 = vrot.slane %v1088_v34, %v241_v31  ;;  %v246_v46 = vrot.slane %v1088_v34, %v245_v32  ;;  %v250_v47 = vrot.slane %v1088_v34, %v249_v33 }
  0xbb   :  { %v269_v48 = vmul.f32 %v222_v40, %v1188_v17  ;;  %v270_v7 = vmul.f32 %v226_v41, %v1200_v22  ;;  %v271_v49 = vmul.f32 %v230_v42, %v1204_v23  ;;  %v272_v50 = vmul.f32 %v234_v43, %v1221_v29 }
  0xbc   :  { %v1090_v51 = vpop.eup %1089  ;;  %v273_v52 = vmul.f32 %v238_v44, %v1191_v18  ;;  %v274_v53 = vmul.f32 %v242_v45, %v1194_v20  ;;  %v275_v54 = vmul.f32 %v246_v46, %v1207_v24  ;;  %v276_v55 = vmul.f32 %v250_v47, %v1213_v26 }
  0xbd   :  { %v254_v56 = vrot.slane %v1090_v51, %v1266_v61  ;;  %v258_v57 = vrot.slane %v1090_v51, %v1276_v25  ;;  %v341_v17 = vmul.f32 %v307_v14, %v269_v48  ;;  %v342_v58 = vmul.f32 %v321_v16, %v270_v7 }
  0xbe   :  { %v343_v22 = vmul.f32 %v329_v36, %v271_v49  ;;  %v344_v59 = vmul.f32 %v331_v38, %v272_v50  ;;  %v345_v23 = vmul.f32 %v314_v15, %v273_v52  ;;  %v346_v60 = vmul.f32 %v328_v19, %v274_v53 }
  0xbf   :  { %v277_v29 = vmul.f32 %v254_v56, %v1233_v35  ;;  %v278_v18 = vmul.f32 %v258_v57, %v1197_v21  ;;  %v347_v62 = vmul.f32 %v330_v37, %v275_v54  ;;  %v348_v20 = vmul.f32 %v332_v39, %v276_v55 }
  0xc0   :  { %v377_v63 = vcombine.low %v341_v17, %v342_v58  ;;  %v378_v24 = vcombine.low %v343_v22, %v344_v59  ;;  %v379_v0 = vcombine.low %v345_v23, %v346_v60 }
  0xc1   :  { %v380_v26 = vcombine.low %v347_v62, %v348_v20  ;;  %v349_v1 = vmul.f32 %v307_v14, %v277_v29  ;;  %v350_v3 = vmul.f32 %v321_v16, %v278_v18  ;;  %v1138_v18 = vmov 0  }
  0xc2   :  { %v387_v4 = vrot.slane %v377_v63, %v1181_v11  ;;  %v394_v5 = vrot.slane %v378_v24, %v1181_v11  ;;  %v401_v6 = vrot.slane %v379_v0, %v1181_v11  ;;  %1085 = vset.pattern.permute.xlu0 %v1138_v18  ;;  %1086 = vset.pattern.permute.xlu1 %v1138_v18  ;;  %v684_v18 = vld [vmem:[%s1455_s3] sm:$0xf] }
  0xc3   :  { %v408_v8 = vrot.slane %v380_v26, %v1181_v11  ;;  %v426_v9 = vcombine.low %v349_v1, %v350_v3  ;;  %vm957_vm6 = vcmp.ge.s32.totalorder %v684_v18, 0 }
  0xc4   :  { %v409_v35 = vcombine.low %v387_v4, %v394_v5 }
  0xc5   :  { %v410_v10 = vcombine.low %v401_v6, %v408_v8  ;;  %v433_v21 = vrot.slane %v426_v9, %v1181_v11 }
  0xc6   :  { %v417_v12 = vrot.slane %v409_v35, %v1181_v11 }
  0xc7   :  { %v424_v13 = vrot.slane %v410_v10, %v1181_v11  ;;  %v440_v14 = vrot.slane %v433_v21, %v1181_v11 }
  0xc9   :  { %v425_v15 = vcombine.low %v417_v12, %v424_v13 }
  0xcb   :  { %1062 = vmatprep.mubr.msk.f32.mxu0 %vm202_vm0, %v425_v15 }
  0xcc   :  { %1063 = vmatmul.mubr.msk.f32.vlgmr.msra.gmra.mrb[0].mxu0 %vm202_vm0, %v440_v14 }
 0x19f   :  { %v1064_v16 = vpop.f32.mrb[0].mxu0 }
 0x1a0   :  { %v577_v19 = vrot.slane %v1064_v16, %v1181_v11  ;;  %v511_v30 = vpop.f32.mrb[1].mxu0 }
 0x1a1   :  { %v522_v31 = vcombine.high %v511_v30, %v511_v30  ;;  %v529_v32 = vrot.slane %v511_v30, %v1181_v11 }
 0x1a2   :  { %v578_v36 = vcombine.high %v577_v19, %v577_v19  ;;  %v1332_v44 = vrot.slane %v577_v19, %v1181_v11 }
 0x1a3   :  { %v536_v33 = vrot.slane %v522_v31, %v1181_v11  ;;  %v537_v34 = vcombine.high %v529_v32, %v529_v32  ;;  %v1318_v38 = vrot.slane %v529_v32, %v1181_v11 }
 0x1a4   :  { %v592_v46 = vrot.slane %v578_v36, %v1181_v11 }
 0x1a5   :  { %v538_v37 = vcombine.high %v536_v33, %v536_v33  ;;  %v552_v39 = vrot.slane %v536_v33, %v1181_v11  ;;  %v1322_v40 = vrot.slane %v537_v34, %v1181_v11  ;;  %v1365_v62 = vcombine.high %v1318_v38, %v1318_v38 }
 0x1a6   :  { %v662_v53 = vrot.slane %v592_v46, %v1181_v11 }
 0x1a7   :  { %v1325_v41 = vrot.slane %v538_v37, %v1181_v11  ;;  %v1327_v42 = vcombine.high %v552_v39, %v552_v39  ;;  %v601_v43 = vcombine.low %v1318_v38, %v1322_v40  ;;  %v1014_v45 = vcombine.high %v1318_v38, %v1322_v40 }
 0x1a8   :  { %v623_v49 = vrot.slane %v552_v39, %v1181_v11  ;;  %v677_v23 = vrot.slane %v662_v53, %v1181_v11  ;;  %v1371_v63 = vcombine.high %v1322_v40, %v1322_v40 }
 0x1a9   :  { %v609_v47 = vrot.slane %v601_v43, %v1181_v11  ;;  %v1340_v48 = vcombine.high %v1325_v41, %v1325_v41  ;;  %v640_v7 = vcombine.low %v1325_v41, %v1327_v42  ;;  %v616_v50 = vrot.slane %v1014_v45, %v1181_v11 }
 0x1aa   :  { %v638_v57 = vrot.slane %v623_v49, %v1181_v11 }
 0x1ab   :  { %v641_v51 = vcombine.low %v1340_v48, %v1332_v44  ;;  %v624_v52 = vcombine.low %v609_v47, %v616_v50  ;;  %v648_v54 = vrot.slane %v640_v7, %v1181_v11 }
 0x1ad   :  { %v655_v55 = vrot.slane %v641_v51, %v1181_v11  ;;  %v631_v56 = vrot.slane %v624_v52, %v1181_v11 }
 0x1af   :  { %v663_v17 = vcombine.low %v648_v54, %v655_v55  ;;  %v689_v58 = vsel %vm688_vm2, %v631_v56, -inf  ;;  %v639_v22 = vcombine.low %v631_v56, %v638_v57 }
 0x1b0   :  { %690 = vmax.xlane.f32.xlu1 %v689_v58 }
 0x1b1   :  { %v670_v59 = vrot.slane %v663_v17, %v1181_v11  ;;  %682 = vst.msk [vmem:[%s1457_s5] sm:$0x1f] %vm681_vm3, %v639_v22 }
 0x1b3   :  { %v692_v60 = vsel %vm688_vm2, %v670_v59, -inf  ;;  %v678_v29 = vcombine.low %v670_v59, %v677_v23 }
 0x1b4   :  { %693 = vmax.xlane.f32.xlu1 %v692_v60 }
 0x1b5   :  { %683 = vst.msk [vmem:[%s1457_s5 + $0x8] sm:$0x1f] %vm681_vm3, %v678_v29  ;;  %v685_v29 = vld [vmem:[%s1455_s3 + $0x4] sm:$0xf]  ;;  %s1140_s3 = smov [#allocation2]  }
 0x1b6   :  { %vm958_vm7 = vcmp.ge.s32.totalorder %v685_v29, 0  ;;  %s1000_s11 = sshll.u32 %s1140_s3, 4  ;;  %s1001_s11 = int_to_ptr.vmem [resolvable:$true] %s1000_s11 }
 0x1b7   :  { %s1113_s12 = scalar_lea.vmem %s1001_s11, 16  ;;  %s1117_s13 = scalar_lea.vmem %s1001_s11, 32 }
 0x1b8   :  { %p1114_p0 = scmp.ne.s32.totalorder %s1001_s11, %s1113_s12  ;;  %p1118_p1 = scmp.lt.s32.totalorder %s1001_s11, %s1001_s11 }
 0x1b9   :  { %p1119_p2 = scmp.lt.s32.totalorder %s1117_s13, %s1113_s12 }
 0x1bb   :  { %p1120_p3 = por %p1119_p2, %p1118_p1 }
 0x1bd   :  { %p1121_p4 = pnand %p1120_p3, %p1114_p0 }
 0x23d   :  { %v1367_v20 = vpop.xlane.xlu1 %690 }
 0x23e   :  { %v700_v24 = vrot.slane %v1367_v20, %v1266_v61  ;;  %v704_v0 = vrot.slane %v1367_v20, %v1276_v25  ;;  %v708_v26 = vrot.slane %v1367_v20, %v1279_v27  ;;  %v712_v1 = vrot.slane %v1367_v20, %v1282_v28 }
 0x240   :  { %v737_v3 = vsub.f32 %v1318_v38, %v700_v24  ;;  %v738_v4 = vsub.f32 %v1322_v40, %v704_v0  ;;  %v739_v5 = vsub.f32 %v1365_v62, %v708_v26  ;;  %v740_v6 = vsub.f32 %v1371_v63, %v712_v1 }
 0x241   :  { %v1385_v8 = vpop.xlane.xlu1 %693 }
 0x242   :  { %v745_v9 = vmul.f32 1.442695, %v737_v3  ;;  %v747_v35 = vmul.f32 1.442695, %v738_v4  ;;  %v749_v10 = vmul.f32 1.442695, %v739_v5  ;;  %v716_v21 = vrot.slane %v1385_v8, %v1266_v61 }
 0x243   :  { %v751_v12 = vmul.f32 1.442695, %v740_v6  ;;  %v720_v13 = vrot.slane %v1385_v8, %v1276_v25  ;;  %v724_v14 = vrot.slane %v1385_v8, %v1279_v27  ;;  %v728_v15 = vrot.slane %v1385_v8, %v1282_v28 }
 0x244   :  { %1091 = vpow2.f32 %v745_v9  ;;  %v741_v16 = vsub.f32 %v1325_v41, %v716_v21 }
 0x245   :  { %1093 = vpow2.f32 %v747_v35  ;;  %v742_v19 = vsub.f32 %v1327_v42, %v720_v13  ;;  %v743_v30 = vsub.f32 %v1340_v48, %v724_v14  ;;  %v744_v31 = vsub.f32 %v1332_v44, %v728_v15 }
 0x246   :  { %1095 = vpow2.f32 %v749_v10  ;;  %v753_v32 = vmul.f32 1.442695, %v741_v16  ;;  %v882_v15 = vand.u32 127, %v30_v2 }
 0x247   :  { %1097 = vpow2.f32 %v751_v12  ;;  %v755_v33 = vmul.f32 1.442695, %v742_v19  ;;  %v757_v34 = vmul.f32 1.442695, %v743_v30  ;;  %v759_v36 = vmul.f32 1.442695, %v744_v31 }
 0x248   :  { %1099 = vpow2.f32 %v753_v32 }
 0x249   :  { %1101 = vpow2.f32 %v755_v33 }
 0x24a   :  { %1103 = vpow2.f32 %v757_v34 }
 0x24b   :  { %1105 = vpow2.f32 %v759_v36 }
 0x24e   :  { %v1092_v37 = vpop.eup %1091 }
 0x24f   :  { %v1094_v39 = vpop.eup %1093 }
 0x250   :  { %v1096_v43 = vpop.eup %1095  ;;  %v769_v45 = vcombine.low %v1092_v37, %v1094_v39 }
 0x251   :  { %v1098_v46 = vpop.eup %1097 }
 0x252   :  { %v1100_v47 = vpop.eup %1099  ;;  %v770_v7 = vcombine.low %v1096_v43, %v1098_v46  ;;  %v777_v49 = vrot.slane %v769_v45, %v1181_v11  ;;  %v1139_v46 = vmov 0.0  }
 0x253   :  { %v1102_v50 = vpop.eup %1101 }
 0x254   :  { %v1104_v51 = vpop.eup %1103  ;;  %v784_v52 = vrot.slane %v770_v7, %v1181_v11  ;;  %v793_v53 = vcombine.low %v1100_v47, %v1102_v50  ;;  %v1015_v47 = vsel %vm957_vm6, 1.0, %v1139_v46  ;;  %v1016_v7 = vsel %vm958_vm7, 1.0, %v1139_v46 }
 0x255   :  { %v1106_v54 = vpop.eup %1105 }
 0x256   :  { %v785_v55 = vcombine.low %v777_v49, %v784_v52  ;;  %v794_v56 = vcombine.low %v1104_v51, %v1106_v54  ;;  %v801_v57 = vrot.slane %v793_v53, %v1181_v11  ;;  %v979_v49 = vcombine.low %v1015_v47, %v1016_v7 }
 0x258   :  { %v792_v17 = vrot.slane %v785_v55, %v1181_v11  ;;  %v808_v58 = vrot.slane %v794_v56, %v1181_v11  ;;  %v981_v50 = vsel %vm969_vm8, %v979_v49, 0.0 }
 0x259   :  { %v982_v51 = vrot.slane %v981_v50, 4 }
 0x25a   :  { %v819_v22 = vsel %vm688_vm2, %v792_v17, 0.0  ;;  %v809_v59 = vcombine.low %v801_v57, %v808_v58 }
 0x25b   :  { %820 = vadd.xlane.f32.xlu0 %v819_v22  ;;  %v983_v52 = vadd.f32 %v982_v51, %v981_v50 }
 0x25c   :  { %v816_v23 = vrot.slane %v809_v59, %v1181_v11 }
 0x25d   :  { %v984_v53 = vrot.slane %v983_v52, 2 }
 0x25e   :  { %v822_v60 = vsel %vm688_vm2, %v816_v23, 0.0 }
 0x25f   :  { %823 = vadd.xlane.f32.xlu1 %v822_v60  ;;  %v985_v54 = vadd.f32 %v984_v53, %v983_v52 }
 0x261   :  { %v986_v55 = vrot.slane %v985_v54, 1 }
 0x263   :  { %v987_v57 = vadd.f32 %v986_v55, %v985_v54 }
 0x265   :  { %v989_v22 = vmax.f32 %v987_v57, 1.0 }
 0x270   :  { %887 = vperm.xlu1 %1086, %v685_v29  }
 0x271   :  { %884 = vperm.xlu0 %1085, %v684_v18  }
 0x2e8   :  { %v821_v24 = vpop.xlane.xlu0 %820 }
 0x2e9   :  { %1107 = vlog2.f32 %v821_v24 }
 0x2ec   :  { %v824_v0 = vpop.xlane.xlu1 %823 }
 0x2ed   :  { %1109 = vlog2.f32 %v824_v0 }
 0x2ee   :  { %1111 = vrcp.f32 %v989_v22 }
 0x2f0   :  { %v885_v33 = vpop.permute.xlu0 %884 }
 0x2f1   :  { %vm889_vm4 = vcmp.eq.s32.totalorder %v882_v15, %v885_v33 }
 0x2f3   :  { %v1108_v26 = vpop.eup %1107 }
 0x2f4   :  { %v826_v1 = vmul.f32 0.6931472, %v1108_v26 }
 0x2f6   :  { %v829_v3 = vadd.f32 %v826_v1, %v1367_v20 }
 0x2f7   :  { %v1110_v4 = vpop.eup %1109 }
 0x2f8   :  { %v836_v5 = vrot.slane %v829_v3, %v1266_v61  ;;  %v840_v6 = vrot.slane %v829_v3, %v1276_v25  ;;  %v844_v9 = vrot.slane %v829_v3, %v1279_v27  ;;  %v848_v35 = vrot.slane %v829_v3, %v1282_v28  ;;  %v1112_v1 = vpop.eup %1111 }
 0x2f9   :  { %v828_v10 = vmul.f32 0.6931472, %v1110_v4 }
 0x2fa   :  { %v873_v21 = vsub.f32 %v1318_v38, %v836_v5  ;;  %v874_v12 = vsub.f32 %v1322_v40, %v840_v6  ;;  %v875_v13 = vsub.f32 %v1365_v62, %v844_v9  ;;  %v876_v14 = vsub.f32 %v1371_v63, %v848_v35 }
 0x2fb   :  { %v830_v20 = vadd.f32 %v828_v10, %v1385_v8 }
 0x2fc   :  { %v899_v16 = vcombine.low %v873_v21, %v874_v12  ;;  %v900_v19 = vcombine.low %v875_v13, %v876_v14 }
 0x2fd   :  { %v852_v30 = vrot.slane %v830_v20, %v1266_v61  ;;  %v856_v31 = vrot.slane %v830_v20, %v1276_v25  ;;  %v860_v32 = vrot.slane %v830_v20, %v1279_v27  ;;  %v864_v38 = vrot.slane %v830_v20, %v1282_v28  ;;  %v888_v28 = vpop.permute.xlu1 %887 }
 0x2fe   :  { %v907_v40 = vrot.slane %v899_v16, %v1181_v11  ;;  %v914_v62 = vrot.slane %v900_v19, %v1181_v11  ;;  %vm890_vm5 = vcmp.eq.s32.totalorder %v882_v15, %v888_v28 }
 0x2ff   :  { %v877_v63 = vsub.f32 %v1325_v41, %v852_v30  ;;  %v878_v8 = vsub.f32 %v1327_v42, %v856_v31  ;;  %v879_v2 = vsub.f32 %v1340_v48, %v860_v32  ;;  %v880_v34 = vsub.f32 %v1332_v44, %v864_v38 }
 0x300   :  { %v915_v61 = vcombine.low %v907_v40, %v914_v62 }
 0x301   :  { %v923_v25 = vcombine.low %v877_v63, %v878_v8  ;;  %v924_v36 = vcombine.low %v879_v2, %v880_v34 }
 0x302   :  { %v922_v27 = vrot.slane %v915_v61, %v1181_v11 }
 0x303   :  { %v931_v37 = vrot.slane %v923_v25, %v1181_v11  ;;  %v938_v39 = vrot.slane %v924_v36, %v1181_v11 }
 0x304   :  { %v949_v43 = vsel %vm889_vm4, %v922_v27, 0.0 }
 0x305   :  { %v951_v41 = vsel %vm688_vm2, %v949_v43, 0.0  ;;  %v939_v45 = vcombine.low %v931_v37, %v938_v39 }
 0x306   :  { %952 = vadd.xlane.f32.xlu1 %v951_v41 }
 0x307   :  { %v946_v42 = vrot.slane %v939_v45, %v1181_v11 }
 0x309   :  { %v950_v44 = vsel %vm890_vm5, %v946_v42, 0.0 }
 0x30a   :  { %v954_v48 = vsel %vm688_vm2, %v950_v44, 0.0 }
 0x30b   :  { %955 = vadd.xlane.f32.xlu0 %v954_v48 }
 0x393   :  { %v953_v56 = vpop.xlane.xlu1 %952 }
 0x394   :  { %v963_v17 = vmul.f32 %v1015_v47, %v953_v56 }
 0x398   :  { %v956_v11 = vpop.xlane.xlu0 %955 }
 0x399   :  { %v964_v58 = vmul.f32 %v1016_v7, %v956_v11 }
 0x39b   :  { %v967_v59 = vcombine.low %v963_v17, %v964_v58 }
 0x39d   :  { %v970_v23 = vsel %vm969_vm8, %v967_v59, 0.0 }
 0x39e   :  { %v971_v60 = vrot.slane %v970_v23, 4 }
 0x3a0   :  { %v972_v29 = vadd.f32 %v971_v60, %v970_v23 }
 0x3a2   :  { %v973_v18 = vrot.slane %v972_v29, 2 }
 0x3a4   :  { %v974_v24 = vadd.f32 %v973_v18, %v972_v29 }
 0x3a6   :  { %v975_v0 = vrot.slane %v974_v24, 1 }
 0x3a8   :  { %v976_v26 = vadd.f32 %v975_v0, %v974_v24 }
 0x3aa   :  { %v988_v3 = vsub.f32 0.0, %v976_v26 }
 0x3ac   :  { %v991_v4 = vmul.f32 %v1112_v1, %v988_v3 }
 0x3ae   :  { %993 = vst.msk [vmem:[#allocation2] sm:$0x1] %vm992_vm9, %v991_v4 }
 0x3af   :  { %1124 = shalt.err (!%p1121_p4)
}
 0x3b0   :  { %s1125_s16 = scalar_lea.hbm %s1456_s4, 16 }
 0x3b1   :  { %p1126_p5 = scmp.ne.s32.totalorder %s1456_s4, %s1125_s16  ;;  %p1129_p6 = scmp.lt.u32.totalorder %s1125_s16, %s1456_s4 }
 0x3b3   :  { %p1131_p7 = pnand %p1129_p6, %p1126_p5 }
 0x3b5   :  { %1134 = shalt.err (!%p1131_p7)
}
 0x3b6   :  { %1003 = dma.vmem_to_hbm [thread:$0]  %s1001_s11, 16, %s1456_s4, [#allocation3]  }
 0x3b7   :  { %1135 = dma.done.wait [#allocation3], 16  }
 0x3b8   :  { %1136 = vsyncadd [#allocation3], 4294967280 }
 0x3b9   :  { %1011 = vsyncpa [#allocation3], 1 }

// kernel: vision_to_llama_forward.6
= control target key start
LH: loop header
LB: loop body
LE: loop exit
PB: predicated region body
PF: predicated region fallthrough
CT: control target
= control target key end

     0   :  { %v52_v0 = vlaneseq  ;;  %v4584_v2 = vmov 1966171168   ;;  %vm204_vm0 = vcmask 261120   ;;  %vm208_vm1 = vcmask 254976   ;;  %s4589_s23 = smov 120   ;;  %s4590_s24 = smov 80   ;;  %s5410_s0 = inlined_call_operand.vmem [shape: f32[2,5,32], index: 0, kind: input, shape index: {}]   ;;  %s5411_s3 = inlined_call_operand.vmem [shape: f32[32,96], index: 3, kind: input, shape index: {}]   ;;  %s5412_s1 = inlined_call_operand.vmem [shape: f32[1,32], index: 1, kind: input, shape index: {}]   ;;  %s5413_s2 = inlined_call_operand.vmem [shape: f32[1,32], index: 2, kind: input, shape index: {}]   ;;  %s5414_s4 = inlined_call_operand.vmem [shape: f32[1,96], index: 4, kind: input, shape index: {}]   ;;  %s5415_s5 = inlined_call_operand.vmem [shape: f32[32,32], index: 5, kind: input, shape index: {}]   ;;  %s5416_s6 = inlined_call_operand.vmem [shape: f32[1,32], index: 6, kind: input, shape index: {}]   ;;  %s5417_s9 = inlined_call_operand.vmem [shape: f32[32,64], index: 9, kind: input, shape index: {}]   ;;  %s5418_s7 = inlined_call_operand.vmem [shape: f32[1,32], index: 7, kind: input, shape index: {}]   ;;  %s5419_s8 = inlined_call_operand.vmem [shape: f32[1,32], index: 8, kind: input, shape index: {}]   ;;  %s5420_s11 = inlined_call_operand.vmem [shape: f32[64,32], index: 11, kind: input, shape index: {}]   ;;  %s5421_s10 = inlined_call_operand.vmem [shape: f32[1,64], index: 10, kind: input, shape index: {}]   ;;  %s5422_s12 = inlined_call_operand.vmem [shape: f32[1,32], index: 12, kind: input, shape index: {}]   ;;  %s5423_s13 = inlined_call_operand.vmem [shape: f32[2,5,32], index: 13, kind: output, shape index: {}]  }
   0x1   :  { %v44_v1 = vld [vmem:[%s5410_s0] sm:$0x1f]  ;;  %v50_v3 = vunpack.c.l.s4 %v4584_v2  ;;  %v45_v4 = vld [vmem:[%s5410_s0 + $0x8] sm:$0x1f]  ;;  %vm4586_vm2 = vmmov 0   ;;  %vm863_vm3 = vcmask 64512  }
   0x2   :  { %v53_v5 = vshrl.u32 %v52_v0, 7  ;;  %v48_v6 = vcombine.high %v44_v1, %v44_v1  ;;  %v87_v8 = vcombine.high %v45_v4, %v45_v4  ;;  %vm1055_vm4 = vcmask 36864   ;;  %s4591_s25 = smov 64   ;;  %s4592_s26 = smov 56  }
   0x3   :  { %v51_v7 = vunpack.c.0.s8 %v50_v3  ;;  %vm1084_vm5 = vcmask 1044480   ;;  %vm1080_vm6 = vcmask 39936   ;;  %s4593_s27 = smov 112   ;;  %s4594_s28 = smov 48   ;;  %vm3947_vm7 = vcmask 523264  }
   0x4   :  { %v4726_v42 = vsub.s32 0, %v53_v5  ;;  %v4728_v43 = vsub.s32 1, %v53_v5  ;;  %v4730_v44 = vsub.s32 2, %v53_v5  ;;  %v4732_v45 = vsub.s32 3, %v53_v5  ;;  %s4595_s0 = smov 72   ;;  %s4596_s29 = smov 104  }
   0x5   :  { %v4674_v9 = vsub.s32 %v51_v7, %v53_v5  ;;  %v4734_v47 = vsub.s32 4, %v53_v5  ;;  %v4736_v48 = vsub.s32 5, %v53_v5  ;;  %v4738_v49 = vsub.s32 6, %v53_v5  ;;  %s4597_s19 = smov 40  }
   0x6   :  { %v4740_v50 = vsub.s32 7, %v53_v5  ;;  %vm4212_vm8 = vcmask 258048  }
   0x7   :  { %v55_v10 = vrot.slane %v44_v1, %v4674_v9  ;;  %v62_v11 = vrot.slane %v48_v6, %v4674_v9  ;;  %v94_v12 = vrot.slane %v45_v4, %v4674_v9  ;;  %v101_v13 = vrot.slane %v87_v8, %v4674_v9 }
   0x8   :  { %5426 = vst [vmem:[#allocation2_spill] sm:$0xff] %v4740_v50 }
   0x9   :  { %v63_v14 = vcombine.high %v55_v10, %v55_v10  ;;  %v4681_v15 = vrot.slane %v55_v10, %v4674_v9  ;;  %v4684_v16 = vrot.slane %v62_v11, %v4674_v9  ;;  %v102_v17 = vcombine.high %v94_v12, %v94_v12 }
   0xa   :  { %v4687_v18 = vrot.slane %v94_v12, %v4674_v9  ;;  %v4696_v21 = vrot.slane %v101_v13, %v4674_v9 }
   0xb   :  { %v4690_v19 = vrot.slane %v63_v14, %v4674_v9  ;;  %v4693_v20 = vrot.slane %v102_v17, %v4674_v9  ;;  %v4744_v52 = vcombine.high %v4681_v15, %v4681_v15 }
   0xc   :  { %v4700_v22 = vcombine.high %v4687_v18, %v4687_v18  ;;  %v140_v23 = vcombine.low %v4684_v16, %v4687_v18 }
   0xd   :  { %v138_v24 = vcombine.low %v4681_v15, %v4690_v19  ;;  %v4219_v25 = vcombine.high %v4681_v15, %v4690_v19  ;;  %v4710_v26 = vcombine.high %v4693_v20, %v4693_v20  ;;  %v4748_v53 = vcombine.high %v4690_v19, %v4690_v19 }
   0xe   :  { %v141_v27 = vcombine.low %v4693_v20, %v4700_v22  ;;  %v162_v28 = vrot.slane %v140_v23, %v4674_v9 }
   0xf   :  { %v148_v29 = vrot.slane %v138_v24, %v4674_v9  ;;  %v155_v30 = vrot.slane %v4219_v25, %v4674_v9  ;;  %v187_v31 = vcombine.low %v4710_v26, %v4696_v21 }
  0x10   :  { %v169_v32 = vrot.slane %v141_v27, %v4674_v9 }
  0x11   :  { %v170_v33 = vcombine.low %v148_v29, %v155_v30  ;;  %v194_v35 = vrot.slane %v187_v31, %v4674_v9 }
  0x12   :  { %v171_v34 = vcombine.low %v162_v28, %v169_v32 }
  0x13   :  { %v178_v36 = vrot.slane %v170_v33, %v4674_v9  ;;  %v201_v39 = vrot.slane %v194_v35, %v4674_v9 }
  0x14   :  { %v185_v37 = vrot.slane %v171_v34, %v4674_v9 }
  0x15   :  { %v209_v41 = vsel %vm208_vm1, %v201_v39, 0.0 }
  0x16   :  { %v186_v38 = vcombine.low %v178_v36, %v185_v37 }
  0x18   :  { %v205_v40 = vsel %vm204_vm0, %v186_v38, 0.0 }
  0x19   :  { %206 = vadd.xlane.f32.xlu0 %v205_v40 }
  0x1d   :  { %210 = vadd.xlane.f32.xlu0 %v209_v41 }
  0xa6   :  { %v207_v46 = vpop.xlane.xlu0 %206 }
  0xa7   :  { %v213_v51 = vmul.f32 0.03125, %v207_v46 }
  0xa9   :  { %v220_v54 = vrot.slane %v213_v51, %v4726_v42  ;;  %v224_v55 = vrot.slane %v213_v51, %v4728_v43  ;;  %v228_v56 = vrot.slane %v213_v51, %v4730_v44  ;;  %v232_v57 = vrot.slane %v213_v51, %v4732_v45 }
  0xaa   :  { %v211_v58 = vpop.xlane.xlu0 %210  ;;  %v236_v59 = vrot.slane %v213_v51, %v4734_v47  ;;  %v240_v60 = vrot.slane %v213_v51, %v4736_v48  ;;  %v244_v61 = vrot.slane %v213_v51, %v4738_v49  ;;  %v248_v62 = vrot.slane %v213_v51, %v4740_v50 }
  0xab   :  { %v214_v63 = vmul.f32 0.03125, %v211_v58  ;;  %v4759_v0 = vsub.f32 %v4681_v15, %v220_v54  ;;  %v4762_v1 = vsub.f32 %v4690_v19, %v224_v55  ;;  %v4765_v2 = vsub.f32 %v4744_v52, %v228_v56 }
  0xac   :  { %v4768_v3 = vsub.f32 %v4748_v53, %v232_v57  ;;  %v4771_v4 = vsub.f32 %v4684_v16, %v236_v59  ;;  %v4774_v5 = vsub.f32 %v4687_v18, %v240_v60  ;;  %v4777_v6 = vsub.f32 %v4693_v20, %v244_v61  ;;  %v581_v59 = vld [vmem:[%s5411_s3] sm:$0xff]  ;;  %v582_v60 = vld [vmem:[%s5411_s3 + $0x8] sm:$0xff]  ;;  %v583_v61 = vld [vmem:[%s5411_s3 + $0x10] sm:$0xff] }
  0xad   :  { %v252_v7 = vrot.slane %v214_v63, %v4726_v42  ;;  %v256_v8 = vrot.slane %v214_v63, %v4728_v43  ;;  %v4782_v10 = vsub.f32 %v4700_v22, %v248_v62  ;;  %v277_v11 = vmul.f32 %v4759_v0, %v4759_v0  ;;  %v584_v63 = vld [vmem:[%s5411_s3 + $0x18] sm:$0xff]  ;;  %s4587_s3 = smov 96  }
  0xae   :  { %v278_v12 = vmul.f32 %v4762_v1, %v4762_v1  ;;  %v279_v13 = vmul.f32 %v4765_v2, %v4765_v2  ;;  %v280_v14 = vmul.f32 %v4768_v3, %v4768_v3  ;;  %v281_v17 = vmul.f32 %v4771_v4, %v4771_v4 }
  0xaf   :  { %v4795_v23 = vsub.f32 %v4710_v26, %v252_v7  ;;  %v4798_v24 = vsub.f32 %v4696_v21, %v256_v8  ;;  %v282_v25 = vmul.f32 %v4774_v5, %v4774_v5  ;;  %v283_v27 = vmul.f32 %v4777_v6, %v4777_v6  ;;  %v4220_v8 = vld [vmem:[%s5412_s1] ss:$0 sm:$0xff] }
  0xb0   :  { %v284_v28 = vmul.f32 %v4782_v10, %v4782_v10  ;;  %v297_v29 = vcombine.low %v277_v11, %v278_v12  ;;  %v298_v30 = vcombine.low %v279_v13, %v280_v14  ;;  %v4486_v62 = vpack.c.bf16 %v582_v60, %v581_v59  ;;  %v4221_v11 = vld [vmem:[%s5413_s2] ss:$0 sm:$0xff] }
  0xb1   :  { %v285_v31 = vmul.f32 %v4795_v23, %v4795_v23  ;;  %v286_v32 = vmul.f32 %v4798_v24, %v4798_v24  ;;  %v299_v33 = vcombine.low %v281_v17, %v282_v25  ;;  %v4490_v7 = vpack.c.bf16 %v584_v63, %v583_v61 }
  0xb2   :  { %v300_v34 = vcombine.low %v283_v27, %v284_v28  ;;  %v307_v35 = vrot.slane %v297_v29, %v4674_v9  ;;  %v314_v36 = vrot.slane %v298_v30, %v4674_v9  ;;  %4487 = vmatprep.subr.bf16.mxu1 %v4486_v62  ;;  %v442_v12 = vcombine.high %v4220_v8, %v4220_v8 }
  0xb3   :  { %v321_v37 = vrot.slane %v299_v33, %v4674_v9  ;;  %v346_v38 = vcombine.low %v285_v31, %v286_v32  ;;  %4489 = vmatpush3.bf16.msra.mxu1 %v4486_v62  ;;  %v514_v13 = vcombine.high %v4221_v11, %v4221_v11  ;;  %v449_v25 = vrot.slane %v4220_v8, %v4674_v9 }
  0xb4   :  { %v328_v39 = vrot.slane %v300_v34, %v4674_v9  ;;  %v329_v40 = vcombine.low %v307_v35, %v314_v36  ;;  %4491 = vmatprep.subr.bf16.mxu1 %v4490_v7  ;;  %v456_v27 = vrot.slane %v442_v12, %v4674_v9  ;;  %v521_v29 = vrot.slane %v4221_v11, %v4674_v9 }
  0xb5   :  { %v353_v51 = vrot.slane %v346_v38, %v4674_v9  ;;  %v528_v30 = vrot.slane %v514_v13, %v4674_v9  ;;  %v457_v33 = vcombine.high %v449_v25, %v449_v25  ;;  %v465_v38 = vrot.slane %v449_v25, %v4674_v9 }
  0xb6   :  { %v330_v41 = vcombine.low %v321_v37, %v328_v39  ;;  %v337_v46 = vrot.slane %v329_v40, %v4674_v9  ;;  %v458_v34 = vcombine.high %v456_v27, %v456_v27  ;;  %v529_v36 = vcombine.high %v521_v29, %v521_v29 }
  0xb7   :  { %v360_v56 = vrot.slane %v353_v51, %v4674_v9  ;;  %4493 = vmatpush3.bf16.msra.mxu1 %v4490_v7  ;;  %v530_v37 = vcombine.high %v528_v30, %v528_v30  ;;  %v472_v39 = vrot.slane %v456_v27, %v4674_v9  ;;  %v479_v40 = vrot.slane %v457_v33, %v4674_v9 }
  0xb8   :  { %v344_v54 = vrot.slane %v330_v41, %v4674_v9  ;;  %v486_v41 = vrot.slane %v458_v34, %v4674_v9  ;;  %v544_v51 = vrot.slane %v528_v30, %v4674_v9 }
  0xb9   :  { %v366_v58 = vsel %vm208_vm1, %v360_v56, 0.0  ;;  %v487_v56 = vcombine.high %v465_v38, %v465_v38 }
  0xba   :  { %v345_v55 = vcombine.low %v337_v46, %v344_v54  ;;  %v537_v46 = vrot.slane %v521_v29, %v4674_v9  ;;  %v551_v54 = vrot.slane %v529_v36, %v4674_v9  ;;  %v490_v59 = vcombine.high %v486_v41, %v486_v41 }
  0xbb   :  { %v560_v62 = vcombine.high %v544_v51, %v544_v51 }
  0xbc   :  { %v363_v57 = vsel %vm204_vm0, %v345_v55, 0.0  ;;  %v558_v55 = vrot.slane %v530_v37, %v4674_v9  ;;  %v559_v61 = vcombine.high %v537_v46, %v537_v46  ;;  %v561_v63 = vcombine.high %v551_v54, %v551_v54 }
  0xbd   :  { %364 = vadd.xlane.f32.xlu1 %v363_v57  ;;  %v488_v57 = vcombine.high %v472_v39, %v472_v39 }
  0xbe   :  { %v562_v7 = vcombine.high %v558_v55, %v558_v55 }
  0xc1   :  { %367 = vadd.xlane.f32.xlu1 %v366_v58  ;;  %v489_v58 = vcombine.high %v479_v40, %v479_v40 }
 0x14a   :  { %v365_v14 = vpop.xlane.xlu1 %364 }
 0x14b   :  { %v369_v17 = vmul.f32 0.03125, %v365_v14 }
 0x14d   :  { %v371_v28 = vadd.f32 1e-12, %v369_v17 }
 0x14e   :  { %v368_v31 = vpop.xlane.xlu1 %367 }
 0x14f   :  { %4540 = vrsqrt.f32 %v371_v28  ;;  %v370_v32 = vmul.f32 0.03125, %v368_v31 }
 0x151   :  { %v372_v35 = vadd.f32 1e-12, %v370_v32 }
 0x153   :  { %4542 = vrsqrt.f32 %v372_v35 }
 0x159   :  { %v4541_v60 = vpop.eup %4540 }
 0x15a   :  { %v380_v8 = vrot.slane %v4541_v60, %v4726_v42  ;;  %v384_v11 = vrot.slane %v4541_v60, %v4728_v43  ;;  %v388_v12 = vrot.slane %v4541_v60, %v4730_v44  ;;  %v392_v13 = vrot.slane %v4541_v60, %v4732_v45 }
 0x15b   :  { %v396_v14 = vrot.slane %v4541_v60, %v4734_v47  ;;  %v400_v17 = vrot.slane %v4541_v60, %v4736_v48  ;;  %v404_v25 = vrot.slane %v4541_v60, %v4738_v49  ;;  %v408_v27 = vrot.slane %v4541_v60, %v4740_v50 }
 0x15c   :  { %v427_v28 = vmul.f32 %v380_v8, %v4759_v0  ;;  %v428_v29 = vmul.f32 %v384_v11, %v4762_v1  ;;  %v429_v30 = vmul.f32 %v388_v12, %v4765_v2  ;;  %v430_v31 = vmul.f32 %v392_v13, %v4768_v3 }
 0x15d   :  { %v4543_v32 = vpop.eup %4542  ;;  %v431_v33 = vmul.f32 %v396_v14, %v4771_v4  ;;  %v432_v34 = vmul.f32 %v400_v17, %v4774_v5  ;;  %v433_v35 = vmul.f32 %v404_v25, %v4777_v6  ;;  %v434_v36 = vmul.f32 %v408_v27, %v4782_v10 }
 0x15e   :  { %v412_v37 = vrot.slane %v4543_v32, %v4726_v42  ;;  %v416_v60 = vrot.slane %v4543_v32, %v4728_v43  ;;  %v499_v0 = vmul.f32 %v465_v38, %v427_v28  ;;  %v500_v8 = vmul.f32 %v479_v40, %v428_v29 }
 0x15f   :  { %v501_v1 = vmul.f32 %v487_v56, %v429_v30  ;;  %v502_v11 = vmul.f32 %v489_v58, %v430_v31  ;;  %v503_v2 = vmul.f32 %v472_v39, %v431_v33  ;;  %v504_v12 = vmul.f32 %v486_v41, %v432_v34 }
 0x160   :  { %v435_v3 = vmul.f32 %v412_v37, %v4795_v23  ;;  %v436_v4 = vmul.f32 %v416_v60, %v4798_v24  ;;  %v505_v13 = vmul.f32 %v488_v57, %v433_v35  ;;  %v506_v5 = vmul.f32 %v490_v59, %v434_v36 }
 0x161   :  { %v571_v14 = vadd.f32 %v537_v46, %v499_v0  ;;  %v572_v6 = vadd.f32 %v551_v54, %v500_v8  ;;  %v573_v17 = vadd.f32 %v559_v61, %v501_v1  ;;  %v574_v10 = vadd.f32 %v561_v63, %v502_v11 }
 0x162   :  { %v575_v25 = vadd.f32 %v544_v51, %v503_v2  ;;  %v576_v27 = vadd.f32 %v558_v55, %v504_v12  ;;  %v577_v50 = vadd.f32 %v560_v62, %v505_v13  ;;  %v578_v32 = vadd.f32 %v562_v7, %v506_v5 }
 0x163   :  { %v602_v28 = vcombine.low %v571_v14, %v572_v6  ;;  %v603_v29 = vcombine.low %v573_v17, %v574_v10  ;;  %v507_v56 = vmul.f32 %v465_v38, %v435_v3  ;;  %v508_v58 = vmul.f32 %v479_v40, %v436_v4 }
 0x164   :  { %v604_v39 = vcombine.low %v575_v25, %v576_v27  ;;  %v605_v41 = vcombine.low %v577_v50, %v578_v32 }
 0x165   :  { %v612_v23 = vrot.slane %v602_v28, %v4674_v9  ;;  %v619_v24 = vrot.slane %v603_v29, %v4674_v9  ;;  %v579_v57 = vadd.f32 %v537_v46, %v507_v56  ;;  %v580_v59 = vadd.f32 %v551_v54, %v508_v58  ;;  %v4222_v54 = vld [vmem:[%s5414_s4] ss:$0 sm:$0xff]  ;;  %s4588_s4 = smov 88  }
 0x166   :  { %v626_v30 = vrot.slane %v604_v39, %v4674_v9  ;;  %v633_v61 = vrot.slane %v605_v41, %v4674_v9  ;;  %v4585_v46 = vmov 0.0  }
 0x167   :  { %v634_v51 = vcombine.low %v612_v23, %v619_v24  ;;  %v651_v55 = vcombine.low %v579_v57, %v580_v59  ;;  %4356 = vmatprep.subr.mxu1 %v4585_v46  ;;  %4366 = vmatprep.subr.mxu0 %v4585_v46 }
 0x168   :  { %v635_v62 = vcombine.low %v626_v30, %v633_v61  ;;  %4368 = vmatprep.mubr.msk.f32.mxu0 %vm4586_vm2, %v4585_v46 }
 0x169   :  { %v642_v63 = vrot.slane %v634_v51, %v4674_v9  ;;  %v658_v38 = vrot.slane %v651_v55, %v4674_v9 }
 0x16a   :  { %v649_v40 = vrot.slane %v635_v62, %v4674_v9 }
 0x16b   :  { %v665_v50 = vrot.slane %v658_v38, %v4674_v9 }
 0x16c   :  { %v650_v7 = vcombine.low %v642_v63, %v649_v40 }
 0x16e   :  { %4353 = vmatprep.mubr.msk.f32.mxu1 %vm204_vm0, %v650_v7 }
 0x16f   :  { %4354 = vmatmul.mubr.msk.f32.vlgmr.msra.gmra.mrb[0].mxu1 %vm204_vm0, %v665_v50 }
 0x170   :  { %4358 = vmatprep.mubr.msk.f32.mxu1 %vm4586_vm2, %v4585_v46 }
 0x242   :  { %v4355_v31 = vpop.f32.mrb[0].mxu1 }
 0x243   :  { %v742_v33 = vadd.f32 %v4355_v31, %v4222_v54  ;;  %v736_v34 = vpop.f32.mrb[1].mxu1 }
 0x244   :  { %v737_v35 = vadd.f32 %v4222_v54, %v736_v34 }
 0x245   :  { %v802_v36 = vrot.slane %v742_v33, %v4674_v9 }
 0x246   :  { %v747_v37 = vcombine.high %v737_v35, %v737_v35  ;;  %v754_v60 = vrot.slane %v737_v35, %v4674_v9 }
 0x247   :  { %v803_v1 = vcombine.high %v802_v36, %v802_v36  ;;  %v810_v6 = vrot.slane %v802_v36, %v4674_v9 }
 0x248   :  { %v761_v0 = vrot.slane %v747_v37, %v4674_v9  ;;  %v762_v8 = vcombine.high %v754_v60, %v754_v60  ;;  %v770_v11 = vrot.slane %v754_v60, %v4674_v9 }
 0x249   :  { %v817_v17 = vrot.slane %v803_v1, %v4674_v9 }
 0x24a   :  { %v763_v2 = vcombine.high %v761_v0, %v761_v0  ;;  %v777_v12 = vrot.slane %v761_v0, %v4674_v9  ;;  %v784_v3 = vrot.slane %v762_v8, %v4674_v9 }
 0x24b   :  { %v960_v58 = vrot.slane %v817_v17, %v4674_v9 }
 0x24c   :  { %v791_v4 = vrot.slane %v763_v2, %v4674_v9  ;;  %v793_v13 = vcombine.high %v777_v12, %v777_v12  ;;  %v822_v5 = vcombine.low %v770_v11, %v784_v3  ;;  %v4225_v14 = vcombine.high %v770_v11, %v784_v3 }
 0x24d   :  { %v844_v10 = vrot.slane %v777_v12, %v4674_v9  ;;  %v975_v30 = vrot.slane %v960_v58, %v4674_v9 }
 0x24e   :  { %v795_v25 = vcombine.high %v791_v4, %v791_v4  ;;  %v830_v27 = vrot.slane %v822_v5, %v4674_v9  ;;  %v837_v32 = vrot.slane %v4225_v14, %v4674_v9  ;;  %v938_v28 = vcombine.low %v791_v4, %v793_v13 }
 0x24f   :  { %v859_v41 = vrot.slane %v844_v10, %v4674_v9 }
 0x250   :  { %v845_v29 = vcombine.low %v830_v27, %v837_v32  ;;  %v939_v56 = vcombine.low %v795_v25, %v810_v6  ;;  %v946_v23 = vrot.slane %v938_v28, %v4674_v9 }
 0x252   :  { %v852_v39 = vrot.slane %v845_v29, %v4674_v9  ;;  %v953_v24 = vrot.slane %v939_v56, %v4674_v9 }
 0x254   :  { %v4906_v57 = vcombine.low %v852_v39, %v859_v41  ;;  %v961_v59 = vcombine.low %v946_v23, %v953_v24 }
 0x256   :  { %v968_v61 = vrot.slane %v961_v59, %v4674_v9  ;;  %861 = vrot.lane.b32.xlu0 %v4906_v57, %s4587_s3 }
 0x258   :  { %v4911_v51 = vcombine.low %v968_v61, %v975_v30 }
 0x25a   :  { %977 = vrot.lane.b32.xlu1 %v4911_v51, %s4587_s3 }
 0x2c8   :  { %v862_v55 = vpop.permute.xlu0 %861 }
 0x2c9   :  { %4357 = vmatpush3.xpose.msk.msra.mxu1 %vm863_vm3, %v862_v55 }
 0x2ca   :  { %4361 = vmatprep.subr.mxu1 %v4585_v46 }
 0x2cc   :  { %4359 = vmatmul.mubr.msk.f32.vlgmr.msra.gmra.mrb[2].mxu1 %vm863_vm3, %v4906_v57  ;;  %v978_v62 = vpop.permute.xlu1 %977 }
 0x2cd   :  { %4362 = vmatpush3.xpose.msk.msra.mxu1 %vm863_vm3, %v978_v62  ;;  %4363 = vmatprep.mubr.msk.f32.mxu1 %vm4586_vm2, %v4585_v46 }
 0x2ce   :  { %4371 = vmatprep.subr.mxu1 %v4585_v46 }
 0x2d0   :  { %4364 = vmatmul.mubr.msk.f32.vlgmr.msra.gmra.mrb[4].mxu1 %vm863_vm3, %v4911_v51 }
 0x2d1   :  { %4373 = vmatprep.mubr.msk.f32.mxu1 %vm4586_vm2, %v4585_v46 }
 0x39f   :  { %v934_v63 = vpop.f32.mrb[2].mxu1 }
 0x3a0   :  { %v4360_v38 = vpop.f32.mrb[3].mxu1  ;;  %v1053_v31 = vmul.f32 0.35355338, %v934_v63 }
 0x3a2   :  { %v1056_v33 = vsel %vm1055_vm4, %v1053_v31, -inf }
 0x3a3   :  { %v1049_v40 = vpop.f32.mrb[4].mxu1 }
 0x3a4   :  { %v1054_v50 = vmul.f32 0.35355338, %v1049_v40  ;;  %v4365_v7 = vpop.f32.mrb[5].mxu1 }
 0x3a6   :  { %v1059_v54 = vsel %vm1055_vm4, %v1054_v50, -inf }
 0x3a7   :  { %1060 = vmax.xlane.f32.xlu1 %v1059_v54 }
 0x3b8   :  { %1394 = vrot.lane.b32.xlu1 %v4911_v51, %s4588_s4 }
 0x3bc   :  { %1392 = vrot.lane.b32.xlu1 %v4911_v51, %s4589_s23 }
 0x3e0   :  { %1057 = vmax.xlane.f32.xlu1 %v1056_v33 }
 0x3f1   :  { %1316 = vrot.lane.b32.xlu1 %v4906_v57, %s4588_s4 }
 0x3f5   :  { %1314 = vrot.lane.b32.xlu1 %v4906_v57, %s4589_s23 }
 0x3f9   :  { %2016 = vrot.lane.b32.xlu1 %v4906_v57, %s4590_s24 }
 0x434   :  { %v1061_v34 = vpop.xlane.xlu1 %1060 }
 0x435   :  { %v1063_v35 = vsub.f32 %v1054_v50, %v1061_v34 }
 0x437   :  { %v1066_v36 = vmul.f32 1.442695, %v1063_v35 }
 0x438   :  { %v1395_v0 = vpop.permute.xlu1 %1394 }
 0x439   :  { %4544 = vpow2.f32 %v1066_v36 }
 0x43c   :  { %v1393_v8 = vpop.permute.xlu1 %1392 }
 0x443   :  { %v4545_v37 = vpop.eup %4544 }
 0x444   :  { %v1071_v60 = vsel %vm1055_vm4, %v4545_v37, 0.0 }
 0x445   :  { %1072 = vadd.xlane.f32.xlu0 %v1071_v60 }
 0x45b   :  { %1157 = vrot.lane.b32.xlu0 %v4911_v51, %s4591_s25 }
 0x46d   :  { %v1058_v1 = vpop.xlane.xlu1 %1057 }
 0x46e   :  { %v1062_v11 = vsub.f32 %v1053_v31, %v1058_v1 }
 0x470   :  { %v1064_v2 = vmul.f32 1.442695, %v1062_v11 }
 0x471   :  { %v1317_v25 = vpop.permute.xlu1 %1316 }
 0x472   :  { %4546 = vpow2.f32 %v1064_v2 }
 0x475   :  { %v1315_v32 = vpop.permute.xlu1 %1314 }
 0x47c   :  { %v4547_v12 = vpop.eup %4546 }
 0x47d   :  { %v1068_v3 = vsel %vm1055_vm4, %v4547_v12, 0.0 }
 0x47e   :  { %1069 = vadd.xlane.f32.xlu0 %v1068_v3 }
 0x494   :  { %1078 = vrot.lane.b32.xlu0 %v4906_v57, %s4591_s25 }
 0x4d2   :  { %v1073_v4 = vpop.xlane.xlu0 %1072 }
 0x4d3   :  { %4548 = vrcp.f32 %v1073_v4 }
 0x4d6   :  { %v1158_v13 = vpop.permute.xlu0 %1157 }
 0x4d7   :  { %4372 = vmatpush3.msk.msra.mxu1 %vm1084_vm5, %v1158_v13 }
 0x4d8   :  { %4381 = vmatprep.subr.mxu1 %v4585_v46 }
 0x4dd   :  { %v4549_v5 = vpop.eup %4548 }
 0x4de   :  { %v1077_v14 = vmul.f32 %v4549_v5, %v4545_v37 }
 0x4e0   :  { %4374 = vmatmul.mubr.msk.f32.vlgmr.msra.gmra.mrb[6].mxu1 %vm1080_vm6, %v1077_v14 }
 0x4e1   :  { %4382 = vmatpush3.xpose.msk.msra.mxu1 %vm863_vm3, %v1395_v0  ;;  %4383 = vmatprep.mubr.msk.f32.mxu1 %vm4586_vm2, %v4585_v46 }
 0x4e2   :  { %4391 = vmatprep.subr.mxu1 %v4585_v46 }
 0x4e4   :  { %4384 = vmatmul.mubr.msk.f32.vlgmr.msra.gmra.mrb[8].mxu1 %vm863_vm3, %v1393_v8 }
 0x4e5   :  { %4393 = vmatprep.mubr.msk.f32.mxu1 %vm4586_vm2, %v4585_v46 }
 0x50b   :  { %v1070_v6 = vpop.xlane.xlu0 %1069 }
 0x50c   :  { %4550 = vrcp.f32 %v1070_v6 }
 0x50f   :  { %v1079_v17 = vpop.permute.xlu0 %1078 }
 0x510   :  { %4367 = vmatpush3.msk.msra.mxu0 %vm1084_vm5, %v1079_v17 }
 0x511   :  { %4376 = vmatprep.subr.mxu0 %v4585_v46 }
 0x516   :  { %v4551_v10 = vpop.eup %4550 }
 0x517   :  { %v1076_v27 = vmul.f32 %v4551_v10, %v4547_v12 }
 0x519   :  { %4369 = vmatmul.mubr.msk.f32.vlgmr.msra.gmra.mrb[0].mxu0 %vm1080_vm6, %v1076_v27 }
 0x51a   :  { %4377 = vmatpush3.xpose.msk.msra.mxu0 %vm863_vm3, %v1317_v25  ;;  %4378 = vmatprep.mubr.msk.f32.mxu0 %vm4586_vm2, %v4585_v46 }
 0x51b   :  { %4386 = vmatprep.subr.mxu0 %v4585_v46 }
 0x51d   :  { %4379 = vmatmul.mubr.msk.f32.vlgmr.msra.gmra.mrb[2].mxu0 %vm863_vm3, %v1315_v32 }
 0x51e   :  { %4388 = vmatprep.mubr.msk.f32.mxu0 %vm4586_vm2, %v4585_v46 }
 0x5b3   :  { %v4958_v28 = vpop.f32.mrb[6].mxu1 }
 0x5b4   :  { %v4375_v29 = vpop.f32.mrb[7].mxu1  ;;  %v1282_v23 = vrot.slane %v4958_v28, %v4674_v9 }
 0x5b5   :  { %v2017_v29 = vpop.permute.xlu1 %2016 }
 0x5b6   :  { %v1290_v24 = vcombine.high %v1282_v23, %v1282_v23  ;;  %v1297_v59 = vrot.slane %v1282_v23, %v4674_v9 }
 0x5b7   :  { %v1466_v56 = vpop.f32.mrb[8].mxu1 }
 0x5b8   :  { %v1471_v58 = vmul.f32 0.35355338, %v1466_v56  ;;  %v4385_v39 = vpop.f32.mrb[9].mxu1  ;;  %v4969_v61 = vrot.slane %v1290_v24, %v4674_v9  ;;  %v1312_v55 = vcombine.high %v1297_v59, %v1297_v59 }
 0x5ba   :  { %v1475_v41 = vsel %vm1055_vm4, %v1471_v58, -inf  ;;  %v1874_v54 = vcombine.low %v4969_v61, %v1312_v55 }
 0x5bb   :  { %1476 = vmax.xlane.f32.xlu0 %v1475_v41 }
 0x5bc   :  { %v1902_v0 = vrot.slane %v1874_v54, %v4674_v9 }
 0x5d1   :  { %1571 = vrot.lane.b32.xlu0 %v4911_v51, %s4592_s26 }
 0x5d5   :  { %2014 = vrot.lane.b32.xlu0 %v4906_v57, %s4593_s27 }
 0x5d9   :  { %2092 = vrot.lane.b32.xlu0 %v4911_v51, %s4593_s27 }
 0x5ec   :  { %v1153_v30 = vpop.f32.mrb[0].mxu0 }
 0x5ed   :  { %v1236_v62 = vcombine.high %v1153_v30, %v1153_v30  ;;  %v1243_v63 = vrot.slane %v1153_v30, %v4674_v9  ;;  %v4370_v38 = vpop.f32.mrb[1].mxu0 }
 0x5ef   :  { %v1250_v40 = vrot.slane %v1236_v62, %v4674_v9  ;;  %v1251_v50 = vcombine.high %v1243_v63, %v1243_v63  ;;  %v1258_v31 = vrot.slane %v1243_v63, %v4674_v9 }
 0x5f0   :  { %v1388_v7 = vpop.f32.mrb[2].mxu0 }
 0x5f1   :  { %v1265_v33 = vrot.slane %v1250_v40, %v4674_v9  ;;  %v1272_v34 = vrot.slane %v1251_v50, %v4674_v9  ;;  %v4380_v35 = vpop.f32.mrb[3].mxu0  ;;  %v1470_v27 = vmul.f32 0.35355338, %v1388_v7 }
 0x5f3   :  { %v1871_v36 = vcombine.low %v1258_v31, %v1272_v34  ;;  %v4245_v37 = vcombine.high %v1258_v31, %v1272_v34  ;;  %v1873_v60 = vcombine.low %v1265_v33, %v1297_v59  ;;  %v1472_v32 = vsel %vm1055_vm4, %v1470_v27, -inf }
 0x5f5   :  { %v1881_v8 = vrot.slane %v1871_v36, %v4674_v9  ;;  %v1888_v1 = vrot.slane %v4245_v37, %v4674_v9  ;;  %v1895_v11 = vrot.slane %v1873_v60, %v4674_v9 }
 0x5f7   :  { %v1903_v2 = vcombine.low %v1881_v8, %v1888_v1  ;;  %v1904_v12 = vcombine.low %v1895_v11, %v1902_v0  ;;  %v819_v11 = vld [vmem:[%s5415_s5 + $0x8] sm:$0xff] }
 0x5f9   :  { %v1911_v3 = vrot.slane %v1903_v2, %v4674_v9  ;;  %v1918_v4 = vrot.slane %v1904_v12, %v4674_v9  ;;  %v818_v2 = vld [vmem:[%s5415_s5] sm:$0xff] }
 0x5fb   :  { %v4983_v13 = vcombine.low %v1911_v3, %v1918_v4 }
 0x648   :  { %v1477_v5 = vpop.xlane.xlu0 %1476 }
 0x649   :  { %v1479_v14 = vsub.f32 %v1471_v58, %v1477_v5 }
 0x64b   :  { %v1482_v6 = vmul.f32 1.442695, %v1479_v14 }
 0x64c   :  { %v1572_v17 = vpop.permute.xlu0 %1571 }
 0x64d   :  { %4552 = vpow2.f32 %v1482_v6  ;;  %4392 = vmatpush3.msk.msra.mxu1 %vm1084_vm5, %v1572_v17 }
 0x64e   :  { %4406 = vmatprep.subr.mxu1 %v4585_v46 }
 0x650   :  { %v2015_v41 = vpop.permute.xlu0 %2014 }
 0x654   :  { %v2093_v24 = vpop.permute.xlu0 %2092 }
 0x657   :  { %v4553_v10 = vpop.eup %4552 }
 0x658   :  { %v1487_v25 = vsel %vm1055_vm4, %v4553_v10, 0.0 }
 0x659   :  { %1488 = vadd.xlane.f32.xlu1 %v1487_v25 }
 0x66a   :  { %2094 = vrot.lane.b32.xlu1 %v4911_v51, %s4590_s24 }
 0x68e   :  { %1473 = vmax.xlane.f32.xlu1 %v1472_v32 }
 0x6e6   :  { %v1489_v56 = vpop.xlane.xlu1 %1488 }
 0x6e7   :  { %4554 = vrcp.f32 %v1489_v56 }
 0x6ea   :  { %v2095_v23 = vpop.permute.xlu1 %2094 }
 0x6f1   :  { %v4555_v58 = vpop.eup %4554 }
 0x6f2   :  { %v1493_v39 = vmul.f32 %v4555_v58, %v4553_v10 }
 0x6f4   :  { %4394 = vmatmul.mubr.msk.f32.vlgmr.msra.gmra.mrb[10].mxu1 %vm1080_vm6, %v1493_v39 }
 0x6f5   :  { %4407 = vmatpush3.xpose.msk.msra.mxu1 %vm863_vm3, %v2017_v29  ;;  %4408 = vmatprep.mubr.msk.f32.mxu1 %vm4586_vm2, %v4585_v46 }
 0x6f6   :  { %4411 = vmatprep.subr.mxu1 %v4585_v46 }
 0x6f8   :  { %4409 = vmatmul.mubr.msk.f32.vlgmr.msra.gmra.mrb[12].mxu1 %vm863_vm3, %v2015_v41 }
 0x6f9   :  { %4412 = vmatpush3.xpose.msk.msra.mxu1 %vm863_vm3, %v2095_v23  ;;  %4413 = vmatprep.mubr.msk.f32.mxu1 %vm4586_vm2, %v4585_v46 }
 0x6fa   :  { %4421 = vmatprep.subr.mxu1 %v4585_v46 }
 0x6fc   :  { %4414 = vmatmul.mubr.msk.f32.vlgmr.msra.gmra.mrb[14].mxu1 %vm863_vm3, %v2093_v24 }
 0x6fd   :  { %4423 = vmatprep.mubr.msk.f32.mxu1 %vm4586_vm2, %v4585_v46 }
 0x71b   :  { %v1474_v59 = vpop.xlane.xlu1 %1473 }
 0x71c   :  { %v1478_v30 = vsub.f32 %v1470_v27, %v1474_v59 }
 0x71e   :  { %v1480_v55 = vmul.f32 1.442695, %v1478_v30 }
 0x720   :  { %4556 = vpow2.f32 %v1480_v55 }
 0x72a   :  { %v4557_v62 = vpop.eup %4556 }
 0x72b   :  { %v1484_v63 = vsel %vm1055_vm4, %v4557_v62, 0.0 }
 0x72c   :  { %1485 = vadd.xlane.f32.xlu0 %v1484_v63 }
 0x742   :  { %1494 = vrot.lane.b32.xlu0 %v4906_v57, %s4592_s26 }
 0x746   :  { %2271 = vrot.lane.b32.xlu0 %v4911_v51, %s4594_s28 }
 0x74a   :  { %2575 = vrot.lane.b32.xlu0 %v4906_v57, %s4595_s0 }
 0x74e   :  { %2653 = vrot.lane.b32.xlu0 %v4911_v51, %s4595_s0 }
 0x752   :  { %2573 = vrot.lane.b32.xlu0 %v4906_v57, %s4596_s29 }
 0x7b9   :  { %v1486_v38 = vpop.xlane.xlu0 %1485 }
 0x7ba   :  { %4558 = vrcp.f32 %v1486_v38 }
 0x7bd   :  { %v1495_v40 = vpop.permute.xlu0 %1494 }
 0x7be   :  { %4387 = vmatpush3.msk.msra.mxu0 %vm1084_vm5, %v1495_v40 }
 0x7bf   :  { %4396 = vmatprep.subr.mxu0 %v819_v11 }
 0x7c1   :  { %v2272_v50 = vpop.permute.xlu0 %2271 }
 0x7c2   :  { %4422 = vmatpush3.msk.msra.mxu1 %vm1084_vm5, %v2272_v50 }
 0x7c3   :  { %4431 = vmatprep.subr.mxu1 %v4585_v46 }
 0x7c4   :  { %v4559_v7 = vpop.eup %4558 }
 0x7c5   :  { %v1492_v54 = vmul.f32 %v4559_v7, %v4557_v62 }
 0x7c7   :  { %4389 = vmatmul.mubr.msk.f32.vlgmr.msra.gmra.mrb[4].mxu0 %vm1080_vm6, %v1492_v54  ;;  %v1644_v31 = vpop.f32.mrb[10].mxu1 }
 0x7c8   :  { %v4395_v33 = vpop.f32.mrb[11].mxu1  ;;  %4397 = vmatpush3.msra.mxu0 %v819_v11  ;;  %v1696_v32 = vrot.slane %v1644_v31, %v4674_v9  ;;  %v1689_v58 = vcombine.high %v1644_v31, %v1644_v31  ;;  %v1275_v31 = vcombine.high %v4958_v28, %v4958_v28  ;;  %v1313_v28 = vcombine.high %v4969_v61, %v4969_v61 }
 0x7c9   :  { %4401 = vmatprep.subr.mxu0 %v818_v2 }
 0x7ca   :  { %v1704_v29 = vcombine.high %v1696_v32, %v1696_v32  ;;  %v1711_v56 = vrot.slane %v1696_v32, %v4674_v9  ;;  %v1703_v55 = vrot.slane %v1689_v58, %v4674_v9  ;;  %v1289_v11 = vrot.slane %v1275_v31, %v4674_v9 }
 0x7cb   :  { %v2088_v34 = vpop.f32.mrb[12].mxu1 }
 0x7cc   :  { %v2170_v35 = vmul.f32 0.35355338, %v2088_v34  ;;  %v4410_v36 = vpop.f32.mrb[13].mxu1  ;;  %v1725_v39 = vrot.slane %v1704_v29, %v4674_v9  ;;  %v1726_v23 = vcombine.high %v1711_v56, %v1711_v56  ;;  %v1718_v33 = vrot.slane %v1703_v55, %v4674_v9 }
 0x7ce   :  { %v2172_v37 = vsel %vm1055_vm4, %v2170_v35, -inf  ;;  %v1727_v38 = vcombine.high %v1725_v39, %v1725_v39  ;;  %v1731_v40 = vcombine.low %v1725_v39, %v1726_v23 }
 0x7cf   :  { %2173 = vmax.xlane.f32.xlu1 %v2172_v37  ;;  %v2166_v60 = vpop.f32.mrb[14].mxu1 }
 0x7d0   :  { %v2171_v0 = vmul.f32 0.35355338, %v2166_v60  ;;  %v4415_v8 = vpop.f32.mrb[15].mxu1  ;;  %v1777_v37 = vcombine.low %v1727_v38, %v1718_v33  ;;  %v1759_v60 = vrot.slane %v1731_v40, %v4674_v9 }
 0x7d2   :  { %v2175_v1 = vsel %vm1055_vm4, %v2171_v0, -inf }
 0x7d3   :  { %2176 = vmax.xlane.f32.xlu1 %v2175_v1 }
 0x85c   :  { %v2174_v12 = vpop.xlane.xlu1 %2173 }
 0x85d   :  { %v2178_v3 = vsub.f32 %v2170_v35, %v2174_v12 }
 0x85f   :  { %v2180_v4 = vmul.f32 1.442695, %v2178_v3 }
 0x860   :  { %v2177_v5 = vpop.xlane.xlu1 %2176 }
 0x861   :  { %4560 = vpow2.f32 %v2180_v4  ;;  %v2179_v14 = vsub.f32 %v2171_v0, %v2177_v5  ;;  %v1784_v4 = vrot.slane %v1777_v37, %v4674_v9 }
 0x863   :  { %v2182_v6 = vmul.f32 1.442695, %v2179_v14  ;;  %v1791_v32 = vrot.slane %v1784_v4, %v4674_v9 }
 0x865   :  { %4562 = vpow2.f32 %v2182_v6  ;;  %v1304_v6 = vrot.slane %v1289_v11, %v4674_v9 }
 0x86b   :  { %v5025_v17 = vpop.eup %4560 }
 0x86c   :  { %v2184_v10 = vsel %vm1055_vm4, %v5025_v17, 0.0 }
 0x86d   :  { %2185 = vadd.xlane.f32.xlu1 %v2184_v10 }
 0x86f   :  { %v5029_v25 = vpop.eup %4562 }
 0x870   :  { %v2187_v27 = vsel %vm1055_vm4, %v5029_v25, 0.0 }
 0x871   :  { %2188 = vadd.xlane.f32.xlu1 %v2187_v27  ;;  %v1920_v27 = vcombine.low %v1313_v28, %v1304_v6 }
 0x873   :  { %v1927_v61 = vrot.slane %v1920_v27, %v4674_v9 }
 0x875   :  { %v1934_v29 = vrot.slane %v1927_v61, %v4674_v9 }
 0x882   :  { %2194 = vrot.lane.b32.xlu1 %v4906_v57, %s4594_s28 }
 0x886   :  { %2651 = vrot.lane.b32.xlu1 %v4911_v51, %s4596_s29 }
 0x89a   :  { %v1567_v41 = vpop.f32.mrb[4].mxu0 }
 0x89b   :  { %v1650_v24 = vcombine.high %v1567_v41, %v1567_v41  ;;  %v1657_v59 = vrot.slane %v1567_v41, %v4674_v9  ;;  %v4390_v30 = vpop.f32.mrb[5].mxu0  ;;  %v2576_v41 = vpop.permute.xlu0 %2575 }
 0x89d   :  { %v1664_v62 = vrot.slane %v1650_v24, %v4674_v9  ;;  %v1665_v63 = vcombine.high %v1657_v59, %v1657_v59  ;;  %v1672_v50 = vrot.slane %v1657_v59, %v4674_v9 }
 0x89f   :  { %v1679_v7 = vrot.slane %v1664_v62, %v4674_v9  ;;  %v1686_v54 = vrot.slane %v1665_v63, %v4674_v9  ;;  %v2654_v24 = vpop.permute.xlu0 %2653 }
 0x8a1   :  { %v1728_v34 = vcombine.low %v1672_v50, %v1686_v54  ;;  %v4242_v35 = vcombine.high %v1672_v50, %v1686_v54  ;;  %v1730_v36 = vcombine.low %v1679_v7, %v1711_v56 }
 0x8a3   :  { %v1738_v0 = vrot.slane %v1728_v34, %v4674_v9  ;;  %v1745_v8 = vrot.slane %v4242_v35, %v4674_v9  ;;  %v1752_v1 = vrot.slane %v1730_v36, %v4674_v9  ;;  %v2574_v30 = vpop.permute.xlu0 %2573 }
 0x8a5   :  { %v1760_v12 = vcombine.low %v1738_v0, %v1745_v8  ;;  %v1761_v3 = vcombine.low %v1752_v1, %v1759_v60 }
 0x8a7   :  { %v1768_v5 = vrot.slane %v1760_v12, %v4674_v9  ;;  %v1775_v14 = vrot.slane %v1761_v3, %v4674_v9 }
 0x8a9   :  { %v1776_v10 = vcombine.low %v1768_v5, %v1775_v14 }
 0x8ab   :  { %4398 = vmatprep.mubr.msk.f32.mxu0 %vm863_vm3, %v1776_v10 }
 0x8ac   :  { %4399 = vmatmul.mubr.msk.f32.vlgmr.msra.gmra.mrb[6].mxu0 %vm863_vm3, %v1791_v32 }
 0x8ad   :  { %4403 = vmatprep.mubr.msk.f32.mxu0 %vm863_vm3, %v4983_v13  ;;  %4402 = vmatpush3.msra.mxu0 %v818_v2 }
 0x8ae   :  { %4416 = vmatprep.subr.mxu0 %v4585_v46 }
 0x8b4   :  { %4404 = vmatmul.mubr.msk.f32.vlgmr.msra.gmra.mrb[6].mxu0 %vm863_vm3, %v1934_v29 }
 0x8b5   :  { %4418 = vmatprep.mubr.msk.f32.mxu0 %vm4586_vm2, %v4585_v46 }
 0x8fa   :  { %v2186_v56 = vpop.xlane.xlu1 %2185 }
 0x8fb   :  { %4564 = vrcp.f32 %v2186_v56 }
 0x8fe   :  { %v2189_v58 = vpop.xlane.xlu1 %2188 }
 0x8ff   :  { %4566 = vrcp.f32 %v2189_v58 }
 0x902   :  { %v2195_v39 = vpop.permute.xlu1 %2194 }
 0x903   :  { %4417 = vmatpush3.msk.msra.mxu0 %vm1084_vm5, %v2195_v39 }
 0x905   :  { %v4565_v13 = vpop.eup %4564 }
 0x906   :  { %v2192_v2 = vmul.f32 %v4565_v13, %v5025_v17  ;;  %v820_v17 = vld [vmem:[%s5415_s5 + $0x10] sm:$0xff] }
 0x907   :  { %4426 = vmatprep.subr.mxu0 %v820_v17 }
 0x908   :  { %4419 = vmatmul.mubr.msk.f32.vlgmr.msra.gmra.mrb[8].mxu0 %vm1080_vm6, %v2192_v2 }
 0x909   :  { %v4567_v23 = vpop.eup %4566  ;;  %4427 = vmatpush3.msra.mxu0 %v820_v17 }
 0x90a   :  { %v2193_v59 = vmul.f32 %v4567_v23, %v5029_v25  ;;  %4436 = vmatprep.subr.mxu0 %v4585_v46 }
 0x90c   :  { %4424 = vmatmul.mubr.msk.f32.vlgmr.msra.gmra.mrb[16].mxu1 %vm1080_vm6, %v2193_v59 }
 0x90d   :  { %4432 = vmatpush3.xpose.msk.msra.mxu1 %vm863_vm3, %v2576_v41  ;;  %4433 = vmatprep.mubr.msk.f32.mxu1 %vm4586_vm2, %v4585_v46 }
 0x90e   :  { %4441 = vmatprep.subr.mxu1 %v4585_v46 }
 0x910   :  { %4434 = vmatmul.mubr.msk.f32.vlgmr.msra.gmra.mrb[18].mxu1 %vm863_vm3, %v2574_v30  ;;  %v2652_v30 = vpop.permute.xlu1 %2651 }
 0x911   :  { %4443 = vmatprep.mubr.msk.f32.mxu1 %vm4586_vm2, %v4585_v46 }
 0x9db   :  { %v2267_v25 = vpop.f32.mrb[8].mxu0 }
 0x9dc   :  { %v2350_v55 = vcombine.high %v2267_v25, %v2267_v25  ;;  %v2357_v62 = vrot.slane %v2267_v25, %v4674_v9  ;;  %v4420_v63 = vpop.f32.mrb[9].mxu0 }
 0x9de   :  { %v2365_v38 = vcombine.high %v2357_v62, %v2357_v62  ;;  %v2364_v40 = vrot.slane %v2350_v55, %v4674_v9  ;;  %v2372_v7 = vrot.slane %v2357_v62, %v4674_v9 }
 0x9df   :  { %v2344_v50 = vpop.f32.mrb[16].mxu1 }
 0x9e0   :  { %v2386_v54 = vrot.slane %v2365_v38, %v4674_v9  ;;  %v2389_v31 = vcombine.high %v2344_v50, %v2344_v50  ;;  %v2396_v33 = vrot.slane %v2344_v50, %v4674_v9  ;;  %v4425_v34 = vpop.f32.mrb[17].mxu1  ;;  %v2379_v0 = vrot.slane %v2364_v40, %v4674_v9 }
 0x9e2   :  { %v2428_v35 = vcombine.low %v2372_v7, %v2386_v54  ;;  %v4256_v36 = vcombine.high %v2372_v7, %v2386_v54  ;;  %v2403_v37 = vrot.slane %v2389_v31, %v4674_v9  ;;  %v2404_v60 = vcombine.high %v2396_v33, %v2396_v33 }
 0x9e3   :  { %v2411_v8 = vrot.slane %v2396_v33, %v4674_v9  ;;  %v2647_v1 = vpop.f32.mrb[18].mxu1 }
 0x9e4   :  { %v2438_v11 = vrot.slane %v2428_v35, %v4674_v9  ;;  %v2425_v12 = vrot.slane %v2404_v60, %v4674_v9  ;;  %v4435_v3 = vpop.f32.mrb[19].mxu1  ;;  %v2445_v28 = vrot.slane %v4256_v36, %v4674_v9  ;;  %v2729_v14 = vmul.f32 0.35355338, %v2647_v1  ;;  %v821_v1 = vld [vmem:[%s5415_s5 + $0x18] sm:$0xff] }
 0x9e5   :  { %v2426_v4 = vcombine.high %v2411_v8, %v2411_v8  ;;  %v2430_v5 = vcombine.low %v2379_v0, %v2411_v8  ;;  %v2418_v6 = vrot.slane %v2403_v37, %v4674_v9 }
 0x9e6   :  { %v2427_v10 = vcombine.high %v2425_v12, %v2425_v12  ;;  %v2731_v32 = vsel %vm1055_vm4, %v2729_v14, -inf  ;;  %v2460_v29 = vcombine.low %v2438_v11, %v2445_v28 }
 0x9e7   :  { %v2431_v27 = vcombine.low %v2425_v12, %v2426_v4  ;;  %2732 = vmax.xlane.f32.xlu0 %v2731_v32  ;;  %v2452_v56 = vrot.slane %v2430_v5, %v4674_v9 }
 0x9e8   :  { %v2477_v61 = vcombine.low %v2427_v10, %v2418_v6  ;;  %v2468_v13 = vrot.slane %v2460_v29, %v4674_v9 }
 0x9e9   :  { %v2459_v58 = vrot.slane %v2431_v27, %v4674_v9 }
 0x9ea   :  { %v2484_v41 = vrot.slane %v2477_v61, %v4674_v9 }
 0x9eb   :  { %v2461_v39 = vcombine.low %v2452_v56, %v2459_v58 }
 0x9ec   :  { %v2491_v59 = vrot.slane %v2484_v41, %v4674_v9 }
 0x9ed   :  { %v2475_v2 = vrot.slane %v2461_v39, %v4674_v9 }
 0x9ef   :  { %v2476_v23 = vcombine.low %v2468_v13, %v2475_v2 }
 0x9f1   :  { %4428 = vmatprep.mubr.msk.f32.mxu0 %vm863_vm3, %v2476_v23 }
 0x9f2   :  { %4429 = vmatmul.mubr.msk.f32.vlgmr.msra.gmra.mrb[6].mxu0 %vm863_vm3, %v2491_v59 }
 0x9f3   :  { %4437 = vmatpush3.xpose.msk.msra.mxu0 %vm863_vm3, %v2654_v24  ;;  %4438 = vmatprep.mubr.msk.f32.mxu0 %vm4586_vm2, %v4585_v46 }
 0x9f4   :  { %4446 = vmatprep.subr.mxu0 %v4585_v46 }
 0x9f6   :  { %4439 = vmatmul.mubr.msk.f32.vlgmr.msra.gmra.mrb[10].mxu0 %vm863_vm3, %v2652_v30 }
 0x9f7   :  { %4448 = vmatprep.mubr.msk.f32.mxu0 %vm4586_vm2, %v4585_v46 }
 0xa74   :  { %v2733_v17 = vpop.xlane.xlu0 %2732 }
 0xa75   :  { %v2737_v25 = vsub.f32 %v2729_v14, %v2733_v17 }
 0xa77   :  { %v2739_v55 = vmul.f32 1.442695, %v2737_v25 }
 0xa79   :  { %4568 = vpow2.f32 %v2739_v55 }
 0xa83   :  { %v4569_v62 = vpop.eup %4568 }
 0xa84   :  { %v2743_v63 = vsel %vm1055_vm4, %v4569_v62, 0.0 }
 0xa85   :  { %2744 = vadd.xlane.f32.xlu0 %v2743_v63 }
 0xac9   :  { %v2725_v24 = vpop.f32.mrb[10].mxu0 }
 0xaca   :  { %v2730_v38 = vmul.f32 0.35355338, %v2725_v24  ;;  %v4440_v40 = vpop.f32.mrb[11].mxu0 }
 0xacc   :  { %v2734_v50 = vsel %vm1055_vm4, %v2730_v38, -inf }
 0xacd   :  { %2735 = vmax.xlane.f32.xlu1 %v2734_v50 }
 0xade   :  { %2830 = vrot.lane.b32.xlu1 %v4911_v51, %s4597_s19 }
 0xb12   :  { %v2745_v35 = vpop.xlane.xlu0 %2744 }
 0xb5a   :  { %v2736_v7 = vpop.xlane.xlu1 %2735 }
 0xb5b   :  { %v2738_v54 = vsub.f32 %v2730_v38, %v2736_v7 }
 0xb5d   :  { %v2741_v46 = vmul.f32 1.442695, %v2738_v54 }
 0xb5e   :  { %v2831_v31 = vpop.permute.xlu1 %2830 }
 0xb5f   :  { %4570 = vpow2.f32 %v2741_v46  ;;  %4447 = vmatpush3.msk.msra.mxu0 %vm1084_vm5, %v2831_v31 }
 0xb60   :  { %4572 = vrcp.f32 %v2745_v35  ;;  %4451 = vmatprep.subr.mxu0 %v821_v1 }
 0xb69   :  { %v4571_v33 = vpop.eup %4570 }
 0xb6a   :  { %v2746_v34 = vsel %vm1055_vm4, %v4571_v33, 0.0  ;;  %v4573_v37 = vpop.eup %4572 }
 0xb6b   :  { %2747 = vadd.xlane.f32.xlu0 %v2746_v34  ;;  %v2751_v60 = vmul.f32 %v4573_v37, %v4569_v62 }
 0xb81   :  { %2753 = vrot.lane.b32.xlu0 %v4906_v57, %s4597_s19 }
 0xbf8   :  { %v2748_v36 = vpop.xlane.xlu0 %2747 }
 0xbf9   :  { %4574 = vrcp.f32 %v2748_v36 }
 0xbfc   :  { %v2754_v51 = vpop.permute.xlu0 %2753 }
 0xbfd   :  { %4442 = vmatpush3.msk.msra.mxu1 %vm1084_vm5, %v2754_v51 }
 0xbfe   :  { %4444 = vmatmul.mubr.msk.f32.vlgmr.msra.gmra.mrb[20].mxu1 %vm1080_vm6, %v2751_v60 }
 0xc03   :  { %v4575_v0 = vpop.eup %4574 }
 0xc04   :  { %v2752_v8 = vmul.f32 %v4575_v0, %v4571_v33  ;;  %v4270_v33 = vld [vmem:[%s5416_s6] ss:$0 sm:$0xff] }
 0xc05   :  { %v3231_v34 = vcombine.high %v4270_v33, %v4270_v33  ;;  %v3238_v35 = vrot.slane %v4270_v33, %v4674_v9 }
 0xc06   :  { %4449 = vmatmul.mubr.msk.f32.vlgmr.msra.gmra.mrb[12].mxu0 %vm1080_vm6, %v2752_v8 }
 0xc07   :  { %4452 = vmatpush3.msra.mxu0 %v821_v1  ;;  %v3245_v36 = vrot.slane %v3231_v34, %v4674_v9  ;;  %v3246_v37 = vcombine.high %v3238_v35, %v3238_v35  ;;  %v3254_v8 = vrot.slane %v3238_v35, %v4674_v9 }
 0xc09   :  { %v3247_v60 = vcombine.high %v3245_v36, %v3245_v36 }
 0xcd1   :  { %v2826_v57 = vpop.f32.mrb[20].mxu1 }
 0xcd2   :  { %v2916_v11 = vrot.slane %v2826_v57, %v4674_v9  ;;  %v4445_v12 = vpop.f32.mrb[21].mxu1  ;;  %v2909_v3 = vcombine.high %v2826_v57, %v2826_v57  ;;  %v3261_v57 = vrot.slane %v3245_v36, %v4674_v9 }
 0xcd4   :  { %v2924_v28 = vcombine.high %v2916_v11, %v2916_v11  ;;  %v2931_v5 = vrot.slane %v2916_v11, %v4674_v9  ;;  %v2923_v14 = vrot.slane %v2909_v3, %v4674_v9 }
 0xcd6   :  { %v2945_v4 = vrot.slane %v2924_v28, %v4674_v9  ;;  %v2938_v56 = vrot.slane %v2923_v14, %v4674_v9 }
 0xcd8   :  { %v2987_v6 = vcombine.low %v2931_v5, %v2945_v4  ;;  %v4267_v27 = vcombine.high %v2931_v5, %v2945_v4  ;;  %v3268_v4 = vrot.slane %v3246_v37, %v4674_v9  ;;  %v3275_v5 = vrot.slane %v3247_v60, %v4674_v9 }
 0xcd9   :  { %v2903_v10 = vpop.f32.mrb[12].mxu0 }
 0xcda   :  { %v2948_v32 = vcombine.high %v2903_v10, %v2903_v10  ;;  %v2955_v61 = vrot.slane %v2903_v10, %v4674_v9  ;;  %v4450_v29 = vpop.f32.mrb[13].mxu0  ;;  %v2997_v13 = vrot.slane %v2987_v6, %v4674_v9  ;;  %v3004_v2 = vrot.slane %v4267_v27, %v4674_v9 }
 0xcdb   :  { %v3277_v29 = vcombine.high %v3261_v57, %v3261_v57 }
 0xcdc   :  { %v2962_v58 = vrot.slane %v2948_v32, %v4674_v9  ;;  %v2963_v39 = vcombine.high %v2955_v61, %v2955_v61  ;;  %v2970_v41 = vrot.slane %v2955_v61, %v4674_v9  ;;  %v3019_v62 = vcombine.low %v2997_v13, %v3004_v2 }
 0xcdd   :  { %v3276_v61 = vcombine.high %v3254_v8, %v3254_v8 }
 0xcde   :  { %v2984_v23 = vrot.slane %v2963_v39, %v4674_v9  ;;  %v2985_v59 = vcombine.high %v2970_v41, %v2970_v41  ;;  %v2989_v30 = vcombine.low %v2938_v56, %v2970_v41  ;;  %v2977_v17 = vrot.slane %v2962_v58, %v4674_v9 }
 0xcdf   :  { %v3027_v7 = vrot.slane %v3019_v62, %v4674_v9 }
 0xce0   :  { %v2986_v25 = vcombine.high %v2984_v23, %v2984_v23  ;;  %v2990_v55 = vcombine.low %v2984_v23, %v2985_v59  ;;  %v3011_v63 = vrot.slane %v2989_v30, %v4674_v9  ;;  %v3278_v23 = vcombine.high %v3268_v4, %v3268_v4 }
 0xce1   :  { %v3279_v59 = vcombine.high %v3275_v5, %v3275_v5 }
 0xce2   :  { %v3018_v24 = vrot.slane %v2990_v55, %v4674_v9  ;;  %v3036_v38 = vcombine.low %v2986_v25, %v2977_v17 }
 0xce4   :  { %v3020_v40 = vcombine.low %v3011_v63, %v3018_v24  ;;  %v3043_v50 = vrot.slane %v3036_v38, %v4674_v9 }
 0xce6   :  { %v3034_v54 = vrot.slane %v3020_v40, %v4674_v9  ;;  %v3050_v31 = vrot.slane %v3043_v50, %v4674_v9 }
 0xce8   :  { %v3035_v46 = vcombine.low %v3027_v7, %v3034_v54 }
 0xcea   :  { %4453 = vmatprep.mubr.msk.f32.mxu0 %vm863_vm3, %v3035_v46 }
 0xceb   :  { %4454 = vmatmul.mubr.msk.f32.vlgmr.msra.gmra.mrb[6].mxu0 %vm863_vm3, %v3050_v31 }
 0xdbe   :  { %v4455_v51 = vpop.f32.mrb[6].mxu0 }
 0xdbf   :  { %v3189_v0 = vrot.slane %v4455_v51, %v4674_v9  ;;  %v3121_v1 = vpop.f32.mrb[7].mxu0 }
 0xdc0   :  { %v3134_v11 = vcombine.high %v3121_v1, %v3121_v1  ;;  %v3141_v12 = vrot.slane %v3121_v1, %v4674_v9 }
 0xdc1   :  { %v3190_v3 = vcombine.high %v3189_v0, %v3189_v0  ;;  %v3197_v28 = vrot.slane %v3189_v0, %v4674_v9 }
 0xdc2   :  { %v3148_v14 = vrot.slane %v3134_v11, %v4674_v9  ;;  %v3149_v6 = vcombine.high %v3141_v12, %v3141_v12  ;;  %v3157_v10 = vrot.slane %v3141_v12, %v4674_v9 }
 0xdc3   :  { %v3204_v27 = vrot.slane %v3190_v3, %v4674_v9  ;;  %v3223_v32 = vadd.f32 %v3197_v28, %v4710_v26 }
 0xdc4   :  { %v3150_v56 = vcombine.high %v3148_v14, %v3148_v14  ;;  %v3164_v58 = vrot.slane %v3148_v14, %v4674_v9  ;;  %v3171_v39 = vrot.slane %v3149_v6, %v4674_v9  ;;  %v3179_v41 = vcombine.high %v3157_v10, %v3157_v10 }
 0xdc5   :  { %v3224_v13 = vadd.f32 %v3204_v27, %v4696_v21  ;;  %v3215_v2 = vadd.f32 %v3157_v10, %v4681_v15  ;;  %v5169_v55 = vadd.f32 %v3254_v8, %v3223_v32 }
 0xdc6   :  { %v3178_v30 = vrot.slane %v3150_v56, %v4674_v9  ;;  %v3180_v17 = vcombine.high %v3164_v58, %v3164_v58  ;;  %v3181_v25 = vcombine.high %v3171_v39, %v3171_v39  ;;  %v3216_v26 = vadd.f32 %v3171_v39, %v4690_v19 }
 0xdc7   :  { %v5171_v62 = vadd.f32 %v3268_v4, %v3224_v13  ;;  %v3217_v63 = vadd.f32 %v3179_v41, %v4744_v52  ;;  %v3219_v24 = vadd.f32 %v3164_v58, %v4684_v16  ;;  %v5178_v50 = vadd.f32 %v3254_v8, %v3215_v2 }
 0xdc8   :  { %v3182_v38 = vcombine.high %v3178_v30, %v3178_v30  ;;  %v3218_v21 = vadd.f32 %v3181_v25, %v4748_v53  ;;  %v3220_v15 = vadd.f32 %v3178_v30, %v4687_v18  ;;  %v3221_v40 = vadd.f32 %v3180_v17, %v4693_v20 }
 0xdc9   :  { %v5180_v7 = vadd.f32 %v3268_v4, %v3216_v26  ;;  %v5182_v19 = vadd.f32 %v3276_v61, %v3217_v63  ;;  %v3359_v54 = vcombine.low %v5169_v55, %v5171_v62  ;;  %v5189_v16 = vadd.f32 %v3261_v57, %v3219_v24  ;;  %v5427_v26 = vld [vmem:[#allocation2_spill] sm:$0xff] }
 0xdca   :  { %v3222_v52 = vadd.f32 %v3182_v38, %v4700_v22  ;;  %v5187_v46 = vadd.f32 %v3278_v23, %v3218_v21  ;;  %v5191_v53 = vadd.f32 %v3275_v5, %v3220_v15  ;;  %v5196_v31 = vadd.f32 %v3277_v29, %v3221_v40 }
 0xdcb   :  { %v3366_v18 = vrot.slane %v3359_v54, %v4674_v9  ;;  %v3310_v20 = vcombine.low %v5178_v50, %v5180_v7 }
 0xdcc   :  { %v5198_v33 = vadd.f32 %v3279_v59, %v3222_v52  ;;  %v3311_v34 = vcombine.low %v5182_v19, %v5187_v46  ;;  %v3312_v22 = vcombine.low %v5189_v16, %v5191_v53 }
 0xdcd   :  { %v3373_v35 = vrot.slane %v3366_v18, %v4674_v9  ;;  %v3320_v37 = vrot.slane %v3310_v20, %v4674_v9 }
 0xdce   :  { %v3313_v36 = vcombine.low %v5196_v31, %v5198_v33  ;;  %v3327_v60 = vrot.slane %v3311_v34, %v4674_v9  ;;  %v3334_v0 = vrot.slane %v3312_v22, %v4674_v9 }
 0xdcf   :  { %v3379_v51 = vsel %vm208_vm1, %v3373_v35, 0.0 }
 0xdd0   :  { %3380 = vadd.xlane.f32.xlu0 %v3379_v51  ;;  %v3341_v8 = vrot.slane %v3313_v36, %v4674_v9  ;;  %v3342_v1 = vcombine.low %v3320_v37, %v3327_v60 }
 0xdd2   :  { %v3343_v57 = vcombine.low %v3334_v0, %v3341_v8  ;;  %v3350_v11 = vrot.slane %v3342_v1, %v4674_v9 }
 0xdd4   :  { %v3357_v12 = vrot.slane %v3343_v57, %v4674_v9 }
 0xdd6   :  { %v3358_v3 = vcombine.low %v3350_v11, %v3357_v12 }
 0xdd8   :  { %v3376_v28 = vsel %vm204_vm0, %v3358_v3, 0.0 }
 0xdd9   :  { %3377 = vadd.xlane.f32.xlu1 %v3376_v28 }
 0xe5d   :  { %v3381_v4 = vpop.xlane.xlu0 %3380 }
 0xe5e   :  { %v3383_v5 = vmul.f32 0.03125, %v3381_v4 }
 0xe60   :  { %v3421_v14 = vrot.slane %v3383_v5, %v4726_v42  ;;  %v3425_v6 = vrot.slane %v3383_v5, %v4728_v43 }
 0xe62   :  { %v5218_v10 = vsub.f32 %v5169_v55, %v3421_v14  ;;  %v5221_v27 = vsub.f32 %v5171_v62, %v3425_v6 }
 0xe64   :  { %v3454_v32 = vmul.f32 %v5218_v10, %v5218_v10  ;;  %v3455_v61 = vmul.f32 %v5221_v27, %v5221_v27 }
 0xe66   :  { %v3378_v29 = vpop.xlane.xlu1 %3377  ;;  %v3515_v56 = vcombine.low %v3454_v32, %v3455_v61 }
 0xe67   :  { %v3382_v58 = vmul.f32 0.03125, %v3378_v29 }
 0xe68   :  { %v3522_v39 = vrot.slane %v3515_v56, %v4674_v9  ;;  %v3750_v56 = vld [vmem:[%s5417_s9] sm:$0xff] }
 0xe69   :  { %v3389_v41 = vrot.slane %v3382_v58, %v4726_v42  ;;  %v3393_v13 = vrot.slane %v3382_v58, %v4728_v43  ;;  %v3397_v2 = vrot.slane %v3382_v58, %v4730_v44  ;;  %v3401_v23 = vrot.slane %v3382_v58, %v4732_v45 }
 0xe6a   :  { %v3529_v59 = vrot.slane %v3522_v39, %v4674_v9  ;;  %v3405_v30 = vrot.slane %v3382_v58, %v4734_v47  ;;  %v3409_v17 = vrot.slane %v3382_v58, %v4736_v48  ;;  %v3413_v25 = vrot.slane %v3382_v58, %v4738_v49  ;;  %v3752_v39 = vld [vmem:[%s5417_s9 + $0x10] sm:$0xff] }
 0xe6b   :  { %v3417_v63 = vrot.slane %v3382_v58, %v5427_v26  ;;  %v5238_v24 = vsub.f32 %v5178_v50, %v3389_v41  ;;  %v5241_v38 = vsub.f32 %v5180_v7, %v3393_v13  ;;  %v5244_v21 = vsub.f32 %v5182_v19, %v3397_v2  ;;  %v3751_v58 = vld [vmem:[%s5417_s9 + $0x8] sm:$0xff]  ;;  %v3753_v13 = vld [vmem:[%s5417_s9 + $0x18] sm:$0xff] }
 0xe6c   :  { %v3535_v15 = vsel %vm208_vm1, %v3529_v59, 0.0  ;;  %v5248_v40 = vsub.f32 %v5187_v46, %v3401_v23  ;;  %v5251_v54 = vsub.f32 %v5189_v16, %v3405_v30  ;;  %v5254_v52 = vsub.f32 %v5191_v53, %v3409_v17  ;;  %v4271_v17 = vld [vmem:[%s5418_s7] ss:$0 sm:$0xff] }
 0xe6d   :  { %3536 = vadd.xlane.f32.xlu1 %v3535_v15  ;;  %v5257_v18 = vsub.f32 %v5196_v31, %v3413_v25  ;;  %v5260_v20 = vsub.f32 %v5198_v33, %v3417_v63  ;;  %v3446_v34 = vmul.f32 %v5238_v24, %v5238_v24  ;;  %v3447_v22 = vmul.f32 %v5241_v38, %v5241_v38  ;;  %v4272_v25 = vld [vmem:[%s5419_s8] ss:$0 sm:$0xff] }
 0xe6e   :  { %v3448_v35 = vmul.f32 %v5244_v21, %v5244_v21  ;;  %v3449_v36 = vmul.f32 %v5248_v40, %v5248_v40  ;;  %v3450_v37 = vmul.f32 %v5251_v54, %v5251_v54  ;;  %v3451_v60 = vmul.f32 %v5254_v52, %v5254_v52 }
 0xe6f   :  { %v3452_v51 = vmul.f32 %v5257_v18, %v5257_v18  ;;  %v3453_v0 = vmul.f32 %v5260_v20, %v5260_v20  ;;  %v3466_v8 = vcombine.low %v3446_v34, %v3447_v22  ;;  %v4494_v41 = vpack.c.bf16 %v3751_v58, %v3750_v56 }
 0xe70   :  { %v3467_v1 = vcombine.low %v3448_v35, %v3449_v36  ;;  %v3468_v57 = vcombine.low %v3450_v37, %v3451_v60  ;;  %v4498_v2 = vpack.c.bf16 %v3753_v13, %v3752_v39  ;;  %v3611_v63 = vcombine.high %v4271_v17, %v4271_v17 }
 0xe71   :  { %v3469_v11 = vcombine.low %v3452_v51, %v3453_v0  ;;  %v3476_v12 = vrot.slane %v3466_v8, %v4674_v9  ;;  %4495 = vmatprep.subr.bf16.mxu1 %v4494_v41  ;;  %v3618_v15 = vrot.slane %v4271_v17, %v4674_v9  ;;  %v3683_v34 = vcombine.high %v4272_v25, %v4272_v25 }
 0xe72   :  { %v3483_v3 = vrot.slane %v3467_v1, %v4674_v9  ;;  %v3490_v28 = vrot.slane %v3468_v57, %v4674_v9  ;;  %4497 = vmatpush3.bf16.msra.mxu1 %v4494_v41  ;;  %v3690_v60 = vrot.slane %v4272_v25, %v4674_v9  ;;  %v3625_v51 = vrot.slane %v3611_v63, %v4674_v9 }
 0xe73   :  { %v3497_v4 = vrot.slane %v3469_v11, %v4674_v9  ;;  %4499 = vmatprep.subr.bf16.mxu1 %v4498_v2  ;;  %v3626_v37 = vcombine.high %v3618_v15, %v3618_v15  ;;  %v3697_v57 = vrot.slane %v3683_v34, %v4674_v9  ;;  %v3634_v11 = vrot.slane %v3618_v15, %v4674_v9 }
 0xe74   :  { %v3498_v5 = vcombine.low %v3476_v12, %v3483_v3  ;;  %v3698_v12 = vcombine.high %v3690_v60, %v3690_v60  ;;  %v3627_v3 = vcombine.high %v3625_v51, %v3625_v51 }
 0xe75   :  { %v3499_v14 = vcombine.low %v3490_v28, %v3497_v4  ;;  %v3648_v28 = vrot.slane %v3626_v37, %v4674_v9  ;;  %v3713_v39 = vrot.slane %v3697_v57, %v4674_v9  ;;  %v3656_v13 = vcombine.high %v3634_v11, %v3634_v11 }
 0xe76   :  { %v3506_v6 = vrot.slane %v3498_v5, %v4674_v9  ;;  %4501 = vmatpush3.bf16.msra.mxu1 %v4498_v2 }
 0xe77   :  { %v3513_v32 = vrot.slane %v3499_v14, %v4674_v9  ;;  %v3699_v14 = vcombine.high %v3697_v57, %v3697_v57  ;;  %v3729_v63 = vcombine.high %v3713_v39, %v3713_v39 }
 0xe79   :  { %v3514_v61 = vcombine.low %v3506_v6, %v3513_v32  ;;  %v3641_v6 = vrot.slane %v3625_v51, %v4674_v9  ;;  %v3706_v32 = vrot.slane %v3690_v60, %v4674_v9  ;;  %v3727_v41 = vrot.slane %v3699_v14, %v4674_v9 }
 0xe7b   :  { %v3532_v29 = vsel %vm204_vm0, %v3514_v61, 0.0  ;;  %v3720_v61 = vrot.slane %v3698_v12, %v4674_v9  ;;  %v3657_v2 = vcombine.high %v3641_v6, %v3641_v6  ;;  %v3731_v15 = vcombine.high %v3727_v41, %v3727_v41 }
 0xe7c   :  { %3533 = vadd.xlane.f32.xlu0 %v3532_v29  ;;  %v3655_v29 = vrot.slane %v3627_v3, %v4674_v9 }
 0xefa   :  { %v3537_v23 = vpop.xlane.xlu1 %3536 }
 0xefb   :  { %v3539_v59 = vmul.f32 0.03125, %v3537_v23  ;;  %v3659_v23 = vcombine.high %v3655_v29, %v3655_v29 }
 0xefd   :  { %v3541_v30 = vadd.f32 1e-12, %v3539_v59  ;;  %v3730_v59 = vcombine.high %v3720_v61, %v3720_v61 }
 0xeff   :  { %4576 = vrsqrt.f32 %v3541_v30 }
 0xf09   :  { %v4577_v22 = vpop.eup %4576  ;;  %v3534_v35 = vpop.xlane.xlu0 %3533 }
 0xf0a   :  { %v3538_v36 = vmul.f32 0.03125, %v3534_v35  ;;  %v3581_v0 = vrot.slane %v4577_v22, %v4726_v42  ;;  %v3585_v8 = vrot.slane %v4577_v22, %v4728_v43 }
 0xf0c   :  { %v3540_v1 = vadd.f32 1e-12, %v3538_v36  ;;  %v3604_v4 = vmul.f32 %v3581_v0, %v5218_v10  ;;  %v3605_v5 = vmul.f32 %v3585_v8, %v5221_v27  ;;  %v3658_v10 = vcombine.high %v3648_v28, %v3648_v28 }
 0xf0d   :  { %v3728_v27 = vcombine.high %v3706_v32, %v3706_v32 }
 0xf0e   :  { %4578 = vrsqrt.f32 %v3540_v1  ;;  %v3676_v56 = vmul.f32 %v3634_v11, %v3604_v4  ;;  %v3677_v58 = vmul.f32 %v3648_v28, %v3605_v5 }
 0xf10   :  { %v3748_v17 = vadd.f32 %v3706_v32, %v3676_v56  ;;  %v3749_v25 = vadd.f32 %v3720_v61, %v3677_v58 }
 0xf18   :  { %v4579_v30 = vpop.eup %4578 }
 0xf19   :  { %v3549_v34 = vrot.slane %v4579_v30, %v4726_v42  ;;  %v3553_v22 = vrot.slane %v4579_v30, %v4728_v43  ;;  %v3557_v35 = vrot.slane %v4579_v30, %v4730_v44  ;;  %v3561_v36 = vrot.slane %v4579_v30, %v4732_v45 }
 0xf1a   :  { %v3565_v37 = vrot.slane %v4579_v30, %v4734_v47  ;;  %v3569_v60 = vrot.slane %v4579_v30, %v4736_v48  ;;  %v3573_v51 = vrot.slane %v4579_v30, %v4738_v49  ;;  %v3577_v0 = vrot.slane %v4579_v30, %v5427_v26 }
 0xf1b   :  { %v3596_v8 = vmul.f32 %v3549_v34, %v5238_v24  ;;  %v3597_v1 = vmul.f32 %v3553_v22, %v5241_v38  ;;  %v3598_v42 = vmul.f32 %v3557_v35, %v5244_v21  ;;  %v3599_v43 = vmul.f32 %v3561_v36, %v5248_v40  ;;  %v3936_v22 = vld [vmem:[%s5420_s11 + $0x20] sm:$0xff]  ;;  %v3937_v35 = vld [vmem:[%s5420_s11 + $0x28] sm:$0xff] }
 0xf1c   :  { %v3600_v44 = vmul.f32 %v3565_v37, %v5251_v54  ;;  %v3601_v45 = vmul.f32 %v3569_v60, %v5254_v52  ;;  %v3602_v47 = vmul.f32 %v3573_v51, %v5257_v18  ;;  %v3603_v48 = vmul.f32 %v3577_v0, %v5260_v20  ;;  %v3938_v37 = vld [vmem:[%s5420_s11 + $0x30] sm:$0xff]  ;;  %v3939_v60 = vld [vmem:[%s5420_s11 + $0x38] sm:$0xff]  ;;  %v4273_v0 = vld [vmem:[%s5421_s10] ss:$0 sm:$0xff] }
 0xf1d   :  { %v3668_v57 = vmul.f32 %v3634_v11, %v3596_v8  ;;  %v3669_v49 = vmul.f32 %v3648_v28, %v3597_v1  ;;  %v3670_v12 = vmul.f32 %v3656_v13, %v3598_v42  ;;  %v3671_v26 = vmul.f32 %v3658_v10, %v3599_v43 }
 0xf1e   :  { %v3672_v3 = vmul.f32 %v3641_v6, %v3600_v44  ;;  %v3673_v24 = vmul.f32 %v3655_v29, %v3601_v45  ;;  %v3674_v4 = vmul.f32 %v3657_v2, %v3602_v47  ;;  %v3675_v38 = vmul.f32 %v3659_v23, %v3603_v48 }
 0xf1f   :  { %v3740_v5 = vadd.f32 %v3706_v32, %v3668_v57  ;;  %v3741_v21 = vadd.f32 %v3720_v61, %v3669_v49  ;;  %v3742_v14 = vadd.f32 %v3728_v27, %v3670_v12  ;;  %v3743_v40 = vadd.f32 %v3730_v59, %v3671_v26  ;;  %v3932_v27 = vld [vmem:[%s5420_s11] sm:$0xff]  ;;  %v3933_v59 = vld [vmem:[%s5420_s11 + $0x8] sm:$0xff] }
 0xf20   :  { %v3744_v56 = vadd.f32 %v3713_v39, %v3672_v3  ;;  %v3745_v54 = vadd.f32 %v3727_v41, %v3673_v24  ;;  %v3746_v58 = vadd.f32 %v3729_v63, %v3674_v4  ;;  %v3747_v52 = vadd.f32 %v3731_v15, %v3675_v38  ;;  %v3935_v63 = vld [vmem:[%s5420_s11 + $0x18] sm:$0xff] }
 0xf21   :  { %v3771_v30 = vcombine.low %v3740_v5, %v3741_v21  ;;  %v3772_v18 = vcombine.low %v3742_v14, %v3743_v40  ;;  %v3820_v6 = vcombine.low %v3748_v17, %v3749_v25  ;;  %v4502_v17 = vpack.c.bf16 %v3933_v59, %v3932_v27  ;;  %v3934_v25 = vld [vmem:[%s5420_s11 + $0x10] sm:$0xff] }
 0xf22   :  { %v3773_v34 = vcombine.low %v3744_v56, %v3745_v54  ;;  %v3774_v20 = vcombine.low %v3746_v58, %v3747_v52  ;;  %v4506_v15 = vpack.c.bf16 %v3935_v63, %v3934_v25  ;;  %v4510_v36 = vpack.c.bf16 %v3937_v35, %v3936_v22  ;;  %v4276_v58 = vld [vmem:[%s5422_s12] ss:$0 sm:$0xff] }
 0xf23   :  { %v3781_v11 = vrot.slane %v3771_v30, %v4674_v9  ;;  %v3788_v28 = vrot.slane %v3772_v18, %v4674_v9  ;;  %v3827_v41 = vrot.slane %v3820_v6, %v4674_v9  ;;  %4503 = vmatprep.subr.bf16.mxu0 %v4502_v17  ;;  %v4514_v51 = vpack.c.bf16 %v3939_v60, %v3938_v37 }
 0xf24   :  { %v3795_v29 = vrot.slane %v3773_v34, %v4674_v9  ;;  %v3802_v32 = vrot.slane %v3774_v20, %v4674_v9  ;;  %4505 = vmatpush3.bf16.msra.mxu0 %v4502_v17 }
 0xf25   :  { %v3803_v61 = vcombine.low %v3781_v11, %v3788_v28  ;;  %v3834_v23 = vrot.slane %v3827_v41, %v4674_v9  ;;  %4507 = vmatprep.subr.bf16.mxu0 %v4506_v15 }
 0xf26   :  { %v3804_v13 = vcombine.low %v3795_v29, %v3802_v32 }
 0xf27   :  { %v3811_v39 = vrot.slane %v3803_v61, %v4674_v9 }
 0xf28   :  { %v3818_v2 = vrot.slane %v3804_v13, %v4674_v9  ;;  %4509 = vmatpush3.bf16.msra.mxu0 %v4506_v15 }
 0xf29   :  { %4511 = vmatprep.subr.bf16.mxu0 %v4510_v36 }
 0xf2a   :  { %v3819_v10 = vcombine.low %v3811_v39, %v3818_v2 }
 0xf2c   :  { %4464 = vmatprep.mubr.msk.f32.mxu1 %vm204_vm0, %v3819_v10  ;;  %4513 = vmatpush3.bf16.msra.mxu0 %v4510_v36 }
 0xf2d   :  { %4465 = vmatmul.mubr.msk.f32.vlgmr.msra.gmra.mrb[22].mxu1 %vm204_vm0, %v3834_v23  ;;  %4515 = vmatprep.subr.bf16.mxu0 %v4514_v51 }
 0xf30   :  { %4517 = vmatpush3.bf16.msra.mxu0 %v4514_v51 }
0x1000   :  { %v4466_v8 = vpop.f32.mrb[22].mxu1 }
0x1001   :  { %v3911_v1 = vadd.f32 %v4466_v8, %v4273_v0  ;;  %v3905_v42 = vpop.f32.mrb[23].mxu1 }
0x1002   :  { %v3906_v43 = vadd.f32 %v4273_v0, %v3905_v42 }
0x1003   :  { %v3915_v44 = vmul.f32 %v3911_v1, %v3911_v1 }
0x1004   :  { %v3914_v45 = vmul.f32 %v3906_v43, %v3906_v43 }
0x1005   :  { %v3917_v47 = vmul.f32 %v3915_v44, %v3911_v1 }
0x1006   :  { %v3916_v48 = vmul.f32 %v3914_v45, %v3906_v43 }
0x1007   :  { %v3919_v57 = vmul.f32 0.044715, %v3917_v47 }
0x1008   :  { %v3918_v49 = vmul.f32 0.044715, %v3916_v48 }
0x1009   :  { %v3921_v12 = vadd.f32 %v3919_v57, %v3911_v1 }
0x100a   :  { %v3920_v26 = vadd.f32 %v3918_v49, %v3906_v43 }
0x100b   :  { %v3923_v3 = vmul.f32 0.7978846, %v3921_v12 }
0x100c   :  { %v3922_v24 = vmul.f32 0.7978846, %v3920_v26 }
0x100d   :  { %4580 = vtanh.f32 %v3923_v3 }
0x100e   :  { %4582 = vtanh.f32 %v3922_v24 }
0x1017   :  { %v4581_v4 = vpop.eup %4580 }
0x1018   :  { %v4583_v38 = vpop.eup %4582  ;;  %v3927_v5 = vadd.f32 1.0, %v4581_v4 }
0x1019   :  { %v3926_v21 = vadd.f32 1.0, %v4583_v38 }
0x101a   :  { %v3929_v14 = vmul.f32 0.5, %v3927_v5 }
0x101b   :  { %v3928_v40 = vmul.f32 0.5, %v3926_v21 }
0x101c   :  { %v3931_v54 = vmul.f32 %v3929_v14, %v3911_v1 }
0x101d   :  { %v3930_v56 = vmul.f32 %v3928_v40, %v3906_v43 }
0x101f   :  { %4483 = vmatprep.mubr.msk.f32.mxu0 %vm3947_vm7, %v3930_v56 }
0x1020   :  { %4484 = vmatmul.mubr.msk.f32.vlgmr.msra.gmra.mrb[14].mxu0 %vm3947_vm7, %v3931_v54 }
0x10f3   :  { %v4485_v52 = vpop.f32.mrb[14].mxu0 }
0x10f4   :  { %v4026_v30 = vadd.f32 %v4485_v52, %v4276_v58  ;;  %v4020_v18 = vpop.f32.mrb[15].mxu0 }
0x10f5   :  { %v4021_v34 = vadd.f32 %v4276_v58, %v4020_v18 }
0x10f6   :  { %v4086_v20 = vrot.slane %v4026_v30, %v4674_v9 }
0x10f7   :  { %v4031_v11 = vcombine.high %v4021_v34, %v4021_v34  ;;  %v4038_v28 = vrot.slane %v4021_v34, %v4674_v9 }
0x10f8   :  { %v4087_v6 = vcombine.high %v4086_v20, %v4086_v20  ;;  %v4094_v10 = vrot.slane %v4086_v20, %v4674_v9 }
0x10f9   :  { %v4045_v29 = vrot.slane %v4031_v11, %v4674_v9  ;;  %v4046_v32 = vcombine.high %v4038_v28, %v4038_v28  ;;  %v4054_v61 = vrot.slane %v4038_v28, %v4674_v9 }
0x10fa   :  { %v4101_v23 = vrot.slane %v4087_v6, %v4674_v9  ;;  %v4120_v51 = vadd.f32 %v4094_v10, %v5169_v55 }
0x10fb   :  { %v4047_v13 = vcombine.high %v4045_v29, %v4045_v29  ;;  %v4061_v39 = vrot.slane %v4045_v29, %v4674_v9  ;;  %v4068_v41 = vrot.slane %v4046_v32, %v4674_v9  ;;  %v4076_v2 = vcombine.high %v4054_v61, %v4054_v61 }
0x10fc   :  { %v4112_v63 = vadd.f32 %v4054_v61, %v5178_v50  ;;  %v4121_v8 = vadd.f32 %v4101_v23, %v5171_v62 }
0x10fd   :  { %v4075_v27 = vrot.slane %v4047_v13, %v4674_v9  ;;  %v4077_v59 = vcombine.high %v4061_v39, %v4061_v39  ;;  %v4078_v17 = vcombine.high %v4068_v41, %v4068_v41  ;;  %v4113_v25 = vadd.f32 %v4068_v41, %v5180_v7 }
0x10fe   :  { %v4114_v15 = vadd.f32 %v4076_v2, %v5182_v19  ;;  %v4116_v22 = vadd.f32 %v4061_v39, %v5189_v16 }
0x10ff   :  { %v4079_v35 = vcombine.high %v4075_v27, %v4075_v27  ;;  %v4115_v36 = vadd.f32 %v4078_v17, %v5187_v46  ;;  %v4117_v37 = vadd.f32 %v4075_v27, %v5191_v53  ;;  %v4118_v60 = vadd.f32 %v4077_v59, %v5196_v31 }
0x1100   :  { %v4132_v0 = vcombine.low %v4112_v63, %v4113_v25  ;;  %v4154_v42 = vrot.slane %v4116_v22, %v4674_v9  ;;  %v4193_v53 = vrot.slane %v4121_v8, %v4674_v9 }
0x1101   :  { %v4119_v7 = vadd.f32 %v4079_v35, %v5198_v33  ;;  %v4133_v1 = vcombine.low %v4114_v15, %v4115_v36  ;;  %v4171_v50 = vcombine.low %v4117_v37, %v4118_v60 }
0x1102   :  { %v4140_v19 = vrot.slane %v4132_v0, %v4674_v9  ;;  %v4169_v33 = vrot.slane %v4154_v42, %v4674_v9  ;;  %v4208_v45 = vrot.slane %v4193_v53, %v4674_v9 }
0x1103   :  { %v4147_v16 = vrot.slane %v4133_v1, %v4674_v9  ;;  %v4172_v46 = vcombine.low %v4119_v7, %v4120_v51  ;;  %v4179_v31 = vrot.slane %v4171_v50, %v4674_v9 }
0x1105   :  { %v4155_v43 = vcombine.low %v4140_v19, %v4147_v16  ;;  %v4186_v55 = vrot.slane %v4172_v46, %v4674_v9 }
0x1107   :  { %v4162_v62 = vrot.slane %v4155_v43, %v4674_v9  ;;  %v4194_v44 = vcombine.low %v4179_v31, %v4186_v55 }
0x1109   :  { %v4170_v47 = vcombine.low %v4162_v62, %v4169_v33  ;;  %v4201_v48 = vrot.slane %v4194_v44, %v4674_v9 }
0x110b   :  { %v4209_v57 = vcombine.low %v4201_v48, %v4208_v45  ;;  %4213 = vst.msk [vmem:[%s5423_s13] sm:$0x1f] %vm4212_vm8, %v4170_v47 }
0x110d   :  { %4214 = vst.msk [vmem:[%s5423_s13 + $0x8] sm:$0x1f] %vm4212_vm8, %v4209_v57 }

// kernel: vision_to_llama_forward.8
= control target key start
LH: loop header
LB: loop body
LE: loop exit
PB: predicated region body
PF: predicated region fallthrough
CT: control target
= control target key end

     0   :  { %v54_v0 = vlaneseq  ;;  %v5565_v3 = vmov 1966171168   ;;  %vm226_vm0 = vcmask 523264   ;;  %vm230_vm1 = vcmask 517120   ;;  %s5574_s21 = smov 80   ;;  %s6565_s0 = inlined_call_operand.vmem [shape: bf16[2,5,64], index: 0, kind: input, shape index: {}]   ;;  %s6566_s2 = inlined_call_operand.vmem [shape: bf16[64,192], index: 2, kind: input, shape index: {}]   ;;  %s6567_s3 = inlined_call_operand.vmem [shape: bf16[64,32], index: 3, kind: input, shape index: {}]   ;;  %s6568_s10 = inlined_call_operand.vmem [shape: f32[5,64], index: 10, kind: input, shape index: {}]   ;;  %s6569_s4 = inlined_call_operand.vmem [shape: bf16[32,128], index: 4, kind: input, shape index: {}]   ;;  %s6570_s1 = inlined_call_operand.vmem [shape: bf16[1,64], index: 1, kind: input, shape index: {}]   ;;  %s6571_s9 = inlined_call_operand.vmem [shape: f32[64,64], index: 9, kind: input, shape index: {}]   ;;  %s6572_s11 = inlined_call_operand.vmem [shape: f32[5,64], index: 11, kind: input, shape index: {}]   ;;  %s6573_s12 = inlined_call_operand.vmem [shape: f32[5,5], index: 12, kind: input, shape index: {}]   ;;  %s6574_s5 = inlined_call_operand.vmem [shape: bf16[64,64], index: 5, kind: input, shape index: {}]   ;;  %s6575_s7 = inlined_call_operand.vmem [shape: bf16[64,256], index: 7, kind: input, shape index: {}]   ;;  %s6576_s6 = inlined_call_operand.vmem [shape: bf16[1,64], index: 6, kind: input, shape index: {}]   ;;  %s6577_s8 = inlined_call_operand.vmem [shape: bf16[128,64], index: 8, kind: input, shape index: {}]   ;;  %s6578_s13 = inlined_call_operand.vmem [shape: bf16[2,5,64], index: 13, kind: output, shape index: {}]  }
   0x1   :  { %v44_v1 = vld [vmem:[%s6565_s0] sm:$0x7]  ;;  %v45_v2 = vld [vmem:[%s6565_s0 + $0x4] sm:$0x7]  ;;  %v52_v4 = vunpack.c.l.s4 %v5565_v3  ;;  %v5494_v59 = vld [vmem:[%s6566_s2 + $0x14] ss:$8 sps:$4 sm:$0xff]  }
   0x2   :  { %v46_v5 = vunpack.c.l.bf16 %v44_v1  ;;  %v47_v6 = vunpack.c.l.bf16 %v45_v2  ;;  %v5651_v7 = vshrl.u32 %v54_v0, 7  ;;  %v5491_v56 = vld [vmem:[%s6566_s2 + $0x4] ss:$8 sps:$4 sm:$0xff]   ;;  %v5493_v57 = vld [vmem:[%s6566_s2] ss:$8 sps:$4 sm:$0xff]   ;;  %v4997_v0 = vld [vmem:[%s6567_s3 + $0x10] sm:$0xff]  }
   0x3   :  { %v53_v8 = vunpack.c.0.s8 %v52_v4  ;;  %5324 = vmatprep.subr.bf16.mxu0 %v5491_v56  ;;  %v4925_v58 = vld [vmem:[%s6567_s3] sm:$0xff]   ;;  %v5496_v60 = vld [vmem:[%s6566_s2 + $0x10] ss:$8 sps:$4 sm:$0xff]   ;;  %v4996_v61 = vld [vmem:[%s6567_s3 + $0x8] sm:$0xff]   ;;  %v5566_v2 = vmov 0.0   ;;  %vm653_vm2 = vcmask 261120  }
   0x4   :  { %v50_v9 = vcombine.high %v46_v5, %v46_v5  ;;  %v89_v10 = vcombine.high %v47_v6, %v47_v6  ;;  %5326 = vmatpush1.bf16.msra.mxu0 %v5493_v57  ;;  %5340 = vmatprep.subr.bf16.mxu1 %v4925_v58  ;;  %v5497_v62 = vld [vmem:[%s6566_s2 + $0x24] ss:$8 sps:$4 sm:$0xff]   ;;  %v5499_v63 = vld [vmem:[%s6566_s2 + $0x20] ss:$8 sps:$4 sm:$0xff]   ;;  %v5500_v1 = vld [vmem:[%s6566_s2 + $0x34] ss:$8 sps:$4 sm:$0xff]  }
   0x5   :  { %v5654_v11 = vsub.s32 %v53_v8, %v5651_v7  ;;  %5342 = vmatpush3.bf16.msra.mxu1 %v4925_v58  ;;  %5328 = vmatprep.subr.bf16.mxu0 %v5494_v59  ;;  %v4998_v3 = vld [vmem:[%s6567_s3 + $0x18] sm:$0xff]   ;;  %vm5568_vm3 = vmmov 0   ;;  %vm1638_vm4 = vcmask 130048   ;;  %vm1947_vm5 = vcmask 1044480   ;;  %s5569_s3 = smov 112  }
   0x6   :  { %5344 = vmatprep.subr.bf16.mxu1 %v4996_v61  ;;  %541 = vmatprep.mubr.f32.mxu0 %v5566_v2  ;;  %v5502_v4 = vld [vmem:[%s6566_s2 + $0x30] ss:$8 sps:$4 sm:$0xff]   ;;  %s5567_s2 = smov 64   ;;  %vm1881_vm6 = vcmask 36864   ;;  %vm1943_vm7 = vcmask 39936   ;;  %vm4852_vm8 = vcmask 518144  }
   0x7   :  { %v57_v12 = vrot.slane %v46_v5, %v5654_v11  ;;  %v64_v13 = vrot.slane %v50_v9, %v5654_v11  ;;  %v96_v14 = vrot.slane %v47_v6, %v5654_v11  ;;  %v103_v15 = vrot.slane %v89_v10, %v5654_v11  ;;  %v5764_v5 = vld [vmem:[%s6568_s10] sm:$0x1f]  ;;  %s5572_s10 = smov 96  }
   0x8   :  { %5330 = vmatpush1.bf16.msra.mxu0 %v5496_v60  ;;  %v5769_v6 = vld [vmem:[%s6569_s4] sm:$0xff]   ;;  %v5773_v8 = vrot.slane %v5764_v5, %v5654_v11  ;;  %vm4853_vm9 = vsmask.f32 2304 }
   0x9   :  { %v65_v16 = vcombine.high %v57_v12, %v57_v12  ;;  %v5661_v17 = vrot.slane %v57_v12, %v5654_v11  ;;  %v5664_v18 = vrot.slane %v64_v13, %v5654_v11  ;;  %v104_v19 = vcombine.high %v96_v14, %v96_v14  ;;  %5346 = vmatpush3.bf16.msra.mxu1 %v4996_v61  ;;  %v138_v10 = vld [vmem:[%s6570_s1] sm:$0x1]  ;;  %s5573_s1 = smov 16   ;;  %vm4854_vm10 = vmand %vm4852_vm8, %vm4853_vm9 }
   0xa   :  { %v5667_v20 = vrot.slane %v96_v14, %v5654_v11  ;;  %v5670_v21 = vrot.slane %v103_v15, %v5654_v11  ;;  %5348 = vmatprep.subr.bf16.mxu1 %v4997_v0  ;;  %5332 = vmatprep.subr.bf16.mxu0 %v5497_v62  ;;  %v5778_v9 = vrot.slane %v5773_v8, %v5654_v11  ;;  %v5786_v12 = vsub.s32 0, %v5651_v7 }
   0xb   :  { %v5673_v22 = vrot.slane %v65_v16, %v5654_v11  ;;  %v5677_v23 = vcombine.high %v5661_v17, %v5661_v17  ;;  %v5680_v24 = vrot.slane %v104_v19, %v5654_v11  ;;  %v140_v25 = vmul.f32 %v5661_v17, %v5661_v17 }
   0xc   :  { %v5686_v26 = vcombine.high %v5667_v20, %v5667_v20  ;;  %v144_v27 = vmul.f32 %v5664_v18, %v5664_v18  ;;  %v145_v28 = vmul.f32 %v5667_v20, %v5667_v20  ;;  %v149_v36 = vmul.f32 %v5670_v21, %v5670_v21  ;;  %5334 = vmatpush1.bf16.msra.mxu0 %v5499_v63 }
   0xd   :  { %v5694_v29 = vcombine.high %v5673_v22, %v5673_v22  ;;  %v141_v30 = vmul.f32 %v5673_v22, %v5673_v22  ;;  %v142_v31 = vmul.f32 %v5677_v23, %v5677_v23  ;;  %v146_v32 = vmul.f32 %v5680_v24, %v5680_v24  ;;  %5350 = vmatpush3.bf16.msra.mxu1 %v4997_v0 }
   0xe   :  { %v147_v33 = vmul.f32 %v5686_v26, %v5686_v26  ;;  %v162_v34 = vcombine.low %v144_v27, %v145_v28  ;;  %v5706_v35 = vcombine.high %v5680_v24, %v5680_v24  ;;  %5336 = vmatprep.subr.bf16.mxu0 %v5500_v1  ;;  %5352 = vmatprep.subr.bf16.mxu1 %v4998_v3  ;;  %v139_v13 = vunpack.c.l.bf16 %v138_v10 }
   0xf   :  { %v143_v37 = vmul.f32 %v5694_v29, %v5694_v29  ;;  %v160_v38 = vcombine.low %v140_v25, %v141_v30 }
  0x10   :  { %v163_v39 = vcombine.low %v146_v32, %v147_v33  ;;  %v184_v40 = vrot.slane %v162_v34, %v5654_v11  ;;  %v148_v41 = vmul.f32 %v5706_v35, %v5706_v35  ;;  %5338 = vmatpush1.bf16.msra.mxu0 %v5502_v4  ;;  %v306_v14 = vrot.slane %v139_v13, %v5786_v12 }
  0x11   :  { %v161_v42 = vcombine.low %v142_v31, %v143_v37  ;;  %v170_v43 = vrot.slane %v160_v38, %v5654_v11  ;;  %5354 = vmatpush3.bf16.msra.mxu1 %v4998_v3 }
  0x12   :  { %v191_v44 = vrot.slane %v163_v39, %v5654_v11  ;;  %v209_v45 = vcombine.low %v148_v41, %v149_v36  ;;  %5356 = vmatprep.subr.bf16.mxu1 %v5769_v6  ;;  %v308_v15 = vcombine.high %v306_v14, %v306_v14  ;;  %v315_v27 = vrot.slane %v306_v14, %v5654_v11 }
  0x13   :  { %v177_v46 = vrot.slane %v161_v42, %v5654_v11  ;;  %v253_v41 = vsub.s32 2, %v5651_v7  ;;  %v257_v42 = vsub.s32 3, %v5651_v7 }
  0x14   :  { %v193_v47 = vcombine.low %v184_v40, %v191_v44  ;;  %v216_v49 = vrot.slane %v209_v45, %v5654_v11  ;;  %v322_v28 = vrot.slane %v308_v15, %v5654_v11  ;;  %v323_v33 = vcombine.high %v315_v27, %v315_v27 }
  0x15   :  { %v192_v48 = vcombine.low %v170_v43, %v177_v46  ;;  %v331_v36 = vrot.slane %v315_v27, %v5654_v11  ;;  %v5796_v40 = vsub.s32 1, %v5651_v7  ;;  %v261_v43 = vsub.s32 4, %v5651_v7 }
  0x16   :  { %v207_v50 = vrot.slane %v193_v47, %v5654_v11  ;;  %v223_v53 = vrot.slane %v216_v49, %v5654_v11  ;;  %v324_v34 = vcombine.high %v322_v28, %v322_v28  ;;  %v338_v37 = vrot.slane %v322_v28, %v5654_v11 }
  0x17   :  { %v200_v51 = vrot.slane %v192_v48, %v5654_v11  ;;  %v345_v38 = vrot.slane %v323_v33, %v5654_v11  ;;  %v265_v44 = vsub.s32 5, %v5651_v7  ;;  %v6580_v45 = vsub.s32 6, %v5651_v7 }
  0x18   :  { %v231_v55 = vsel %vm230_vm1, %v223_v53, 0.0  ;;  %v352_v39 = vrot.slane %v324_v34, %v5654_v11  ;;  %v6579_v46 = vsub.s32 7, %v5651_v7  ;;  %v353_v48 = vcombine.high %v331_v36, %v331_v36 }
  0x19   :  { %v208_v52 = vcombine.low %v200_v51, %v207_v50  ;;  %v354_v49 = vcombine.high %v338_v37, %v338_v37  ;;  %v355_v50 = vcombine.high %v345_v38, %v345_v38 }
  0x1a   :  { %v356_v51 = vcombine.high %v352_v39, %v352_v39 }
  0x1b   :  { %v227_v54 = vsel %vm226_vm0, %v208_v52, 0.0 }
  0x1c   :  { %228 = vadd.xlane.f32.xlu0 %v227_v54 }
  0x20   :  { %232 = vadd.xlane.f32.xlu0 %v231_v55 }
  0x36   :  { %1290 = vrot.lane.b32.xlu0 %v5778_v9, %s5567_s2 }
  0xa9   :  { %v229_v16 = vpop.xlane.xlu0 %228 }
  0xaa   :  { %v235_v19 = vmul.f32 0.015625, %v229_v16 }
  0xac   :  { %v237_v25 = vadd.f32 1e-06, %v235_v19 }
  0xad   :  { %v233_v30 = vpop.xlane.xlu0 %232 }
  0xae   :  { %5517 = vrsqrt.f32 %v237_v25  ;;  %v236_v31 = vmul.f32 0.015625, %v233_v30 }
  0xb0   :  { %v238_v32 = vadd.f32 1e-06, %v236_v31 }
  0xb2   :  { %5519 = vrsqrt.f32 %v238_v32 }
  0xb8   :  { %v5518_v47 = vpop.eup %5517 }
  0xb9   :  { %v246_v52 = vrot.slane %v5518_v47, %v5786_v12  ;;  %v250_v53 = vrot.slane %v5518_v47, %v5796_v40  ;;  %v254_v54 = vrot.slane %v5518_v47, %v253_v41  ;;  %v258_v55 = vrot.slane %v5518_v47, %v257_v42 }
  0xba   :  { %v262_v56 = vrot.slane %v5518_v47, %v261_v43  ;;  %v266_v57 = vrot.slane %v5518_v47, %v265_v44  ;;  %v270_v58 = vrot.slane %v5518_v47, %v6580_v45  ;;  %v274_v59 = vrot.slane %v5518_v47, %v6579_v46 }
  0xbb   :  { %v293_v60 = vmul.f32 %v246_v52, %v5661_v17  ;;  %v294_v61 = vmul.f32 %v250_v53, %v5673_v22  ;;  %v295_v62 = vmul.f32 %v254_v54, %v5677_v23  ;;  %v296_v63 = vmul.f32 %v258_v55, %v5694_v29 }
  0xbc   :  { %v5520_v0 = vpop.eup %5519  ;;  %v297_v1 = vmul.f32 %v262_v56, %v5664_v18  ;;  %v298_v3 = vmul.f32 %v266_v57, %v5667_v20  ;;  %v299_v4 = vmul.f32 %v270_v58, %v5680_v24  ;;  %v300_v10 = vmul.f32 %v274_v59, %v5686_v26 }
  0xbd   :  { %v278_v13 = vrot.slane %v5520_v0, %v5786_v12  ;;  %v282_v14 = vrot.slane %v5520_v0, %v5796_v40  ;;  %v365_v15 = vmul.f32 %v331_v36, %v293_v60  ;;  %v366_v16 = vmul.f32 %v345_v38, %v294_v61  ;;  %v4999_v60 = vld [vmem:[%s6569_s4 + $0x8] sm:$0xff]   ;;  %v749_v61 = vld [vmem:[%s6571_s9] sm:$0xff]  ;;  %v752_v0 = vld [vmem:[%s6571_s9 + $0x18] sm:$0xff] }
  0xbe   :  { %v367_v19 = vmul.f32 %v353_v48, %v295_v62  ;;  %v368_v25 = vmul.f32 %v355_v50, %v296_v63  ;;  %v369_v27 = vmul.f32 %v338_v37, %v297_v1  ;;  %v370_v28 = vmul.f32 %v352_v39, %v298_v3  ;;  %v750_v62 = vld [vmem:[%s6571_s9 + $0x8] sm:$0xff]  ;;  %v753_v3 = vld [vmem:[%s6571_s9 + $0x20] sm:$0xff] }
  0xbf   :  { %v301_v30 = vmul.f32 %v278_v13, %v5706_v35  ;;  %v302_v31 = vmul.f32 %v282_v14, %v5670_v21  ;;  %v371_v32 = vmul.f32 %v354_v49, %v299_v4  ;;  %v372_v33 = vmul.f32 %v356_v51, %v300_v10  ;;  %v754_v4 = vld [vmem:[%s6571_s9 + $0x28] sm:$0xff]  ;;  %v755_v13 = vld [vmem:[%s6571_s9 + $0x30] sm:$0xff]  ;;  %v756_v14 = vld [vmem:[%s6571_s9 + $0x38] sm:$0xff] }
  0xc0   :  { %v409_v34 = vcombine.low %v365_v15, %v366_v16  ;;  %v410_v47 = vcombine.low %v367_v19, %v368_v25  ;;  %v411_v52 = vcombine.low %v369_v27, %v370_v28  ;;  %v5363_v63 = vpack.c.bf16 %v750_v62, %v749_v61 }
  0xc1   :  { %v412_v53 = vcombine.low %v371_v32, %v372_v33  ;;  %v373_v54 = vmul.f32 %v331_v36, %v301_v30  ;;  %v374_v55 = vmul.f32 %v345_v38, %v302_v31  ;;  %v5371_v10 = vpack.c.bf16 %v754_v4, %v753_v3 }
  0xc2   :  { %v419_v56 = vrot.slane %v409_v34, %v5654_v11  ;;  %v426_v57 = vrot.slane %v410_v47, %v5654_v11  ;;  %v433_v48 = vrot.slane %v411_v52, %v5654_v11  ;;  %5380 = vmatprep.subr.bf16.mxu0 %v5363_v63  ;;  %v5375_v15 = vpack.c.bf16 %v756_v14, %v755_v13 }
  0xc3   :  { %v440_v37 = vrot.slane %v412_v53, %v5654_v11  ;;  %v458_v39 = vcombine.low %v373_v54, %v374_v55  ;;  %v1022_v27 = vcombine.high %v5773_v8, %v5773_v8  ;;  %v5893_v8 = vcombine.high %v5778_v9, %v5778_v9 }
  0xc4   :  { %v441_v50 = vcombine.low %v419_v56, %v426_v57  ;;  %v1007_v33 = vcombine.high %v5764_v5, %v5764_v5 }
  0xc5   :  { %v442_v58 = vcombine.low %v433_v48, %v440_v37  ;;  %v465_v49 = vrot.slane %v458_v39, %v5654_v11  ;;  %v5887_v32 = vrot.slane %v1022_v27, %v5654_v11  ;;  %v758_v39 = vld [vmem:[%s6572_s11] sm:$0x1f] }
  0xc6   :  { %v449_v51 = vrot.slane %v441_v50, %v5654_v11  ;;  %v1021_v47 = vrot.slane %v1007_v33, %v5654_v11  ;;  %v1145_v50 = vcombine.high %v758_v39, %v758_v39 }
  0xc7   :  { %v456_v59 = vrot.slane %v442_v58, %v5654_v11  ;;  %v472_v36 = vrot.slane %v465_v49, %v5654_v11  ;;  %v5901_v34 = vcombine.high %v5887_v32, %v5887_v32  ;;  %v1152_v58 = vrot.slane %v758_v39, %v5654_v11 }
  0xc8   :  { %v5907_v52 = vrot.slane %v1021_v47, %v5654_v11 }
  0xc9   :  { %v457_v38 = vcombine.low %v449_v51, %v456_v59  ;;  %v1159_v51 = vrot.slane %v1145_v50, %v5654_v11  ;;  %v5931_v61 = vrot.slane %v1152_v58, %v5654_v11 }
  0xcb   :  { %4865 = vmatmul.mubr.msk.f32.vlgmr.msra.gmra.mrb[0].mxu0 %vm226_vm0, %v457_v38  ;;  %5128 = vmatprep.mubr.msk.f32.mxu1 %vm226_vm0, %v457_v38  ;;  %v5954_v33 = vcombine.high %v5931_v61, %v5931_v61 }
  0xcc   :  { %5129 = vmatmul.mubr.msk.f32.vlgmr.msra.gmra.mrb[0].mxu1 %vm226_vm0, %v472_v36  ;;  %547 = vmatprep.mubr.f32.mxu0 %v5566_v2 }
  0xcd   :  { %5358 = vmatpush3.bf16.msra.mxu1 %v5769_v6  ;;  %v751_v6 = vld [vmem:[%s6571_s9 + $0x10] sm:$0xff]  ;;  %5382 = vmatpush3.bf16.msra.mxu0 %v5363_v63 }
  0xce   :  { %5360 = vmatprep.subr.bf16.mxu1 %v4999_v60  ;;  %v5367_v1 = vpack.c.bf16 %v752_v0, %v751_v6  ;;  %v5936_v0 = vrot.slane %v1159_v51, %v5654_v11 }
  0xcf   :  { %4866 = vmatmul.mubr.msk.f32.gmra.mrb[2].mxu0 %vm226_vm0, %v472_v36 }
  0xd0   :  { %5384 = vmatprep.subr.bf16.mxu0 %v5367_v1 }
  0xd1   :  { %5362 = vmatpush3.bf16.msra.mxu1 %v4999_v60  ;;  %5386 = vmatpush3.bf16.msra.mxu0 %v5367_v1  ;;  %v1160_v60 = vcombine.high %v1152_v58, %v1152_v58 }
  0xd2   :  { %5364 = vmatprep.subr.bf16.mxu1 %v5363_v63  ;;  %5388 = vmatprep.subr.bf16.mxu0 %v5371_v10 }
  0xd3   :  { %v5941_v4 = vrot.slane %v1160_v60, %v5654_v11 }
  0xd5   :  { %5390 = vmatpush3.bf16.msra.mxu0 %v5371_v10 }
  0xd6   :  { %5392 = vmatprep.subr.bf16.mxu0 %v5375_v15 }
  0xd9   :  { %5394 = vmatpush3.bf16.msra.mxu0 %v5375_v15 }
  0xda   :  { %5190 = vmatprep.subr.mxu0 %v5566_v2 }
 0x19e   :  { %v5872_v16 = vpop.f32.mrb[0].mxu0 }
 0x19f   :  { %842 = vrot.lane.b32.xlu1 %v5872_v16, %s5567_s2  ;;  %v5876_v19 = vpop.f32.mrb[1].mxu0  ;;  %v5130_v25 = vpop.f32.mrb[0].mxu1 }
 0x1a0   :  { %v636_v28 = vpop.f32.mrb[1].mxu1 }
 0x1a1   :  { %5139 = vmatprep.mubr.msk.f32.mxu1 %vm653_vm2, %v636_v28 }
 0x1a2   :  { %v5880_v30 = vpop.f32.mrb[2].mxu0  ;;  %5140 = vmatmul.mubr.msk.f32.vlgmr.msra.gmra.mrb[2].mxu1 %vm653_vm2, %v5130_v25 }
 0x1a3   :  { %844 = vrot.lane.b32.xlu1 %v5880_v30, %s5567_s2  ;;  %v5884_v31 = vpop.f32.mrb[3].mxu0  ;;  %5366 = vmatpush3.bf16.msra.mxu1 %v5363_v63 }
 0x1a4   :  { %5368 = vmatprep.subr.bf16.mxu1 %v5367_v1 }
 0x1a7   :  { %1292 = vrot.lane.b32.xlu1 %v5887_v32, %s5567_s2  ;;  %5370 = vmatpush3.bf16.msra.mxu1 %v5367_v1 }
 0x1a8   :  { %5372 = vmatprep.subr.bf16.mxu1 %v5371_v10 }
 0x1ab   :  { %1294 = vrot.lane.b32.xlu1 %v5893_v8, %s5567_s2  ;;  %5374 = vmatpush3.bf16.msra.mxu1 %v5371_v10 }
 0x1ac   :  { %5376 = vmatprep.subr.bf16.mxu1 %v5375_v15 }
 0x1af   :  { %1296 = vrot.lane.b32.xlu1 %v5901_v34, %s5567_s2  ;;  %5378 = vmatpush3.bf16.msra.mxu1 %v5375_v15  ;;  %v5949_v15 = vcombine.high %v5941_v4, %v5941_v4 }
 0x1b0   :  { %5180 = vmatprep.subr.mxu1 %v5566_v2 }
 0x1b3   :  { %1298 = vrot.lane.b32.xlu1 %v5907_v52, %s5567_s2 }
 0x211   :  { %v843_v5 = vpop.permute.xlu1 %842 }
 0x212   :  { %5177 = vmatprep.mubr.msk.f32.mxu0 %vm226_vm0, %v843_v5 }
 0x215   :  { %v845_v53 = vpop.permute.xlu1 %844 }
 0x216   :  { %5178 = vmatmul.mubr.msk.f32.vlgmr.msra.gmra.mrb[4].mxu0 %vm226_vm0, %v845_v53 }
 0x217   :  { %5192 = vmatprep.mubr.msk.f32.mxu0 %vm5568_vm3, %v5566_v2 }
 0x275   :  { %v5141_v54 = vpop.f32.mrb[2].mxu1 }
 0x276   :  { %v5914_v55 = vmul.f32 2.0, %v5141_v54  ;;  %v726_v56 = vpop.f32.mrb[3].mxu1 }
 0x277   :  { %v5916_v57 = vmul.f32 2.0, %v726_v56 }
 0x278   :  { %v738_v37 = vadd.f32 %v5914_v55, %v5880_v30 }
 0x279   :  { %v737_v48 = vadd.f32 %v5916_v57, %v5872_v16 }
 0x27b   :  { %5158 = vmatprep.mubr.msk.f32.mxu1 %vm226_vm0, %v737_v48 }
 0x27c   :  { %5159 = vmatmul.mubr.msk.f32.vlgmr.msra.gmra.mrb[4].mxu1 %vm226_vm0, %v738_v37 }
 0x27d   :  { %5182 = vmatprep.mubr.msk.f32.mxu1 %vm5568_vm3, %v5566_v2 }
 0x2e9   :  { %v5179_v49 = vpop.f32.mrb[4].mxu0 }
 0x2ea   :  { %v916_v59 = vpop.f32.mrb[5].mxu0  ;;  %v1372_v47 = vrot.slane %v5179_v49, %v5654_v11 }
 0x2eb   :  { %v1317_v36 = vcombine.high %v916_v59, %v916_v59  ;;  %v1324_v38 = vrot.slane %v916_v59, %v5654_v11 }
 0x2ec   :  { %v1380_v39 = vrot.slane %v1372_v47, %v5654_v11  ;;  %v1373_v58 = vcombine.high %v1372_v47, %v1372_v47 }
 0x2ed   :  { %v1331_v62 = vrot.slane %v1317_v36, %v5654_v11  ;;  %v1332_v6 = vcombine.high %v1324_v38, %v1324_v38  ;;  %v1340_v63 = vrot.slane %v1324_v38, %v5654_v11 }
 0x2ee   :  { %v1406_v59 = vmul.f32 %v1380_v39, %v5949_v15  ;;  %v1387_v36 = vrot.slane %v1373_v58, %v5654_v11 }
 0x2ef   :  { %v1347_v1 = vrot.slane %v1331_v62, %v5654_v11  ;;  %v1354_v3 = vrot.slane %v1332_v6, %v5654_v11  ;;  %v1398_v10 = vmul.f32 %v1340_v63, %v5931_v61  ;;  %v1333_v25 = vcombine.high %v1331_v62, %v1331_v62 }
 0x2f0   :  { %v1362_v27 = vcombine.high %v1340_v63, %v1340_v63  ;;  %v1407_v60 = vmul.f32 %v1387_v36, %v5936_v0  ;;  %v925_v62 = vcombine.high %v737_v48, %v737_v48  ;;  %v980_v6 = vrot.slane %v738_v37, %v5654_v11 }
 0x2f1   :  { %v1402_v13 = vmul.f32 %v1347_v1, %v5936_v0  ;;  %v1364_v14 = vcombine.high %v1354_v3, %v1354_v3  ;;  %1418 = vrot.lane.b32.xlu1 %v1398_v10, %s5567_s2  ;;  %v1399_v28 = vmul.f32 %v1354_v3, %v5941_v4  ;;  %v1363_v53 = vcombine.high %v1347_v1, %v1347_v1 }
 0x2f2   :  { %v1400_v54 = vmul.f32 %v1362_v27, %v5954_v33  ;;  %v1361_v56 = vrot.slane %v1333_v25, %v5654_v11  ;;  %v932_v63 = vrot.slane %v737_v48, %v5654_v11  ;;  %v939_v1 = vrot.slane %v925_v62, %v5654_v11 }
 0x2f3   :  { %1426 = vrot.lane.b32.xlu0 %v1402_v13, %s5567_s2  ;;  %v1401_v5 = vmul.f32 %v1364_v14, %v5949_v15  ;;  %v1404_v50 = vmul.f32 %v1363_v53, %v5941_v4  ;;  %v981_v3 = vcombine.high %v980_v6, %v980_v6  ;;  %v988_v14 = vrot.slane %v980_v6, %v5654_v11 }
 0x2f4   :  { %v1403_v49 = vmul.f32 %v1361_v56, %v5931_v61  ;;  %v1365_v51 = vcombine.high %v1361_v56, %v1361_v56  ;;  %v940_v10 = vcombine.high %v932_v63, %v932_v63  ;;  %v948_v13 = vrot.slane %v932_v63, %v5654_v11 }
 0x2f5   :  { %1420 = vrot.lane.b32.xlu1 %v1399_v28, %s5567_s2  ;;  %v941_v25 = vcombine.high %v939_v1, %v939_v1  ;;  %v995_v27 = vrot.slane %v981_v3, %v5654_v11  ;;  %v955_v47 = vrot.slane %v939_v1, %v5654_v11 }
 0x2f6   :  { %v1405_v38 = vmul.f32 %v1365_v51, %v5954_v33  ;;  %v962_v28 = vrot.slane %v940_v10, %v5654_v11  ;;  %v970_v37 = vcombine.high %v948_v13, %v948_v13 }
 0x2f7   :  { %1424 = vrot.lane.b32.xlu0 %v1401_v5, %s5567_s2  ;;  %v5983_v5 = vpop.permute.xlu1 %1292  ;;  %v969_v48 = vrot.slane %v941_v25, %v5654_v11  ;;  %v1060_v39 = vmul.f32 %v5907_v52, %v995_v27  ;;  %v971_v51 = vcombine.high %v955_v47, %v955_v47  ;;  %v1055_v63 = vmul.f32 %v5907_v52, %v955_v47 }
 0x2f8   :  { %v972_v56 = vcombine.high %v962_v28, %v962_v28  ;;  %v1053_v6 = vmul.f32 %v5893_v8, %v970_v37 }
 0x2f9   :  { %1422 = vrot.lane.b32.xlu1 %v1400_v54, %s5567_s2  ;;  %v1059_v54 = vmul.f32 %v5901_v34, %v988_v14  ;;  %v973_v1 = vcombine.high %v969_v48, %v969_v48 }
 0x2fb   :  { %1430 = vrot.lane.b32.xlu0 %v1404_v50, %s5567_s2 }
 0x2fd   :  { %1428 = vrot.lane.b32.xlu1 %v1403_v49, %s5567_s2  ;;  %v1051_v49 = vmul.f32 %v5778_v9, %v948_v13  ;;  %v5997_v13 = vpop.permute.xlu1 %1294 }
 0x2ff   :  { %1434 = vrot.lane.b32.xlu0 %v1406_v59, %s5567_s2  ;;  %v1052_v59 = vmul.f32 %v5887_v32, %v962_v28  ;;  %v1054_v28 = vmul.f32 %v5901_v34, %v972_v56 }
 0x301   :  { %1432 = vrot.lane.b32.xlu1 %v1405_v38, %s5567_s2 }
 0x305   :  { %1436 = vrot.lane.b32.xlu1 %v1407_v60, %s5567_s2 }
 0x34f   :  { %v5160_v53 = vpop.f32.mrb[4].mxu1 }
 0x350   :  { %v1118_v50 = vrot.slane %v5160_v53, %v5654_v11  ;;  %v831_v58 = vpop.f32.mrb[5].mxu1  ;;  %v1056_v53 = vmul.f32 %v5778_v9, %v969_v48 }
 0x351   :  { %v1063_v36 = vcombine.high %v831_v58, %v831_v58  ;;  %v1070_v38 = vrot.slane %v831_v58, %v5654_v11 }
 0x352   :  { %v1119_v60 = vcombine.high %v1118_v50, %v1118_v50  ;;  %v1126_v62 = vrot.slane %v1118_v50, %v5654_v11 }
 0x353   :  { %v1077_v3 = vrot.slane %v1063_v36, %v5654_v11  ;;  %v1078_v10 = vcombine.high %v1070_v38, %v1070_v38  ;;  %v1086_v14 = vrot.slane %v1070_v38, %v5654_v11  ;;  %v1057_v38 = vmul.f32 %v5887_v32, %v971_v51  ;;  %v6015_v51 = vpop.permute.xlu1 %1296 }
 0x354   :  { %v1133_v25 = vrot.slane %v1119_v60, %v5654_v11  ;;  %v1197_v27 = vmul.f32 %v5949_v15, %v1126_v62 }
 0x355   :  { %v1079_v50 = vcombine.high %v1077_v3, %v1077_v3  ;;  %v1093_v37 = vrot.slane %v1077_v3, %v5654_v11  ;;  %v1100_v52 = vrot.slane %v1078_v10, %v5654_v11  ;;  %v1108_v47 = vcombine.high %v1086_v14, %v1086_v14 }
 0x356   :  { %v1198_v58 = vmul.f32 %v5936_v0, %v1133_v25  ;;  %v1207_v36 = vadd.f32 %v1197_v27, %v1059_v54  ;;  %v1189_v46 = vmul.f32 %v5931_v61, %v1086_v14  ;;  %v1058_v14 = vmul.f32 %v5893_v8, %v973_v1 }
 0x357   :  { %v1107_v60 = vrot.slane %v1079_v50, %v5654_v11  ;;  %v1109_v62 = vcombine.high %v1093_v37, %v1093_v37  ;;  %v1110_v45 = vcombine.high %v1100_v52, %v1100_v52  ;;  %v1190_v34 = vmul.f32 %v5941_v4, %v1100_v52  ;;  %v6026_v1 = vpop.permute.xlu1 %1298 }
 0x358   :  { %v1208_v9 = vadd.f32 %v1198_v58, %v1060_v39  ;;  %v1191_v48 = vmul.f32 %v5954_v33, %v1108_v47  ;;  %v1193_v56 = vmul.f32 %v5936_v0, %v1093_v37  ;;  %v1199_v3 = vadd.f32 %v1189_v46, %v1051_v49 }
 0x359   :  { %v1111_v10 = vcombine.high %v1107_v60, %v1107_v60  ;;  %v1192_v25 = vmul.f32 %v5949_v15, %v1110_v45  ;;  %v1194_v54 = vmul.f32 %v5931_v61, %v1107_v60  ;;  %v1195_v32 = vmul.f32 %v5941_v4, %v1109_v62 }
 0x35a   :  { %v1200_v27 = vadd.f32 %v1190_v34, %v1052_v59  ;;  %v1201_v50 = vadd.f32 %v1191_v48, %v1053_v6  ;;  %v1203_v52 = vadd.f32 %v1193_v56, %v1055_v63  ;;  %v1216_v46 = vrot.slane %v5872_v16, %v5654_v11 }
 0x35b   :  { %v1196_v39 = vmul.f32 %v5954_v33, %v1111_v10  ;;  %v1202_v47 = vadd.f32 %v1192_v25, %v1054_v28  ;;  %v1204_v58 = vadd.f32 %v1194_v54, %v1056_v53  ;;  %v1205_v0 = vadd.f32 %v1195_v32, %v1057_v38  ;;  %v1291_v28 = vpop.permute.xlu0 %1290 }
 0x35c   :  { %v1553_v45 = vcombine.low %v1199_v3, %v1200_v27  ;;  %v1209_v4 = vcombine.high %v5872_v16, %v5872_v16  ;;  %v1575_v6 = vrot.slane %v1203_v52, %v5654_v11  ;;  %v1224_v63 = vcombine.high %v1216_v46, %v1216_v46 }
 0x35d   :  { %v1206_v15 = vadd.f32 %v1196_v39, %v1058_v14  ;;  %v1554_v61 = vcombine.low %v1201_v50, %v1202_v47  ;;  %v1718_v49 = vcombine.low %v1204_v58, %v1205_v0  ;;  %v1740_v53 = vrot.slane %v1208_v9, %v5654_v11 }
 0x35e   :  { %v1561_v8 = vrot.slane %v1553_v45, %v5654_v11  ;;  %v1223_v16 = vrot.slane %v1209_v4, %v5654_v11  ;;  %v1590_v62 = vrot.slane %v1575_v6, %v5654_v11  ;;  %v1246_v3 = vrot.slane %v1224_v63, %v5654_v11 }
 0x35f   :  { %v1568_v59 = vrot.slane %v1554_v61, %v5654_v11  ;;  %v1719_v33 = vcombine.low %v1206_v15, %v1207_v36  ;;  %v1726_v38 = vrot.slane %v1718_v49, %v5654_v11  ;;  %v1232_v36 = vrot.slane %v1216_v46, %v5654_v11 }
 0x360   :  { %v1755_v10 = vrot.slane %v1740_v53, %v5654_v11  ;;  %v1225_v32 = vcombine.high %v1223_v16, %v1223_v16  ;;  %v1306_v14 = vmul.f32 %v5983_v5, %v1246_v3  ;;  %v1239_v50 = vrot.slane %v1223_v16, %v5654_v11 }
 0x361   :  { %v1576_v37 = vcombine.low %v1561_v8, %v1568_v59  ;;  %v1733_v60 = vrot.slane %v1719_v33, %v5654_v11  ;;  %v1305_v39 = vmul.f32 %v1291_v28, %v1232_v36  ;;  %v1254_v47 = vcombine.high %v1232_v36, %v1232_v36 }
 0x362   :  { %v1256_v58 = vcombine.high %v1246_v3, %v1246_v3  ;;  %v1309_v45 = vmul.f32 %v6026_v1, %v1239_v50  ;;  %v1253_v15 = vrot.slane %v1225_v32, %v5654_v11  ;;  %v1264_v8 = vrot.slane %v5880_v30, %v5654_v11 }
 0x363   :  { %v1583_v34 = vrot.slane %v1576_v37, %v5654_v11  ;;  %v1741_v48 = vcombine.low %v1726_v38, %v1733_v60  ;;  %v1419_v56 = vpop.permute.xlu1 %1418  ;;  %v1307_v61 = vmul.f32 %v5997_v13, %v1254_v47  ;;  %v1255_v60 = vcombine.high %v1239_v50, %v1239_v50 }
 0x364   :  { %v1308_v49 = vmul.f32 %v6015_v51, %v1256_v58  ;;  %v1448_v4 = vadd.f32 %v1419_v56, %v1305_v39  ;;  %v1310_v38 = vmul.f32 %v1291_v28, %v1253_v15  ;;  %v1272_v30 = vrot.slane %v1264_v8, %v5654_v11 }
 0x365   :  { %v1427_v9 = vpop.permute.xlu0 %1426  ;;  %v6037_v25 = vcombine.low %v1583_v34, %v1590_v62  ;;  %v1748_v54 = vrot.slane %v1741_v48, %v5654_v11  ;;  %v1265_v62 = vcombine.high %v1264_v8, %v1264_v8  ;;  %v1257_v34 = vcombine.high %v1253_v15, %v1253_v15 }
 0x366   :  { %v1452_v59 = vadd.f32 %v1427_v9, %v1309_v45  ;;  %v1311_v56 = vmul.f32 %v5983_v5, %v1255_v60  ;;  %v1313_v28 = vmul.f32 %v6015_v51, %v1272_v30 }
 0x367   :  { %v6041_v27 = vcombine.low %v1748_v54, %v1755_v10  ;;  %v1421_v52 = vpop.permute.xlu1 %1420  ;;  %v1312_v32 = vmul.f32 %v5997_v13, %v1257_v34 }
 0x368   :  { %v1449_v0 = vadd.f32 %v1421_v52, %v1306_v14  ;;  %v1619_v48 = vrot.slane %v1452_v59, %v5654_v11  ;;  %v1279_v52 = vrot.slane %v1265_v62, %v5654_v11 }
 0x369   :  { %v1425_v46 = vpop.permute.xlu0 %1424 }
 0x36a   :  { %v1597_v33 = vcombine.low %v1448_v4, %v1449_v0  ;;  %v1451_v63 = vadd.f32 %v1425_v46, %v1308_v49  ;;  %v1634_v39 = vrot.slane %v1619_v48, %v5654_v11  ;;  %v1314_v45 = vmul.f32 %v6026_v1, %v1279_v52 }
 0x36b   :  { %v1423_v6 = vpop.permute.xlu1 %1422 }
 0x36c   :  { %v1450_v53 = vadd.f32 %v1423_v6, %v1307_v61  ;;  %v1605_v3 = vrot.slane %v1597_v33, %v5654_v11 }
 0x36d   :  { %v1431_v37 = vpop.permute.xlu0 %1430 }
 0x36e   :  { %v1598_v16 = vcombine.low %v1450_v53, %v1451_v63  ;;  %v1454_v50 = vadd.f32 %v1431_v37, %v1311_v56 }
 0x36f   :  { %v1429_v36 = vpop.permute.xlu1 %1428 }
 0x370   :  { %v1612_v10 = vrot.slane %v1598_v16, %v5654_v11  ;;  %v1453_v9 = vadd.f32 %v1429_v36, %v1310_v38 }
 0x371   :  { %v1435_v54 = vpop.permute.xlu0 %1434 }
 0x372   :  { %v1620_v14 = vcombine.low %v1605_v3, %v1612_v10  ;;  %v1762_v5 = vcombine.low %v1453_v9, %v1454_v50  ;;  %v1456_v0 = vadd.f32 %v1435_v54, %v1313_v28 }
 0x373   :  { %v1433_v47 = vpop.permute.xlu1 %1432 }
 0x374   :  { %v1627_v58 = vrot.slane %v1620_v14, %v5654_v11  ;;  %v1455_v46 = vadd.f32 %v1433_v47, %v1312_v32  ;;  %v1770_v51 = vrot.slane %v1762_v5, %v5654_v11 }
 0x376   :  { %v1763_v15 = vcombine.low %v1455_v46, %v1456_v0  ;;  %v6065_v61 = vcombine.low %v1627_v58, %v1634_v39 }
 0x377   :  { %v1437_v13 = vpop.permute.xlu1 %1436 }
 0x378   :  { %v1777_v49 = vrot.slane %v1763_v15, %v5654_v11  ;;  %v1457_v4 = vadd.f32 %v1437_v13, %v1314_v45  ;;  %1636 = vrot.lane.b32.xlu0 %v6065_v61, %s5567_s2  ;;  %v6112_v45 = vld [vmem:[%s6573_s12] sm:$0x1f]  ;;  %s5570_s12 = smov 48  }
 0x37a   :  { %v1785_v8 = vcombine.low %v1770_v51, %v1777_v49  ;;  %v1784_v59 = vrot.slane %v1457_v4, %v5654_v11 }
 0x37c   :  { %v1792_v6 = vrot.slane %v1785_v8, %v5654_v11  ;;  %v1799_v33 = vrot.slane %v1784_v59, %v5654_v11 }
 0x37e   :  { %v6074_v1 = vcombine.low %v1792_v6, %v1799_v33 }
 0x380   :  { %1801 = vrot.lane.b32.xlu1 %v6074_v1, %s5567_s2 }
 0x384   :  { %741 = vrot.lane.b32.xlu1 %v5916_v57, %s5567_s2 }
 0x3ea   :  { %v1637_v63 = vpop.permute.xlu0 %1636 }
 0x3eb   :  { %5181 = vmatpush3.xpose.msk.msra.mxu1 %vm1638_vm4, %v1637_v63 }
 0x3ec   :  { %5185 = vmatprep.subr.mxu1 %v5566_v2 }
 0x3ee   :  { %5183 = vmatmul.mubr.msk.f32.vlgmr.msra.gmra.mrb[6].mxu1 %vm1638_vm4, %v6037_v25 }
 0x3ef   :  { %5187 = vmatprep.mubr.msk.f32.mxu1 %vm5568_vm3, %v5566_v2 }
 0x3f2   :  { %v1802_v53 = vpop.permute.xlu1 %1801 }
 0x3f3   :  { %5186 = vmatpush3.xpose.msk.msra.mxu1 %vm1638_vm4, %v1802_v53 }
 0x3f4   :  { %5195 = vmatprep.subr.mxu1 %v5566_v2 }
 0x3f6   :  { %v742_v37 = vpop.permute.xlu1 %741  ;;  %5188 = vmatmul.mubr.msk.f32.vlgmr.msra.gmra.mrb[8].mxu1 %vm1638_vm4, %v6041_v27 }
 0x3f7   :  { %v747_v57 = vadd.f32 %v742_v37, %v5876_v19  ;;  %5197 = vmatprep.mubr.msk.f32.mxu1 %vm5568_vm3, %v5566_v2 }
 0x3f9   :  { %v1460_v38 = vcombine.high %v747_v57, %v747_v57  ;;  %v1467_v60 = vrot.slane %v747_v57, %v5654_v11 }
 0x3fb   :  { %v1474_v16 = vrot.slane %v1460_v38, %v5654_v11  ;;  %v1475_v62 = vcombine.high %v1467_v60, %v1467_v60  ;;  %v1483_v30 = vrot.slane %v1467_v60, %v5654_v11 }
 0x3fd   :  { %v1476_v34 = vcombine.high %v1474_v16, %v1474_v16  ;;  %v1490_v48 = vrot.slane %v1474_v16, %v5654_v11  ;;  %v1497_v36 = vrot.slane %v1475_v62, %v5654_v11 }
 0x3ff   :  { %v1504_v56 = vrot.slane %v1476_v34, %v5654_v11  ;;  %v1506_v3 = vcombine.high %v1490_v48, %v1490_v48  ;;  %v1904_v19 = vcombine.low %v1483_v30, %v1497_v36  ;;  %v4879_v10 = vcombine.high %v1483_v30, %v1497_v36 }
 0x400   :  { %v1926_v32 = vrot.slane %v1490_v48, %v5654_v11 }
 0x401   :  { %v1912_v9 = vrot.slane %v1904_v19, %v5654_v11  ;;  %v1919_v54 = vrot.slane %v4879_v10, %v5654_v11  ;;  %v2020_v28 = vcombine.low %v1504_v56, %v1506_v3  ;;  %v1508_v53 = vcombine.high %v1504_v56, %v1504_v56 }
 0x402   :  { %v1941_v52 = vrot.slane %v1926_v32, %v5654_v11 }
 0x403   :  { %v1927_v14 = vcombine.low %v1912_v9, %v1919_v54  ;;  %v2028_v16 = vrot.slane %v2020_v28, %v5654_v11 }
 0x405   :  { %v1934_v50 = vrot.slane %v1927_v14, %v5654_v11 }
 0x407   :  { %v6104_v39 = vcombine.low %v1934_v50, %v1941_v52 }
 0x409   :  { %5191 = vmatpush3.msk.msra.mxu0 %vm1947_vm5, %v6104_v39 }
 0x40a   :  { %5200 = vmatprep.subr.mxu0 %v5566_v2 }
 0x4c1   :  { %v1709_v47 = vpop.f32.mrb[6].mxu1 }
 0x4c2   :  { %v5184_v58 = vpop.f32.mrb[7].mxu1  ;;  %v1877_v51 = vmul.f32 0.25, %v1709_v47 }
 0x4c4   :  { %v1879_v49 = vadd.f32 %v1877_v51, %v6112_v45 }
 0x4c6   :  { %v1882_v4 = vsel %vm1881_vm6, %v1879_v49, -inf }
 0x4c9   :  { %v1873_v5 = vpop.f32.mrb[8].mxu1 }
 0x4ca   :  { %v1878_v0 = vmul.f32 0.25, %v1873_v5  ;;  %v5189_v46 = vpop.f32.mrb[9].mxu1 }
 0x4cc   :  { %v1880_v15 = vadd.f32 %v1878_v0, %v6112_v45 }
 0x4ce   :  { %v1885_v13 = vsel %vm1881_vm6, %v1880_v15, -inf }
 0x4cf   :  { %1886 = vmax.xlane.f32.xlu0 %v1885_v13 }
 0x4e5   :  { %743 = vrot.lane.b32.xlu0 %v5914_v55, %s5567_s2  ;;  %s5571_s2 = smov 32  }
 0x4e9   :  { %2292 = vrot.lane.b32.xlu0 %v6041_v27, %s5569_s3 }
 0x508   :  { %1883 = vmax.xlane.f32.xlu0 %v1882_v4 }
 0x51e   :  { %2216 = vrot.lane.b32.xlu0 %v6065_v61, %s5570_s12 }
 0x55c   :  { %v1887_v8 = vpop.xlane.xlu0 %1886 }
 0x55d   :  { %v1889_v59 = vsub.f32 %v1880_v15, %v1887_v8 }
 0x55f   :  { %v1892_v6 = vmul.f32 1.442695, %v1889_v59 }
 0x560   :  { %v744_v33 = vpop.permute.xlu0 %743 }
 0x561   :  { %5521 = vpow2.f32 %v1892_v6  ;;  %v748_v55 = vadd.f32 %v744_v33, %v5884_v31 }
 0x563   :  { %v1515_v63 = vrot.slane %v748_v55, %v5654_v11 }
 0x564   :  { %v2293_v19 = vpop.permute.xlu0 %2292 }
 0x565   :  { %v1516_v37 = vcombine.high %v1515_v63, %v1515_v63  ;;  %v1523_v57 = vrot.slane %v1515_v63, %v5654_v11 }
 0x567   :  { %v1530_v38 = vrot.slane %v1516_v37, %v5654_v11  ;;  %v2021_v60 = vcombine.low %v1508_v53, %v1523_v57 }
 0x569   :  { %v2035_v62 = vrot.slane %v2021_v60, %v5654_v11  ;;  %v2042_v34 = vrot.slane %v1530_v38, %v5654_v11 }
 0x56b   :  { %v5522_v30 = vpop.eup %5521  ;;  %v2043_v48 = vcombine.low %v2028_v16, %v2035_v62  ;;  %v2057_v56 = vrot.slane %v2042_v34, %v5654_v11 }
 0x56c   :  { %v1897_v36 = vsel %vm1881_vm6, %v5522_v30, 0.0 }
 0x56d   :  { %v2050_v31 = vrot.slane %v2043_v48, %v5654_v11  ;;  %1898 = vadd.xlane.f32.xlu1 %v1897_v36 }
 0x56f   :  { %v6133_v3 = vcombine.low %v2050_v31, %v2057_v56 }
 0x571   :  { %5196 = vmatpush3.msk.msra.mxu1 %vm1947_vm5, %v6133_v3 }
 0x572   :  { %5205 = vmatprep.subr.mxu1 %v5566_v2 }
 0x57e   :  { %2294 = vrot.lane.b32.xlu1 %v6074_v1, %s5570_s12 }
 0x595   :  { %v1884_v10 = vpop.xlane.xlu0 %1883 }
 0x596   :  { %v1888_v9 = vsub.f32 %v1879_v49, %v1884_v10 }
 0x598   :  { %v1890_v54 = vmul.f32 1.442695, %v1888_v9 }
 0x599   :  { %v2217_v46 = vpop.permute.xlu0 %2216 }
 0x59a   :  { %5523 = vpow2.f32 %v1890_v54 }
 0x5a4   :  { %v5524_v32 = vpop.eup %5523 }
 0x5a5   :  { %v1894_v28 = vsel %vm1881_vm6, %v5524_v32, 0.0 }
 0x5a6   :  { %1895 = vadd.xlane.f32.xlu1 %v1894_v28 }
 0x5b7   :  { %2214 = vrot.lane.b32.xlu1 %v6037_v25, %s5569_s3 }
 0x5bb   :  { %2918 = vrot.lane.b32.xlu1 %v6065_v61, %s5571_s2 }
 0x5fa   :  { %v1899_v14 = vpop.xlane.xlu1 %1898 }
 0x5fb   :  { %5525 = vrcp.f32 %v1899_v14 }
 0x5fe   :  { %v2295_v47 = vpop.permute.xlu1 %2294 }
 0x605   :  { %v5526_v50 = vpop.eup %5525 }
 0x606   :  { %v1903_v52 = vmul.f32 %v5526_v50, %v5522_v30 }
 0x608   :  { %5198 = vmatmul.mubr.msk.f32.vlgmr.msra.gmra.mrb[10].mxu1 %vm1943_vm7, %v1903_v52 }
 0x609   :  { %5206 = vmatpush3.xpose.msk.msra.mxu1 %vm1638_vm4, %v2295_v47  ;;  %5207 = vmatprep.mubr.msk.f32.mxu1 %vm5568_vm3, %v5566_v2 }
 0x60a   :  { %5215 = vmatprep.subr.mxu1 %v5566_v2 }
 0x60c   :  { %5208 = vmatmul.mubr.msk.f32.vlgmr.msra.gmra.mrb[12].mxu1 %vm1638_vm4, %v2293_v19 }
 0x60d   :  { %5217 = vmatprep.mubr.msk.f32.mxu1 %vm5568_vm3, %v5566_v2 }
 0x633   :  { %v1896_v58 = vpop.xlane.xlu1 %1895 }
 0x634   :  { %5527 = vrcp.f32 %v1896_v58 }
 0x637   :  { %v2215_v15 = vpop.permute.xlu1 %2214 }
 0x63e   :  { %v5528_v5 = vpop.eup %5527 }
 0x63f   :  { %v1902_v0 = vmul.f32 %v5528_v5, %v5524_v32 }
 0x641   :  { %5193 = vmatmul.mubr.msk.f32.vlgmr.msra.gmra.mrb[6].mxu0 %vm1943_vm7, %v1902_v0 }
 0x642   :  { %5201 = vmatpush3.xpose.msk.msra.mxu0 %vm1638_vm4, %v2217_v46  ;;  %5202 = vmatprep.mubr.msk.f32.mxu0 %vm5568_vm3, %v5566_v2 }
 0x643   :  { %5210 = vmatprep.subr.mxu0 %v5566_v2 }
 0x645   :  { %5203 = vmatmul.mubr.msk.f32.vlgmr.msra.gmra.mrb[8].mxu0 %vm1638_vm4, %v2215_v15 }
 0x646   :  { %5212 = vmatprep.mubr.msk.f32.mxu0 %vm5568_vm3, %v5566_v2 }
 0x6db   :  { %v6160_v13 = vpop.f32.mrb[10].mxu1 }
 0x6dc   :  { %v5199_v51 = vpop.f32.mrb[11].mxu1  ;;  %v2182_v33 = vrot.slane %v6160_v13, %v5654_v11 }
 0x6de   :  { %v2190_v55 = vcombine.high %v2182_v33, %v2182_v33  ;;  %v2197_v63 = vrot.slane %v2182_v33, %v5654_v11 }
 0x6df   :  { %v2366_v49 = vpop.f32.mrb[12].mxu1 }
 0x6e0   :  { %v2371_v4 = vmul.f32 0.25, %v2366_v49  ;;  %v5209_v8 = vpop.f32.mrb[13].mxu1  ;;  %v6174_v37 = vrot.slane %v2190_v55, %v5654_v11  ;;  %v2212_v57 = vcombine.high %v2197_v63, %v2197_v63 }
 0x6e2   :  { %v2373_v59 = vadd.f32 %v2371_v4, %v6112_v45  ;;  %v2776_v48 = vcombine.low %v6174_v37, %v2212_v57 }
 0x6e4   :  { %v2377_v6 = vsel %vm1881_vm6, %v2373_v59, -inf  ;;  %v2804_v32 = vrot.slane %v2776_v48, %v5654_v11 }
 0x6e5   :  { %2378 = vmax.xlane.f32.xlu0 %v2377_v6 }
 0x6fb   :  { %2473 = vrot.lane.b32.xlu0 %v6133_v3, %s5569_s3 }
 0x6ff   :  { %2916 = vrot.lane.b32.xlu0 %v6037_v25, %s5572_s10 }
 0x703   :  { %2994 = vrot.lane.b32.xlu0 %v6041_v27, %s5572_s10 }
 0x714   :  { %v2016_v53 = vpop.f32.mrb[6].mxu0 }
 0x715   :  { %v2136_v38 = vcombine.high %v2016_v53, %v2016_v53  ;;  %v2143_v60 = vrot.slane %v2016_v53, %v5654_v11  ;;  %v5194_v16 = vpop.f32.mrb[7].mxu0 }
 0x717   :  { %v2150_v62 = vrot.slane %v2136_v38, %v5654_v11  ;;  %v2151_v34 = vcombine.high %v2143_v60, %v2143_v60  ;;  %v2158_v36 = vrot.slane %v2143_v60, %v5654_v11 }
 0x718   :  { %v2288_v30 = vpop.f32.mrb[8].mxu0 }
 0x719   :  { %v2165_v31 = vrot.slane %v2150_v62, %v5654_v11  ;;  %v2172_v56 = vrot.slane %v2151_v34, %v5654_v11  ;;  %v5204_v19 = vpop.f32.mrb[9].mxu0  ;;  %v2370_v6 = vmul.f32 0.25, %v2288_v30 }
 0x71b   :  { %v2773_v10 = vcombine.low %v2158_v36, %v2172_v56  ;;  %v4895_v9 = vcombine.high %v2158_v36, %v2172_v56  ;;  %v2775_v54 = vcombine.low %v2165_v31, %v2197_v63  ;;  %v2372_v33 = vadd.f32 %v2370_v6, %v6112_v45 }
 0x71d   :  { %v2783_v28 = vrot.slane %v2773_v10, %v5654_v11  ;;  %v2790_v14 = vrot.slane %v4895_v9, %v5654_v11  ;;  %v2797_v50 = vrot.slane %v2775_v54, %v5654_v11  ;;  %v2374_v55 = vsel %vm1881_vm6, %v2372_v33, -inf }
 0x71f   :  { %v2805_v52 = vcombine.low %v2783_v28, %v2790_v14  ;;  %v2806_v47 = vcombine.low %v2797_v50, %v2804_v32 }
 0x721   :  { %v2813_v58 = vrot.slane %v2805_v52, %v5654_v11  ;;  %v2820_v5 = vrot.slane %v2806_v47, %v5654_v11 }
 0x723   :  { %v6188_v0 = vcombine.low %v2813_v58, %v2820_v5 }
 0x772   :  { %v2379_v46 = vpop.xlane.xlu0 %2378 }
 0x773   :  { %v2381_v15 = vsub.f32 %v2373_v59, %v2379_v46  ;;  %v2919_v59 = vpop.permute.xlu1 %2918  ;;  %v5000_v46 = vld [vmem:[%s6574_s5 + $0x8] sm:$0xff]  }
 0x775   :  { %v2384_v51 = vmul.f32 1.442695, %v2381_v15  ;;  %v4949_v15 = vld [vmem:[%s6574_s5] sm:$0xff]  }
 0x776   :  { %v2474_v49 = vpop.permute.xlu0 %2473 }
 0x777   :  { %5529 = vpow2.f32 %v2384_v51  ;;  %5216 = vmatpush3.msk.msra.mxu1 %vm1947_vm5, %v2474_v49 }
 0x778   :  { %5234 = vmatprep.subr.mxu1 %v5566_v2 }
 0x77a   :  { %v2917_v38 = vpop.permute.xlu0 %2916 }
 0x77e   :  { %v2995_v16 = vpop.permute.xlu0 %2994 }
 0x781   :  { %v5530_v4 = vpop.eup %5529 }
 0x782   :  { %v2389_v8 = vsel %vm1881_vm6, %v5530_v4, 0.0 }
 0x783   :  { %2390 = vadd.xlane.f32.xlu1 %v2389_v8 }
 0x794   :  { %2996 = vrot.lane.b32.xlu1 %v6074_v1, %s5571_s2 }
 0x7b8   :  { %2375 = vmax.xlane.f32.xlu1 %v2374_v55 }
 0x810   :  { %v2391_v63 = vpop.xlane.xlu1 %2390 }
 0x811   :  { %5531 = vrcp.f32 %v2391_v63 }
 0x814   :  { %v2997_v60 = vpop.permute.xlu1 %2996 }
 0x81b   :  { %v5532_v53 = vpop.eup %5531 }
 0x81c   :  { %v2395_v57 = vmul.f32 %v5532_v53, %v5530_v4 }
 0x81e   :  { %5218 = vmatmul.mubr.msk.f32.vlgmr.msra.gmra.mrb[14].mxu1 %vm1943_vm7, %v2395_v57 }
 0x81f   :  { %5235 = vmatpush3.xpose.msk.msra.mxu1 %vm1638_vm4, %v2919_v59  ;;  %5236 = vmatprep.mubr.msk.f32.mxu1 %vm5568_vm3, %v5566_v2 }
 0x820   :  { %5239 = vmatprep.subr.mxu1 %v5566_v2 }
 0x822   :  { %5237 = vmatmul.mubr.msk.f32.vlgmr.msra.gmra.mrb[16].mxu1 %vm1638_vm4, %v2917_v38 }
 0x823   :  { %5240 = vmatpush3.xpose.msk.msra.mxu1 %vm1638_vm4, %v2997_v60  ;;  %5241 = vmatprep.mubr.msk.f32.mxu1 %vm5568_vm3, %v5566_v2 }
 0x824   :  { %5249 = vmatprep.subr.mxu1 %v5566_v2 }
 0x826   :  { %5242 = vmatmul.mubr.msk.f32.vlgmr.msra.gmra.mrb[18].mxu1 %vm1638_vm4, %v2995_v16 }
 0x827   :  { %5251 = vmatprep.mubr.msk.f32.mxu1 %vm5568_vm3, %v5566_v2 }
 0x845   :  { %v2376_v62 = vpop.xlane.xlu1 %2375 }
 0x846   :  { %v2380_v34 = vsub.f32 %v2372_v33, %v2376_v62 }
 0x848   :  { %v2382_v30 = vmul.f32 1.442695, %v2380_v34 }
 0x84a   :  { %5533 = vpow2.f32 %v2382_v30 }
 0x854   :  { %v5534_v48 = vpop.eup %5533 }
 0x855   :  { %v2386_v36 = vsel %vm1881_vm6, %v5534_v48, 0.0 }
 0x856   :  { %2387 = vadd.xlane.f32.xlu0 %v2386_v36 }
 0x86c   :  { %2396 = vrot.lane.b32.xlu0 %v6104_v39, %s5569_s3 }
 0x870   :  { %3175 = vrot.lane.b32.xlu0 %v6133_v3, %s5572_s10 }
 0x874   :  { %3479 = vrot.lane.b32.xlu0 %v6065_v61, %s5573_s1 }
 0x878   :  { %3557 = vrot.lane.b32.xlu0 %v6074_v1, %s5573_s1 }
 0x87c   :  { %3477 = vrot.lane.b32.xlu0 %v6037_v25, %s5574_s21 }
 0x8e3   :  { %v2388_v31 = vpop.xlane.xlu0 %2387 }
 0x8e4   :  { %5535 = vrcp.f32 %v2388_v31 }
 0x8e7   :  { %v2397_v56 = vpop.permute.xlu0 %2396 }
 0x8e8   :  { %5211 = vmatpush3.msk.msra.mxu0 %vm1947_vm5, %v2397_v56 }
 0x8e9   :  { %5396 = vmatprep.subr.bf16.mxu0 %v5000_v46 }
 0x8eb   :  { %v3176_v19 = vpop.permute.xlu0 %3175 }
 0x8ec   :  { %5250 = vmatpush3.msk.msra.mxu1 %vm1947_vm5, %v3176_v19 }
 0x8ed   :  { %5261 = vmatprep.subr.mxu1 %v5566_v2 }
 0x8ee   :  { %v5536_v10 = vpop.eup %5535 }
 0x8ef   :  { %v2394_v9 = vmul.f32 %v5536_v10, %v5534_v48 }
 0x8f1   :  { %5213 = vmatmul.mubr.msk.f32.vlgmr.msra.gmra.mrb[10].mxu0 %vm1943_vm7, %v2394_v9  ;;  %v2546_v61 = vpop.f32.mrb[14].mxu1 }
 0x8f2   :  { %v5219_v1 = vpop.f32.mrb[15].mxu1  ;;  %5398 = vmatpush3.bf16.msra.mxu0 %v5000_v46  ;;  %v2598_v57 = vrot.slane %v2546_v61, %v5654_v11  ;;  %v2591_v16 = vcombine.high %v2546_v61, %v2546_v61 }
 0x8f3   :  { %5400 = vmatprep.subr.bf16.mxu0 %v4949_v15 }
 0x8f4   :  { %v2606_v38 = vcombine.high %v2598_v57, %v2598_v57  ;;  %v2613_v60 = vrot.slane %v2598_v57, %v5654_v11  ;;  %v2605_v56 = vrot.slane %v2591_v16, %v5654_v11 }
 0x8f5   :  { %v2990_v54 = vpop.f32.mrb[16].mxu1 }
 0x8f6   :  { %v3072_v32 = vmul.f32 0.25, %v2990_v54  ;;  %v5238_v28 = vpop.f32.mrb[17].mxu1  ;;  %v2627_v62 = vrot.slane %v2606_v38, %v5654_v11  ;;  %v2628_v30 = vcombine.high %v2613_v60, %v2613_v60 }
 0x8f7   :  { %v2620_v28 = vrot.slane %v2605_v56, %v5654_v11 }
 0x8f8   :  { %v3074_v25 = vadd.f32 %v3072_v32, %v6112_v45  ;;  %v2633_v9 = vcombine.low %v2627_v62, %v2628_v30  ;;  %v2175_v32 = vcombine.high %v6160_v13, %v6160_v13  ;;  %v2213_v13 = vcombine.high %v6174_v37, %v6174_v37  ;;  %v3480_v30 = vpop.permute.xlu0 %3479 }
 0x8f9   :  { %v3068_v14 = vpop.f32.mrb[18].mxu1 }
 0x8fa   :  { %v3073_v50 = vmul.f32 0.25, %v3068_v14  ;;  %v5243_v52 = vpop.f32.mrb[19].mxu1  ;;  %v3076_v47 = vsel %vm1881_vm6, %v3074_v25, -inf }
 0x8fb   :  { %3077 = vmax.xlane.f32.xlu1 %v3076_v47  ;;  %v2661_v47 = vrot.slane %v2633_v9, %v5654_v11 }
 0x8fc   :  { %v3075_v58 = vadd.f32 %v3073_v50, %v6112_v45 }
 0x8fe   :  { %v3079_v5 = vsel %vm1881_vm6, %v3075_v58, -inf }
 0x8ff   :  { %3080 = vmax.xlane.f32.xlu1 %v3079_v5 }
 0x988   :  { %v3078_v51 = vpop.xlane.xlu1 %3077 }
 0x989   :  { %v3082_v49 = vsub.f32 %v3074_v25, %v3078_v51  ;;  %v2189_v51 = vrot.slane %v2175_v32, %v5654_v11 }
 0x98b   :  { %v3084_v4 = vmul.f32 1.442695, %v3082_v49 }
 0x98c   :  { %v3081_v8 = vpop.xlane.xlu1 %3080 }
 0x98d   :  { %5537 = vpow2.f32 %v3084_v4  ;;  %v3083_v6 = vsub.f32 %v3075_v58, %v3081_v8 }
 0x98f   :  { %v3086_v33 = vmul.f32 1.442695, %v3083_v6 }
 0x991   :  { %5539 = vpow2.f32 %v3086_v33 }
 0x997   :  { %v6233_v55 = vpop.eup %5537 }
 0x998   :  { %v3088_v59 = vsel %vm1881_vm6, %v6233_v55, 0.0 }
 0x999   :  { %3089 = vadd.xlane.f32.xlu1 %v3088_v59  ;;  %v2204_v59 = vrot.slane %v2189_v51, %v5654_v11 }
 0x99b   :  { %v6237_v63 = vpop.eup %5539  ;;  %v2822_v57 = vcombine.low %v2213_v13, %v2204_v59 }
 0x99c   :  { %v3091_v53 = vsel %vm1881_vm6, %v6237_v63, 0.0 }
 0x99d   :  { %3092 = vadd.xlane.f32.xlu1 %v3091_v53  ;;  %v2829_v37 = vrot.slane %v2822_v57, %v5654_v11 }
 0x9ae   :  { %3098 = vrot.lane.b32.xlu1 %v6104_v39, %s5572_s10 }
 0x9b2   :  { %3555 = vrot.lane.b32.xlu1 %v6041_v27, %s5574_s21  ;;  %v2629_v27 = vcombine.high %v2627_v62, %v2627_v62 }
 0x9b4   :  { %v2679_v52 = vcombine.low %v2629_v27, %v2620_v28 }
 0x9b6   :  { %v2686_v8 = vrot.slane %v2679_v52, %v5654_v11 }
 0x9b8   :  { %v2693_v38 = vrot.slane %v2686_v8, %v5654_v11 }
 0x9c4   :  { %v2469_v34 = vpop.f32.mrb[10].mxu0 }
 0x9c5   :  { %v2552_v48 = vcombine.high %v2469_v34, %v2469_v34  ;;  %v2559_v36 = vrot.slane %v2469_v34, %v5654_v11  ;;  %v5214_v31 = vpop.f32.mrb[11].mxu0 }
 0x9c7   :  { %v2566_v19 = vrot.slane %v2552_v48, %v5654_v11  ;;  %v2567_v10 = vcombine.high %v2559_v36, %v2559_v36  ;;  %v2574_v1 = vrot.slane %v2559_v36, %v5654_v11  ;;  %v3558_v36 = vpop.permute.xlu0 %3557 }
 0x9c9   :  { %v2581_v54 = vrot.slane %v2566_v19, %v5654_v11  ;;  %v2588_v61 = vrot.slane %v2567_v10, %v5654_v11 }
 0x9cb   :  { %v2630_v25 = vcombine.low %v2574_v1, %v2588_v61  ;;  %v4892_v14 = vcombine.high %v2574_v1, %v2588_v61  ;;  %v2632_v50 = vcombine.low %v2581_v54, %v2613_v60  ;;  %v2836_v60 = vrot.slane %v2829_v37, %v5654_v11  ;;  %v3478_v56 = vpop.permute.xlu0 %3477 }
 0x9cd   :  { %v2640_v58 = vrot.slane %v2630_v25, %v5654_v11  ;;  %v2647_v5 = vrot.slane %v4892_v14, %v5654_v11  ;;  %v2654_v46 = vrot.slane %v2632_v50, %v5654_v11 }
 0x9cf   :  { %v2662_v49 = vcombine.low %v2640_v58, %v2647_v5  ;;  %v2663_v4 = vcombine.low %v2654_v46, %v2661_v47 }
 0x9d1   :  { %v2670_v6 = vrot.slane %v2662_v49, %v5654_v11  ;;  %v2677_v33 = vrot.slane %v2663_v4, %v5654_v11 }
 0x9d3   :  { %v2678_v53 = vcombine.low %v2670_v6, %v2677_v33 }
 0x9d5   :  { %5224 = vmatprep.mubr.msk.f32.mxu0 %vm1638_vm4, %v2678_v53 }
 0x9d6   :  { %5225 = vmatmul.mubr.msk.f32.vlgmr.msra.gmra.mrb[12].mxu0 %vm1638_vm4, %v2693_v38 }
 0x9d7   :  { %5231 = vmatprep.mubr.msk.f32.mxu0 %vm1638_vm4, %v6188_v0  ;;  %5402 = vmatpush3.bf16.msra.mxu0 %v4949_v15 }
 0x9d8   :  { %5244 = vmatprep.subr.mxu0 %v5566_v2 }
 0x9de   :  { %5232 = vmatmul.mubr.msk.f32.vlgmr.msra.gmra.mrb[12].mxu0 %vm1638_vm4, %v2836_v60 }
 0x9df   :  { %5246 = vmatprep.mubr.msk.f32.mxu0 %vm5568_vm3, %v5566_v2 }
 0xa26   :  { %v3090_v16 = vpop.xlane.xlu1 %3089 }
 0xa27   :  { %5541 = vrcp.f32 %v3090_v16 }
 0xa2a   :  { %v3093_v62 = vpop.xlane.xlu1 %3092 }
 0xa2b   :  { %5543 = vrcp.f32 %v3093_v62 }
 0xa2e   :  { %v3099_v34 = vpop.permute.xlu1 %3098 }
 0xa2f   :  { %5245 = vmatpush3.msk.msra.mxu0 %vm1947_vm5, %v3099_v34 }
 0xa31   :  { %v5542_v0 = vpop.eup %5541 }
 0xa32   :  { %v3096_v15 = vmul.f32 %v5542_v0, %v6233_v55  ;;  %v5001_v55 = vld [vmem:[%s6574_s5 + $0x10] sm:$0xff]  }
 0xa33   :  { %5404 = vmatprep.subr.bf16.mxu0 %v5001_v55 }
 0xa34   :  { %5247 = vmatmul.mubr.msk.f32.vlgmr.msra.gmra.mrb[14].mxu0 %vm1943_vm7, %v3096_v15 }
 0xa35   :  { %v5544_v48 = vpop.eup %5543  ;;  %5406 = vmatpush3.bf16.msra.mxu0 %v5001_v55 }
 0xa36   :  { %v3097_v31 = vmul.f32 %v5544_v48, %v6237_v63  ;;  %5266 = vmatprep.subr.mxu0 %v5566_v2 }
 0xa38   :  { %5252 = vmatmul.mubr.msk.f32.vlgmr.msra.gmra.mrb[20].mxu1 %vm1943_vm7, %v3097_v31 }
 0xa39   :  { %5262 = vmatpush3.xpose.msk.msra.mxu1 %vm1638_vm4, %v3480_v30  ;;  %5263 = vmatprep.mubr.msk.f32.mxu1 %vm5568_vm3, %v5566_v2 }
 0xa3a   :  { %5271 = vmatprep.subr.mxu1 %v5566_v2 }
 0xa3c   :  { %5264 = vmatmul.mubr.msk.f32.vlgmr.msra.gmra.mrb[22].mxu1 %vm1638_vm4, %v3478_v56 }
 0xa3d   :  { %5273 = vmatprep.mubr.msk.f32.mxu1 %vm5568_vm3, %v5566_v2 }
 0xb07   :  { %v3171_v63 = vpop.f32.mrb[14].mxu0 }
 0xb08   :  { %v3254_v19 = vcombine.high %v3171_v63, %v3171_v63  ;;  %v3261_v10 = vrot.slane %v3171_v63, %v5654_v11  ;;  %v5248_v27 = vpop.f32.mrb[15].mxu0  ;;  %v3556_v63 = vpop.permute.xlu1 %3555 }
 0xb0a   :  { %v3269_v9 = vcombine.high %v3261_v10, %v3261_v10  ;;  %v3268_v1 = vrot.slane %v3254_v19, %v5654_v11  ;;  %v3276_v61 = vrot.slane %v3261_v10, %v5654_v11 }
 0xb0b   :  { %v3248_v54 = vpop.f32.mrb[20].mxu1 }
 0xb0c   :  { %v3290_v32 = vrot.slane %v3269_v9, %v5654_v11  ;;  %v3293_v28 = vcombine.high %v3248_v54, %v3248_v54  ;;  %v3300_v25 = vrot.slane %v3248_v54, %v5654_v11  ;;  %v5253_v14 = vpop.f32.mrb[21].mxu1  ;;  %v3283_v5 = vrot.slane %v3268_v1, %v5654_v11 }
 0xb0e   :  { %v3332_v50 = vcombine.low %v3276_v61, %v3290_v32  ;;  %v4906_v52 = vcombine.high %v3276_v61, %v3290_v32  ;;  %v3307_v47 = vrot.slane %v3293_v28, %v5654_v11  ;;  %v3308_v58 = vcombine.high %v3300_v25, %v3300_v25 }
 0xb0f   :  { %v3315_v46 = vrot.slane %v3300_v25, %v5654_v11  ;;  %v3551_v51 = vpop.f32.mrb[22].mxu1 }
 0xb10   :  { %v3342_v49 = vrot.slane %v3332_v50, %v5654_v11  ;;  %v3329_v4 = vrot.slane %v3308_v58, %v5654_v11  ;;  %v5265_v13 = vpop.f32.mrb[23].mxu1  ;;  %v3349_v8 = vrot.slane %v4906_v52, %v5654_v11  ;;  %v3633_v59 = vmul.f32 0.25, %v3551_v51 }
 0xb11   :  { %v3330_v6 = vcombine.high %v3315_v46, %v3315_v46  ;;  %v3334_v33 = vcombine.low %v3283_v5, %v3315_v46  ;;  %v3322_v53 = vrot.slane %v3307_v47, %v5654_v11 }
 0xb12   :  { %v3331_v57 = vcombine.high %v3329_v4, %v3329_v4  ;;  %v3635_v37 = vadd.f32 %v3633_v59, %v6112_v45  ;;  %v3364_v16 = vcombine.low %v3342_v49, %v3349_v8 }
 0xb13   :  { %v3335_v38 = vcombine.low %v3329_v4, %v3330_v6  ;;  %v3356_v62 = vrot.slane %v3334_v33, %v5654_v11  ;;  %v5002_v6 = vld [vmem:[%s6574_s5 + $0x18] sm:$0xff]  }
 0xb14   :  { %v3381_v60 = vcombine.low %v3331_v57, %v3322_v53  ;;  %v3637_v30 = vsel %vm1881_vm6, %v3635_v37, -inf  ;;  %v3372_v48 = vrot.slane %v3364_v16, %v5654_v11 }
 0xb15   :  { %v3363_v34 = vrot.slane %v3335_v38, %v5654_v11  ;;  %3638 = vmax.xlane.f32.xlu0 %v3637_v30 }
 0xb16   :  { %v3388_v15 = vrot.slane %v3381_v60, %v5654_v11 }
 0xb17   :  { %v3365_v0 = vcombine.low %v3356_v62, %v3363_v34 }
 0xb18   :  { %v3395_v55 = vrot.slane %v3388_v15, %v5654_v11 }
 0xb19   :  { %v3379_v31 = vrot.slane %v3365_v0, %v5654_v11 }
 0xb1b   :  { %v3380_v56 = vcombine.low %v3372_v48, %v3379_v31 }
 0xb1d   :  { %5258 = vmatprep.mubr.msk.f32.mxu0 %vm1638_vm4, %v3380_v56 }
 0xb1e   :  { %5259 = vmatmul.mubr.msk.f32.vlgmr.msra.gmra.mrb[12].mxu0 %vm1638_vm4, %v3395_v55 }
 0xb1f   :  { %5267 = vmatpush3.xpose.msk.msra.mxu0 %vm1638_vm4, %v3558_v36  ;;  %5268 = vmatprep.mubr.msk.f32.mxu0 %vm5568_vm3, %v5566_v2 }
 0xb20   :  { %5276 = vmatprep.subr.mxu0 %v5566_v2 }
 0xb22   :  { %5269 = vmatmul.mubr.msk.f32.vlgmr.msra.gmra.mrb[16].mxu0 %vm1638_vm4, %v3556_v63 }
 0xb23   :  { %5278 = vmatprep.mubr.msk.f32.mxu0 %vm5568_vm3, %v5566_v2 }
 0xba2   :  { %v3639_v19 = vpop.xlane.xlu0 %3638 }
 0xba3   :  { %v3643_v10 = vsub.f32 %v3635_v37, %v3639_v19 }
 0xba5   :  { %v3645_v27 = vmul.f32 1.442695, %v3643_v10 }
 0xba7   :  { %5545 = vpow2.f32 %v3645_v27 }
 0xbb1   :  { %v5546_v9 = vpop.eup %5545 }
 0xbb2   :  { %v3649_v1 = vsel %vm1881_vm6, %v5546_v9, 0.0 }
 0xbb3   :  { %3650 = vadd.xlane.f32.xlu0 %v3649_v1 }
 0xbf5   :  { %v3629_v36 = vpop.f32.mrb[16].mxu0 }
 0xbf6   :  { %v3634_v54 = vmul.f32 0.25, %v3629_v36  ;;  %v5270_v61 = vpop.f32.mrb[17].mxu0 }
 0xbf8   :  { %v3636_v32 = vadd.f32 %v3634_v54, %v6112_v45 }
 0xbfa   :  { %v3640_v28 = vsel %vm1881_vm6, %v3636_v32, -inf }
 0xbfb   :  { %3641 = vmax.xlane.f32.xlu1 %v3640_v28 }
 0xc0c   :  { %3659 = vrot.lane.b32.xlu1 %v6104_v39, %s5574_s21 }
 0xc40   :  { %v3651_v25 = vpop.xlane.xlu0 %3650 }
 0xc41   :  { %5547 = vrcp.f32 %v3651_v25 }
 0xc4b   :  { %v5548_v50 = vpop.eup %5547 }
 0xc4c   :  { %v3657_v58 = vmul.f32 %v5548_v50, %v5546_v9 }
 0xc88   :  { %v3642_v14 = vpop.xlane.xlu1 %3641 }
 0xc89   :  { %v3644_v52 = vsub.f32 %v3636_v32, %v3642_v14 }
 0xc8b   :  { %v3647_v47 = vmul.f32 1.442695, %v3644_v52 }
 0xc8c   :  { %v3660_v5 = vpop.permute.xlu1 %3659 }
 0xc8d   :  { %5549 = vpow2.f32 %v3647_v47  ;;  %5272 = vmatpush3.msk.msra.mxu1 %vm1947_vm5, %v3660_v5 }
 0xc8e   :  { %5274 = vmatmul.mubr.msk.f32.vlgmr.msra.gmra.mrb[24].mxu1 %vm1943_vm7, %v3657_v58 }
 0xc8f   :  { %4531 = vmatprep.mubr.f32.mxu1 %v5566_v2 }
 0xc97   :  { %v5550_v45 = vpop.eup %5549 }
 0xc98   :  { %v3652_v46 = vsel %vm1881_vm6, %v5550_v45, 0.0 }
 0xc99   :  { %3653 = vadd.xlane.f32.xlu0 %v3652_v46 }
 0xcaf   :  { %3736 = vrot.lane.b32.xlu0 %v6133_v3, %s5574_s21 }
 0xd26   :  { %v3654_v39 = vpop.xlane.xlu0 %3653 }
 0xd27   :  { %5551 = vrcp.f32 %v3654_v39 }
 0xd2a   :  { %v3737_v51 = vpop.permute.xlu0 %3736 }
 0xd2b   :  { %5277 = vmatpush3.msk.msra.mxu0 %vm1947_vm5, %v3737_v51 }
 0xd2c   :  { %5408 = vmatprep.subr.bf16.mxu0 %v5002_v6 }
 0xd31   :  { %v5552_v49 = vpop.eup %5551 }
 0xd32   :  { %v3658_v4 = vmul.f32 %v5552_v49, %v5550_v45 }
 0xd34   :  { %5279 = vmatmul.mubr.msk.f32.vlgmr.msra.gmra.mrb[18].mxu0 %vm1943_vm7, %v3658_v4 }
 0xd35   :  { %5410 = vmatpush3.bf16.msra.mxu0 %v5002_v6 }
 0xd61   :  { %v3732_v13 = vpop.f32.mrb[24].mxu1 }
 0xd62   :  { %v5275_v8 = vpop.f32.mrb[25].mxu1  ;;  %v3822_v33 = vrot.slane %v3732_v13, %v5654_v11  ;;  %v3815_v59 = vcombine.high %v3732_v13, %v3732_v13 }
 0xd64   :  { %v3830_v3 = vcombine.high %v3822_v33, %v3822_v33  ;;  %v3837_v57 = vrot.slane %v3822_v33, %v5654_v11  ;;  %v3829_v38 = vrot.slane %v3815_v59, %v5654_v11 }
 0xd66   :  { %v3851_v53 = vrot.slane %v3830_v3, %v5654_v11  ;;  %v3844_v0 = vrot.slane %v3829_v38, %v5654_v11 }
 0xd68   :  { %v3893_v37 = vcombine.low %v3837_v57, %v3851_v53  ;;  %v4917_v16 = vcombine.high %v3837_v57, %v3851_v53 }
 0xd6a   :  { %v3903_v56 = vrot.slane %v3893_v37, %v5654_v11  ;;  %v3910_v55 = vrot.slane %v4917_v16, %v5654_v11 }
 0xd6c   :  { %v3925_v36 = vcombine.low %v3903_v56, %v3910_v55 }
 0xd6e   :  { %v3933_v14 = vrot.slane %v3925_v36, %v5654_v11 }
 0xe07   :  { %v3809_v60 = vpop.f32.mrb[18].mxu0 }
 0xe08   :  { %v3854_v62 = vcombine.high %v3809_v60, %v3809_v60  ;;  %v3861_v34 = vrot.slane %v3809_v60, %v5654_v11  ;;  %v5280_v30 = vpop.f32.mrb[19].mxu0 }
 0xe0a   :  { %v3868_v15 = vrot.slane %v3854_v62, %v5654_v11  ;;  %v3869_v48 = vcombine.high %v3861_v34, %v3861_v34  ;;  %v3876_v31 = vrot.slane %v3861_v34, %v5654_v11 }
 0xe0c   :  { %v3890_v63 = vrot.slane %v3869_v48, %v5654_v11  ;;  %v3891_v19 = vcombine.high %v3876_v31, %v3876_v31  ;;  %v3895_v10 = vcombine.low %v3844_v0, %v3876_v31  ;;  %v3883_v27 = vrot.slane %v3868_v15, %v5654_v11 }
 0xe0e   :  { %v3892_v9 = vcombine.high %v3890_v63, %v3890_v63  ;;  %v3896_v1 = vcombine.low %v3890_v63, %v3891_v19  ;;  %v3917_v54 = vrot.slane %v3895_v10, %v5654_v11 }
 0xe10   :  { %v3924_v61 = vrot.slane %v3896_v1, %v5654_v11  ;;  %v3942_v32 = vcombine.low %v3892_v9, %v3883_v27 }
 0xe12   :  { %v3926_v28 = vcombine.low %v3917_v54, %v3924_v61  ;;  %v3949_v25 = vrot.slane %v3942_v32, %v5654_v11 }
 0xe14   :  { %v3940_v50 = vrot.slane %v3926_v28, %v5654_v11  ;;  %v3956_v47 = vrot.slane %v3949_v25, %v5654_v11 }
 0xe16   :  { %v3941_v52 = vcombine.low %v3933_v14, %v3940_v50 }
 0xe18   :  { %5285 = vmatprep.mubr.msk.f32.mxu0 %vm1638_vm4, %v3941_v52 }
 0xe19   :  { %5286 = vmatmul.mubr.msk.f32.vlgmr.msra.gmra.mrb[12].mxu0 %vm1638_vm4, %v3956_v47 }
 0xeec   :  { %v5287_v58 = vpop.f32.mrb[12].mxu0 }
 0xeed   :  { %v4095_v5 = vrot.slane %v5287_v58, %v5654_v11  ;;  %v4027_v45 = vpop.f32.mrb[13].mxu0 }
 0xeee   :  { %v4040_v46 = vcombine.high %v4027_v45, %v4027_v45  ;;  %v4047_v39 = vrot.slane %v4027_v45, %v5654_v11  ;;  %v5505_v45 = vld [vmem:[%s6575_s7 + $0x4] ss:$8 sps:$4 sm:$0xff]  }
 0xeef   :  { %v4096_v51 = vcombine.high %v4095_v5, %v4095_v5  ;;  %v4103_v49 = vrot.slane %v4095_v5, %v5654_v11  ;;  %5412 = vmatprep.subr.bf16.mxu1 %v5505_v45 }
 0xef0   :  { %v4054_v4 = vrot.slane %v4040_v46, %v5654_v11  ;;  %v4055_v13 = vcombine.high %v4047_v39, %v4047_v39  ;;  %v4063_v8 = vrot.slane %v4047_v39, %v5654_v11  ;;  %v5507_v46 = vld [vmem:[%s6575_s7] ss:$8 sps:$4 sm:$0xff]   ;;  %v5508_v39 = vld [vmem:[%s6575_s7 + $0x14] ss:$8 sps:$4 sm:$0xff]  }
 0xef1   :  { %v4110_v6 = vrot.slane %v4096_v51, %v5654_v11  ;;  %v6367_v33 = vadd.f32 %v4103_v49, %v5706_v35  ;;  %5414 = vmatpush1.bf16.msra.mxu1 %v5507_v46  ;;  %v5510_v51 = vld [vmem:[%s6575_s7 + $0x10] ss:$8 sps:$4 sm:$0xff]   ;;  %v5511_v49 = vld [vmem:[%s6575_s7 + $0x24] ss:$8 sps:$4 sm:$0xff]  }
 0xef2   :  { %v4056_v3 = vcombine.high %v4054_v4, %v4054_v4  ;;  %v4070_v59 = vrot.slane %v4054_v4, %v5654_v11  ;;  %v4077_v53 = vrot.slane %v4055_v13, %v5654_v11  ;;  %v4085_v57 = vcombine.high %v4063_v8, %v4063_v8  ;;  %5416 = vmatprep.subr.bf16.mxu1 %v5508_v39  ;;  %v5513_v4 = vld [vmem:[%s6575_s7 + $0x20] ss:$8 sps:$4 sm:$0xff]   ;;  %v5514_v13 = vld [vmem:[%s6575_s7 + $0x34] ss:$8 sps:$4 sm:$0xff]  }
 0xef3   :  { %v6372_v38 = vadd.f32 %v4110_v6, %v5670_v21  ;;  %v6375_v37 = vadd.f32 %v4063_v8, %v5661_v17  ;;  %v4141_v21 = vmul.f32 %v6367_v33, %v6367_v33  ;;  %v5516_v8 = vld [vmem:[%s6575_s7 + $0x30] ss:$8 sps:$4 sm:$0xff]   ;;  %v4131_v6 = vld [vmem:[%s6576_s6] sm:$0x1] }
 0xef4   :  { %v4084_v60 = vrot.slane %v4056_v3, %v5654_v11  ;;  %v4086_v16 = vcombine.high %v4070_v59, %v4070_v59  ;;  %v4087_v62 = vcombine.high %v4077_v53, %v4077_v53  ;;  %v6379_v34 = vadd.f32 %v4077_v53, %v5673_v22 }
 0xef5   :  { %v6382_v35 = vadd.f32 %v4085_v57, %v5677_v23  ;;  %v6385_v30 = vadd.f32 %v4070_v59, %v5664_v18  ;;  %v4142_v17 = vmul.f32 %v6372_v38, %v6372_v38  ;;  %v4133_v18 = vmul.f32 %v6375_v37, %v6375_v37  ;;  %5418 = vmatpush1.bf16.msra.mxu1 %v5510_v51 }
 0xef6   :  { %v4088_v0 = vcombine.high %v4084_v60, %v4084_v60  ;;  %v6392_v15 = vadd.f32 %v4087_v62, %v5694_v29  ;;  %v6395_v48 = vadd.f32 %v4084_v60, %v5667_v20  ;;  %v6398_v22 = vadd.f32 %v4086_v16, %v5680_v24  ;;  %5420 = vmatprep.subr.bf16.mxu1 %v5511_v49 }
 0xef7   :  { %v4134_v23 = vmul.f32 %v6379_v34, %v6379_v34  ;;  %v4135_v31 = vmul.f32 %v6382_v35, %v6382_v35  ;;  %v4202_v56 = vcombine.low %v4141_v21, %v4142_v17  ;;  %v4137_v20 = vmul.f32 %v6385_v30, %v6385_v30 }
 0xef8   :  { %v6407_v55 = vadd.f32 %v4088_v0, %v5686_v26  ;;  %v4136_v24 = vmul.f32 %v6392_v15, %v6392_v15  ;;  %v4138_v29 = vmul.f32 %v6395_v48, %v6395_v48  ;;  %v4139_v10 = vmul.f32 %v6398_v22, %v6398_v22 }
 0xef9   :  { %v4209_v63 = vrot.slane %v4202_v56, %v5654_v11  ;;  %v4153_v19 = vcombine.low %v4133_v18, %v4134_v23  ;;  %5422 = vmatpush1.bf16.msra.mxu1 %v5513_v4  ;;  %v4132_v53 = vunpack.c.l.bf16 %v4131_v6 }
 0xefa   :  { %v4140_v27 = vmul.f32 %v6407_v55, %v6407_v55  ;;  %v4154_v26 = vcombine.low %v4135_v31, %v4136_v24  ;;  %v4155_v9 = vcombine.low %v4137_v20, %v4138_v29  ;;  %5424 = vmatprep.subr.bf16.mxu1 %v5514_v13 }
 0xefb   :  { %v4216_v1 = vrot.slane %v4209_v63, %v5654_v11  ;;  %v4163_v54 = vrot.slane %v4153_v19, %v5654_v11  ;;  %v4296_v60 = vrot.slane %v4132_v53, %v5786_v12 }
 0xefc   :  { %v4156_v36 = vcombine.low %v4139_v10, %v4140_v27  ;;  %v4170_v61 = vrot.slane %v4154_v26, %v5654_v11  ;;  %v4177_v28 = vrot.slane %v4155_v9, %v5654_v11 }
 0xefd   :  { %v4222_v32 = vsel %vm230_vm1, %v4216_v1, 0.0  ;;  %5426 = vmatpush1.bf16.msra.mxu1 %v5516_v8  ;;  %v4298_v16 = vcombine.high %v4296_v60, %v4296_v60  ;;  %v4305_v18 = vrot.slane %v4296_v60, %v5654_v11 }
 0xefe   :  { %4223 = vadd.xlane.f32.xlu0 %v4222_v32  ;;  %v4184_v25 = vrot.slane %v4156_v36, %v5654_v11  ;;  %v4185_v14 = vcombine.low %v4163_v54, %v4170_v61 }
 0xeff   :  { %v4312_v0 = vrot.slane %v4298_v16, %v5654_v11  ;;  %v4313_v56 = vcombine.high %v4305_v18, %v4305_v18  ;;  %v4321_v19 = vrot.slane %v4305_v18, %v5654_v11 }
 0xf00   :  { %v4186_v50 = vcombine.low %v4177_v28, %v4184_v25  ;;  %v4193_v52 = vrot.slane %v4185_v14, %v5654_v11 }
 0xf01   :  { %v4314_v23 = vcombine.high %v4312_v0, %v4312_v0  ;;  %v4328_v20 = vrot.slane %v4312_v0, %v5654_v11  ;;  %v4335_v10 = vrot.slane %v4313_v56, %v5654_v11  ;;  %v4343_v27 = vcombine.high %v4321_v19, %v4321_v19 }
 0xf02   :  { %v4200_v47 = vrot.slane %v4186_v50, %v5654_v11 }
 0xf03   :  { %v4342_v63 = vrot.slane %v4314_v23, %v5654_v11  ;;  %v4344_v26 = vcombine.high %v4328_v20, %v4328_v20  ;;  %v4345_v54 = vcombine.high %v4335_v10, %v4335_v10 }
 0xf04   :  { %v4201_v58 = vcombine.low %v4193_v52, %v4200_v47  ;;  %v6581_v47 = vsub.s32 6, %v5651_v7 }
 0xf05   :  { %v4346_v61 = vcombine.high %v4342_v63, %v4342_v63 }
 0xf06   :  { %v4219_v5 = vsel %vm226_vm0, %v4201_v58, 0.0 }
 0xf07   :  { %4220 = vadd.xlane.f32.xlu1 %v4219_v5  ;;  %v6582_v5 = vsub.s32 7, %v5651_v7 }
 0xf8b   :  { %v4224_v3 = vpop.xlane.xlu0 %4223 }
 0xf8c   :  { %v4226_v59 = vmul.f32 0.015625, %v4224_v3 }
 0xf8e   :  { %v4228_v57 = vadd.f32 1e-06, %v4226_v59 }
 0xf90   :  { %5553 = vrsqrt.f32 %v4228_v57 }
 0xf94   :  { %v4221_v62 = vpop.xlane.xlu1 %4220 }
 0xf95   :  { %v4225_v21 = vmul.f32 0.015625, %v4221_v62 }
 0xf97   :  { %v4227_v17 = vadd.f32 1e-06, %v4225_v21 }
 0xf99   :  { %5555 = vrsqrt.f32 %v4227_v17 }
 0xf9a   :  { %v5554_v31 = vpop.eup %5553 }
 0xf9b   :  { %v4268_v24 = vrot.slane %v5554_v31, %v5786_v12  ;;  %v4272_v29 = vrot.slane %v5554_v31, %v5796_v40 }
 0xf9d   :  { %v4291_v1 = vmul.f32 %v4268_v24, %v6367_v33  ;;  %v4292_v36 = vmul.f32 %v4272_v29, %v6372_v38 }
 0xf9f   :  { %v4363_v16 = vmul.f32 %v4321_v19, %v4291_v1  ;;  %v4364_v62 = vmul.f32 %v4335_v10, %v4292_v36  ;;  %v5007_v1 = vld [vmem:[%s6577_s8 + $0x28] sm:$0xff]   ;;  %v5008_v36 = vld [vmem:[%s6577_s8 + $0x30] sm:$0xff]  }
 0xfa1   :  { %v4448_v56 = vcombine.low %v4363_v16, %v4364_v62 }
 0xfa3   :  { %v5556_v9 = vpop.eup %5555 }
 0xfa4   :  { %v4236_v32 = vrot.slane %v5556_v9, %v5786_v12  ;;  %v4240_v28 = vrot.slane %v5556_v9, %v5796_v40  ;;  %v4244_v25 = vrot.slane %v5556_v9, %v253_v41  ;;  %v4248_v14 = vrot.slane %v5556_v9, %v257_v42 }
 0xfa5   :  { %v4252_v50 = vrot.slane %v5556_v9, %v261_v43  ;;  %v4256_v52 = vrot.slane %v5556_v9, %v265_v44  ;;  %v4260_v58 = vrot.slane %v5556_v9, %v6581_v47  ;;  %v4264_v12 = vrot.slane %v5556_v9, %v6582_v5  ;;  %v5006_v9 = vld [vmem:[%s6577_s8 + $0x20] sm:$0xff]  }
 0xfa6   :  { %v4283_v40 = vmul.f32 %v4236_v32, %v6375_v37  ;;  %v4284_v45 = vmul.f32 %v4240_v28, %v6379_v34  ;;  %v4285_v41 = vmul.f32 %v4244_v25, %v6382_v35  ;;  %v4286_v42 = vmul.f32 %v4248_v14, %v6392_v15 }
 0xfa7   :  { %v4287_v46 = vmul.f32 %v4252_v50, %v6385_v30  ;;  %v4288_v43 = vmul.f32 %v4256_v52, %v6395_v48  ;;  %v4289_v44 = vmul.f32 %v4260_v58, %v6398_v22  ;;  %v4290_v39 = vmul.f32 %v4264_v12, %v6407_v55 }
 0xfa8   :  { %v4355_v51 = vmul.f32 %v4321_v19, %v4283_v40  ;;  %v4356_v49 = vmul.f32 %v4335_v10, %v4284_v45  ;;  %v4357_v7 = vmul.f32 %v4343_v27, %v4285_v41  ;;  %v4358_v4 = vmul.f32 %v4345_v54, %v4286_v42  ;;  %v4965_v10 = vld [vmem:[%s6577_s8] sm:$0xff]   ;;  %v5003_v27 = vld [vmem:[%s6577_s8 + $0x8] sm:$0xff]   ;;  %v5009_v54 = vld [vmem:[%s6577_s8 + $0x38] sm:$0xff]  }
 0xfa9   :  { %v4359_v13 = vmul.f32 %v4328_v20, %v4287_v46  ;;  %v4360_v8 = vmul.f32 %v4342_v63, %v4288_v43  ;;  %v4361_v6 = vmul.f32 %v4344_v26, %v4289_v44  ;;  %v4362_v3 = vmul.f32 %v4346_v61, %v4290_v39  ;;  %5428 = vmatprep.subr.bf16.mxu0 %v4965_v10  ;;  %v5005_v26 = vld [vmem:[%s6577_s8 + $0x18] sm:$0xff]  }
 0xfaa   :  { %v4399_v59 = vcombine.low %v4355_v51, %v4356_v49  ;;  %v4400_v53 = vcombine.low %v4357_v7, %v4358_v4  ;;  %v4455_v63 = vrot.slane %v4448_v56, %v5654_v11  ;;  %5430 = vmatpush3.bf16.msra.mxu0 %v4965_v10 }
 0xfab   :  { %v4401_v57 = vcombine.low %v4359_v13, %v4360_v8  ;;  %v4402_v60 = vcombine.low %v4361_v6, %v4362_v3  ;;  %5432 = vmatprep.subr.bf16.mxu0 %v5003_v27 }
 0xfac   :  { %v4409_v21 = vrot.slane %v4399_v59, %v5654_v11  ;;  %v4416_v17 = vrot.slane %v4400_v53, %v5654_v11  ;;  %v4462_v19 = vrot.slane %v4455_v63, %v5654_v11 }
 0xfad   :  { %v4423_v0 = vrot.slane %v4401_v57, %v5654_v11  ;;  %v4430_v18 = vrot.slane %v4402_v60, %v5654_v11 }
 0xfae   :  { %v4431_v23 = vcombine.low %v4409_v21, %v4416_v17  ;;  %5434 = vmatpush3.bf16.msra.mxu0 %v5003_v27 }
 0xfaf   :  { %v4432_v31 = vcombine.low %v4423_v0, %v4430_v18 }
 0xfb0   :  { %v4439_v20 = vrot.slane %v4431_v23, %v5654_v11 }
 0xfb1   :  { %v4446_v24 = vrot.slane %v4432_v31, %v5654_v11 }
 0xfb3   :  { %v4447_v29 = vcombine.low %v4439_v20, %v4446_v24 }
 0xfb5   :  { %4920 = vmatmul.mubr.msk.f32.vlgmr.msra.gmra.mrb[26].mxu1 %vm226_vm0, %v4447_v29 }
 0xfb6   :  { %4537 = vmatprep.mubr.f32.mxu1 %v5566_v2  ;;  %v5004_v2 = vld [vmem:[%s6577_s8 + $0x10] sm:$0xff]  }
 0xfb7   :  { %5436 = vmatprep.subr.bf16.mxu0 %v5004_v2 }
 0xfb8   :  { %5438 = vmatpush3.bf16.msra.mxu0 %v5004_v2 }
 0xfb9   :  { %4921 = vmatmul.mubr.msk.f32.gmra.mrb[28].mxu1 %vm226_vm0, %v4462_v19  ;;  %5440 = vmatprep.subr.bf16.mxu0 %v5005_v26 }
 0xfbc   :  { %5442 = vmatpush3.bf16.msra.mxu0 %v5005_v26 }
 0xfbd   :  { %5444 = vmatprep.subr.bf16.mxu0 %v5006_v9 }
 0xfc0   :  { %5446 = vmatpush3.bf16.msra.mxu0 %v5006_v9 }
 0xfc1   :  { %5448 = vmatprep.subr.bf16.mxu0 %v5007_v1 }
 0xfc4   :  { %5450 = vmatpush3.bf16.msra.mxu0 %v5007_v1 }
 0xfc5   :  { %5452 = vmatprep.subr.bf16.mxu0 %v5008_v36 }
 0xfc8   :  { %5454 = vmatpush3.bf16.msra.mxu0 %v5008_v36 }
 0xfc9   :  { %5456 = vmatprep.subr.bf16.mxu0 %v5009_v54 }
 0xfcc   :  { %5458 = vmatpush3.bf16.msra.mxu0 %v5009_v54  ;;  %v4855_v54 = vld [vmem:[%s6578_s13] sm:$0x7] }
0x1088   :  { %v4533_v61 = vpop.f32.mrb[26].mxu1 }
0x1089   :  { %v4922_v32 = vmul.f32 -1.442695, %v4533_v61  ;;  %v4535_v28 = vpop.f32.mrb[27].mxu1 }
0x108b   :  { %5557 = vpow2.f32 %v4922_v32 }
0x108c   :  { %v4539_v25 = vpop.f32.mrb[28].mxu1 }
0x108d   :  { %v4923_v14 = vmul.f32 -1.442695, %v4539_v25  ;;  %v4541_v50 = vpop.f32.mrb[29].mxu1 }
0x108f   :  { %5559 = vpow2.f32 %v4923_v14 }
0x1095   :  { %v5558_v52 = vpop.eup %5557 }
0x1096   :  { %v4550_v47 = vadd.f32 1.0, %v5558_v52 }
0x1098   :  { %5561 = vrcp.f32 %v4550_v47 }
0x1099   :  { %v5560_v58 = vpop.eup %5559 }
0x109a   :  { %v4551_v5 = vadd.f32 1.0, %v5560_v58 }
0x109c   :  { %5563 = vrcp.f32 %v4551_v5 }
0x10a2   :  { %v5562_v12 = vpop.eup %5561 }
0x10a3   :  { %v4556_v40 = vmul.f32 %v5562_v12, %v4533_v61 }
0x10a5   :  { %v4558_v45 = vmul.f32 %v4556_v40, %v4535_v28  ;;  %v4858_v28 = vld [vmem:[%s6578_s13 + $0x4] sm:$0x7] }
0x10a6   :  { %v5564_v41 = vpop.eup %5563 }
0x10a7   :  { %v4557_v42 = vmul.f32 %v5564_v41, %v4539_v25  ;;  %5320 = vmatprep.mubr.f32.mxu0 %v4558_v45 }
0x10a9   :  { %v4559_v46 = vmul.f32 %v4557_v42, %v4541_v50 }
0x10ab   :  { %5321 = vmatmul.mubr.f32.vlgmr.msra.gmra.mrb[20].mxu0 %v4559_v46 }
0x117e   :  { %v5322_v43 = vpop.f32.mrb[20].mxu0 }
0x117f   :  { %v4724_v44 = vrot.slane %v5322_v43, %v5654_v11  ;;  %v4658_v39 = vpop.f32.mrb[21].mxu0 }
0x1180   :  { %v4669_v51 = vcombine.high %v4658_v39, %v4658_v39  ;;  %v4676_v49 = vrot.slane %v4658_v39, %v5654_v11 }
0x1181   :  { %v4725_v7 = vcombine.high %v4724_v44, %v4724_v44  ;;  %v4732_v57 = vrot.slane %v4724_v44, %v5654_v11 }
0x1182   :  { %v4683_v4 = vrot.slane %v4669_v51, %v5654_v11  ;;  %v4684_v13 = vcombine.high %v4676_v49, %v4676_v49  ;;  %v4692_v8 = vrot.slane %v4676_v49, %v5654_v11 }
0x1183   :  { %v4739_v60 = vrot.slane %v4725_v7, %v5654_v11  ;;  %v4758_v29 = vadd.f32 %v4732_v57, %v6367_v33 }
0x1184   :  { %v4685_v6 = vcombine.high %v4683_v4, %v4683_v4  ;;  %v4699_v3 = vrot.slane %v4683_v4, %v5654_v11  ;;  %v4706_v59 = vrot.slane %v4684_v13, %v5654_v11  ;;  %v4714_v53 = vcombine.high %v4692_v8, %v4692_v8 }
0x1185   :  { %v4750_v0 = vadd.f32 %v4692_v8, %v6375_v37  ;;  %v4759_v19 = vadd.f32 %v4739_v60, %v6372_v38 }
0x1186   :  { %v4713_v16 = vrot.slane %v4685_v6, %v5654_v11  ;;  %v4715_v62 = vcombine.high %v4699_v3, %v4699_v3  ;;  %v4716_v21 = vcombine.high %v4706_v59, %v4706_v59  ;;  %v4751_v17 = vadd.f32 %v4706_v59, %v6379_v34 }
0x1187   :  { %v4752_v18 = vadd.f32 %v4714_v53, %v6382_v35  ;;  %v4754_v23 = vadd.f32 %v4699_v3, %v6385_v30 }
0x1188   :  { %v4717_v31 = vcombine.high %v4713_v16, %v4713_v16  ;;  %v4753_v56 = vadd.f32 %v4716_v21, %v6392_v15  ;;  %v4755_v20 = vadd.f32 %v4713_v16, %v6395_v48  ;;  %v4756_v24 = vadd.f32 %v4715_v62, %v6398_v22 }
0x1189   :  { %v4770_v63 = vcombine.low %v4750_v0, %v4751_v17  ;;  %v4792_v27 = vrot.slane %v4754_v23, %v5654_v11  ;;  %v4831_v48 = vrot.slane %v4759_v19, %v5654_v11 }
0x118a   :  { %v4757_v34 = vadd.f32 %v4717_v31, %v6407_v55  ;;  %v4771_v10 = vcombine.low %v4752_v18, %v4753_v56  ;;  %v4809_v37 = vcombine.low %v4755_v20, %v4756_v24 }
0x118b   :  { %v4778_v35 = vrot.slane %v4770_v63, %v5654_v11  ;;  %v4807_v55 = vrot.slane %v4792_v27, %v5654_v11  ;;  %v4846_v9 = vrot.slane %v4831_v48, %v5654_v11 }
0x118c   :  { %v4785_v30 = vrot.slane %v4771_v10, %v5654_v11  ;;  %v4810_v15 = vcombine.low %v4757_v34, %v4758_v29  ;;  %v4817_v22 = vrot.slane %v4809_v37, %v5654_v11 }
0x118e   :  { %v4793_v2 = vcombine.low %v4778_v35, %v4785_v30  ;;  %v4824_v33 = vrot.slane %v4810_v15, %v5654_v11 }
0x1190   :  { %v4800_v38 = vrot.slane %v4793_v2, %v5654_v11  ;;  %v4832_v26 = vcombine.low %v4817_v22, %v4824_v33 }
0x1192   :  { %v4808_v1 = vcombine.low %v4800_v38, %v4807_v55  ;;  %v4839_v36 = vrot.slane %v4832_v26, %v5654_v11 }
0x1194   :  { %v4847_v61 = vcombine.low %v4839_v36, %v4846_v9  ;;  %v4850_v32 = vpack.c.bf16 %v4808_v1, %v4808_v1 }
0x1196   :  { %v4851_v25 = vpack.c.bf16 %v4847_v61, %v4847_v61  ;;  %v4856_v14 = vsel %vm4854_vm10, %v4850_v32, %v4855_v54 }
0x1197   :  { %4857 = vst [vmem:[%s6578_s13] sm:$0x7] %v4856_v14 }
0x1198   :  { %v4859_v50 = vsel %vm4854_vm10, %v4851_v25, %v4858_v28 }
0x1199   :  { %4860 = vst [vmem:[%s6578_s13 + $0x4] sm:$0x7] %v4859_v50 }

</bundles_post_ra>
